<compile_context>
chip_gen: v7x
topology: tpu7x:2x2x1
jax: 0.10.0
libtpu: 0.0.40
codegen_flags: <defaults>
</compile_context>

<pallas_src>
import jax
import jax.numpy as jnp
from jax.experimental import pallas as pl
from jax.experimental.pallas import tpu as pltpu

INPUT_SIZE = 150
HIDDEN = 128
NUM_CLASSES = 6


def _lstm_kernel(gx_ref, whh0_ref, wcat1_ref, b1_ref, hout_ref,
                 hcat, c0, c1):
    """One grid step = a block of Tt timesteps of the 2-layer LSTM.

    gx_ref   : (Tt, Bp, 4H)  precomputed x @ W_ih_l0^T + (b_ih + b_hh)_l0
    whh0_ref : (H, 4H)       layer-0 recurrent weights (pre-transposed)
    wcat1_ref: (2H, 4H)      fused [W_ih_l1; W_hh_l1] (pre-transposed)
    b1_ref   : (Bp, 4H)      layer-1 bias, pre-broadcast over batch rows
    hout_ref : (Bp, H)       layer-1 hidden state at the last timestep
    hcat     : (Bp, 2H)      persistent [h_layer0 | h_layer1] state (VMEM)
    c0, c1   : (Bp, H)       persistent cell states (VMEM)
    """
    H = HIDDEN
    tb = pl.program_id(0)

    @pl.when(tb == 0)
    def _init():
        hcat[...] = jnp.zeros_like(hcat)
        c0[...] = jnp.zeros_like(c0)
        c1[...] = jnp.zeros_like(c1)

    # Hoist constant weight loads out of the unrolled time loop.
    whh0 = whh0_ref[...]
    wcat1 = wcat1_ref[...]
    b1 = b1_ref[...]

    def gates_to_hc(gates, c_prev):
        # PyTorch gate order: input, forget, cell(g), output
        i = jax.nn.sigmoid(gates[:, 0 * H:1 * H])
        f = jax.nn.sigmoid(gates[:, 1 * H:2 * H])
        g = jnp.tanh(gates[:, 2 * H:3 * H])
        o = jax.nn.sigmoid(gates[:, 3 * H:4 * H])
        c_new = f * c_prev + i * g
        h_new = o * jnp.tanh(c_new)
        return h_new, c_new

    def step(t, carry):
        # Layer 0: only the recurrent matmul remains in the serial loop;
        # the input projection (and its bias) was precomputed into gx.
        gates0 = gx_ref[t] + jnp.dot(hcat[:, :H], whh0,
                                     preferred_element_type=jnp.float32)
        h0_new, c0_new = gates_to_hc(gates0, c0[...])
        hcat[:, :H] = h0_new
        c0[...] = c0_new

        # Layer 1: one fused matmul over [h0_new | h1_prev] with K = 2H.
        gates1 = jnp.dot(hcat[...], wcat1,
                         preferred_element_type=jnp.float32) + b1
        h1_new, c1_new = gates_to_hc(gates1, c1[...])
        hcat[:, H:] = h1_new
        c1[...] = c1_new
        return carry

    jax.lax.fori_loop(0, gx_ref.shape[0], step, 0, unroll=True)

    @pl.when(tb == pl.num_programs(0) - 1)
    def _final():
        hout_ref[...] = hcat[:, H:]


def _pick_time_block(T, max_tt=16):
    """Largest divisor of T that is <= max_tt (amortizes grid overhead)."""
    for tt in range(min(T, max_tt), 0, -1):
        if T % tt == 0:
            return tt
    return 1


def rnn_forward(x_btd, params):
    """x_btd: (B, T, INPUT_SIZE) float32, batch_first like the PyTorch module."""
    B, T, I = x_btd.shape
    assert I == INPUT_SIZE
    H = HIDDEN
    (wih0, whh0, b0, wih1, whh1, b1, wout, bout) = params

    B_pad = max(8, ((B + 7) // 8) * 8)          # sublane multiple
    time_block = _pick_time_block(T)
    n_tb = T // time_block

    # time-major, batch padded (padded rows compute garbage; sliced off later)
    x_tbd = jnp.transpose(x_btd, (1, 0, 2))                       # (T, B, I)
    x_tbd = jnp.pad(x_tbd, ((0, 0), (0, B_pad - B), (0, 0)))      # (T, Bp, I)

    # Hoisted input projection for layer 0: one large MXU-friendly matmul,
    # with the folded layer-0 bias included.
    gates_x = (x_tbd.reshape(T * B_pad, I) @ wih0 + b0)
    gates_x = gates_x.reshape(T, B_pad, 4 * H)                    # (T, Bp, 4H)

    # Fuse layer-1 weights; pre-broadcast layer-1 bias over batch rows.
    wcat1 = jnp.concatenate([wih1, whh1], axis=0)                 # (2H, 4H)
    b1_b = jnp.broadcast_to(b1, (B_pad, 4 * H))                   # (Bp, 4H)

    const2d = lambda shape: pl.BlockSpec(shape, lambda t: (0, 0))

    # TODO(synk): for v7x (2 TensorCores) add a leading "parallel" batch-tile
    # grid axis once real batch sizes warrant it; time stays "arbitrary".
    h_last = pl.pallas_call(
        _lstm_kernel,
        out_shape=jax.ShapeDtypeStruct((B_pad, H), jnp.float32),
        grid_spec=pltpu.PrefetchScalarGridSpec(
            num_scalar_prefetch=0,
            grid=(n_tb,),
            in_specs=[
                pl.BlockSpec((time_block, B_pad, 4 * H),
                             lambda t: (t, 0, 0)),                # gates_x slab
                const2d((H, 4 * H)),                              # W_hh_l0^T
                const2d((2 * H, 4 * H)),                          # [W_ih;W_hh]_l1^T
                const2d((B_pad, 4 * H)),                          # b_l1 broadcast
            ],
            out_specs=pl.BlockSpec((B_pad, H), lambda t: (0, 0)),
            scratch_shapes=[
                pltpu.VMEM((B_pad, 2 * H), jnp.float32),  # [h0 | h1]
                pltpu.VMEM((B_pad, H), jnp.float32),      # c layer 0
                pltpu.VMEM((B_pad, H), jnp.float32),      # c layer 1
            ],
        ),
        compiler_params=pltpu.CompilerParams(
            dimension_semantics=("arbitrary",)),   # time is sequential
    )(gates_x, whh0, wcat1, b1_b)

    h_last = h_last[:B]                     # drop batch padding
    return h_last @ wout + bout             # tiny (128 -> 6) head in plain JAX


def init_params(key):
    """Deterministic parameter init matching the PyTorch module's shapes.

    PyTorch stores W_ih_l0 (4H, I), W_hh_l0 (4H, H), etc.; we keep them
    pre-transposed for right-multiplication and fold the two bias vectors
    of each layer into one.
    """
    H, I = HIDDEN, INPUT_SIZE
    k = 1.0 / jnp.sqrt(jnp.float32(H))
    keys = jax.random.split(key, 10)
    u = lambda kk, shape: jax.random.uniform(kk, shape, jnp.float32, -k, k)

    wih0 = u(keys[0], (I, 4 * H))          # = W_ih_l0^T
    whh0 = u(keys[1], (H, 4 * H))          # = W_hh_l0^T
    b0 = u(keys[2], (1, 4 * H)) + u(keys[3], (1, 4 * H))   # b_ih_l0 + b_hh_l0
    wih1 = u(keys[4], (H, 4 * H))          # = W_ih_l1^T
    whh1 = u(keys[5], (H, 4 * H))          # = W_hh_l1^T
    b1 = u(keys[6], (1, 4 * H)) + u(keys[7], (1, 4 * H))   # b_ih_l1 + b_hh_l1

    ko = 1.0 / jnp.sqrt(jnp.float32(H))
    wout = jax.random.uniform(keys[8], (H, NUM_CLASSES), jnp.float32, -ko, ko)
    bout = jax.random.uniform(keys[9], (1, NUM_CLASSES), jnp.float32, -ko, ko)
    return (wih0, whh0, b0, wih1, whh1, b1, wout, bout)


def _reference_forward(x_btd, params):
    """Pure-JAX reference (same math) for a correctness check."""
    (wih0, whh0, b0, wih1, whh1, b1, wout, bout) = params
    B, T, _ = x_btd.shape
    H = HIDDEN

    def cell(x_t, h, c, wih, whh, bias):
        g = x_t @ wih + h @ whh + bias
        i = jax.nn.sigmoid(g[:, 0 * H:1 * H])
        f = jax.nn.sigmoid(g[:, 1 * H:2 * H])
        gg = jnp.tanh(g[:, 2 * H:3 * H])
        o = jax.nn.sigmoid(g[:, 3 * H:4 * H])
        c_new = f * c + i * gg
        return o * jnp.tanh(c_new), c_new

    def step(carry, x_t):
        h0, c0, h1, c1 = carry
        h0, c0 = cell(x_t, h0, c0, wih0, whh0, b0)
        h1, c1 = cell(h0, h1, c1, wih1, whh1, b1)
        return (h0, c0, h1, c1), h1

    z = jnp.zeros((B, H), jnp.float32)
    (_, _, h1, _), _ = jax.lax.scan(step, (z, z, z, z),
                                    jnp.transpose(x_btd, (1, 0, 2)))
    return h1 @ wout + bout


if __name__ == "__main__":
    key = jax.random.PRNGKey(0)
    kx, kp = jax.random.split(key)

    B, T = 2, 8
    x = jax.random.normal(kx, (B, T, INPUT_SIZE), jnp.float32)
    params = init_params(kp)

    out = rnn_forward(x, params)
    out = jax.block_until_ready(out)

    ref = _reference_forward(x, params)
    assert out.shape == (B, NUM_CLASSES)
    assert jnp.allclose(out, ref, atol=1e-4, rtol=1e-4)

    print("KERNEL_OK")
</pallas_src>

<mosaic_0001>
module attributes {stable_mosaic.version = 11 : i64} {
  func.func @_lstm_kernel(%arg0: i32, %arg1: memref<8x8x512xf32, #tpu.memory_space<vmem>>, %arg2: memref<128x512xf32, #tpu.memory_space<vmem>>, %arg3: memref<256x512xf32, #tpu.memory_space<vmem>>, %arg4: memref<8x512xf32, #tpu.memory_space<vmem>>, %arg5: memref<8x128xf32, #tpu.memory_space<vmem>>, %arg6: memref<8x256xf32, #tpu.memory_space<vmem>>, %arg7: memref<8x128xf32, #tpu.memory_space<vmem>>, %arg8: memref<8x128xf32, #tpu.memory_space<vmem>>) attributes {dimension_semantics = [#tpu.dimension_semantics<arbitrary>], iteration_bounds = array<i64: 1>, scalar_prefetch = 0 : i64, scratch_operands = 3 : i64, tpu.core_type = #tpu.core_type<tc>, window_params = [{transform_indices = @transform_0, window_bounds = array<i64: 8, 8, 512>}, {pipeline_mode = #tpu.pipeline_mode<synchronous>, transform_indices = @transform_1, window_bounds = array<i64: 128, 512>}, {pipeline_mode = #tpu.pipeline_mode<synchronous>, transform_indices = @transform_2, window_bounds = array<i64: 256, 512>}, {pipeline_mode = #tpu.pipeline_mode<synchronous>, transform_indices = @transform_3, window_bounds = array<i64: 8, 512>}, {pipeline_mode = #tpu.pipeline_mode<synchronous>, transform_indices = @transform_4, window_bounds = array<i64: 8, 128>}]} {
    %c0_i32 = arith.constant 0 : i32
    %0 = arith.cmpi eq, %arg0, %c0_i32 : i32
    %1 = arith.extui %0 : i1 to i32
    %c0_i32_0 = arith.constant 0 : i32
    %2 = arith.cmpi ne, %1, %c0_i32_0 : i32
    scf.if %2 {
      %cst_215 = arith.constant 0.000000e+00 : f32
      %529 = vector.broadcast %cst_215 : f32 to vector<8x256xf32>
      %c0_216 = arith.constant 0 : index
      %c0_217 = arith.constant 0 : index
      %530 = vector.load %arg6[%c0_216, %c0_217] : memref<8x256xf32, #tpu.memory_space<vmem>>, vector<8x256xf32>
      tpu.vector_store %arg6[%c0_216, %c0_217], %529 {strides = array<i32>} : memref<8x256xf32, #tpu.memory_space<vmem>>, vector<8x256xf32>,
      %cst_218 = arith.constant 0.000000e+00 : f32
      %531 = vector.broadcast %cst_218 : f32 to vector<8x128xf32>
      %c0_219 = arith.constant 0 : index
      %c0_220 = arith.constant 0 : index
      %532 = vector.load %arg7[%c0_219, %c0_220] : memref<8x128xf32, #tpu.memory_space<vmem>>, vector<8x128xf32>
      tpu.vector_store %arg7[%c0_219, %c0_220], %531 {strides = array<i32>} : memref<8x128xf32, #tpu.memory_space<vmem>>, vector<8x128xf32>,
      %cst_221 = arith.constant 0.000000e+00 : f32
      %533 = vector.broadcast %cst_221 : f32 to vector<8x128xf32>
      %c0_222 = arith.constant 0 : index
      %c0_223 = arith.constant 0 : index
      %534 = vector.load %arg8[%c0_222, %c0_223] : memref<8x128xf32, #tpu.memory_space<vmem>>, vector<8x128xf32>
      tpu.vector_store %arg8[%c0_222, %c0_223], %533 {strides = array<i32>} : memref<8x128xf32, #tpu.memory_space<vmem>>, vector<8x128xf32>,
    } else {
    }
    %c0 = arith.constant 0 : index
    %c0_1 = arith.constant 0 : index
    %3 = vector.load %arg2[%c0, %c0_1] : memref<128x512xf32, #tpu.memory_space<vmem>>, vector<128x512xf32>
    %c0_2 = arith.constant 0 : index
    %c0_3 = arith.constant 0 : index
    %4 = vector.load %arg3[%c0_2, %c0_3] : memref<256x512xf32, #tpu.memory_space<vmem>>, vector<256x512xf32>
    %c0_4 = arith.constant 0 : index
    %c0_5 = arith.constant 0 : index
    %5 = vector.load %arg4[%c0_4, %c0_5] : memref<8x512xf32, #tpu.memory_space<vmem>>, vector<8x512xf32>
    %c0_i32_6 = arith.constant 0 : i32
    %6 = arith.index_cast %c0_i32_6 : i32 to index
    %c0_7 = arith.constant 0 : index
    %c0_8 = arith.constant 0 : index
    %7 = vector.load %arg1[%6, %c0_7, %c0_8] : memref<8x8x512xf32, #tpu.memory_space<vmem>>, vector<1x8x512xf32>
    %8 = vector.shape_cast %7 : vector<1x8x512xf32> to vector<8x512xf32>
    %c0_9 = arith.constant 0 : index
    %c0_10 = arith.constant 0 : index
    %9 = vector.load %arg6[%c0_9, %c0_10] : memref<8x256xf32, #tpu.memory_space<vmem>>, vector<8x128xf32>
    %cst = arith.constant dense<0.000000e+00> : vector<8x512xf32>
    %10 = tpu.matmul %9, %3, %cst {dimension_numbers = #tpu.dot_dimension_numbers<[1], [0], [0], [1], [0, 0, 1, 1], [], []>} : vector<8x128xf32>, vector<128x512xf32>, vector<8x512xf32> -> vector<8x512xf32>
    %11 = arith.addf %8, %10 : vector<8x512xf32>
    %c0_11 = arith.constant 0 : index
    %c0_12 = arith.constant 0 : index
    %12 = vector.load %arg7[%c0_11, %c0_12] : memref<8x128xf32, #tpu.memory_space<vmem>>, vector<8x128xf32>
    %13 = vector.extract_strided_slice %11 {offsets = [0, 0], sizes = [8, 128], strides = [1, 1]} : vector<8x512xf32> to vector<8x128xf32>
    %14 = arith.negf %13 : vector<8x128xf32>
    %15 = math.exp %14 : vector<8x128xf32>
    %cst_13 = arith.constant 1.000000e+00 : f32
    %16 = vector.broadcast %cst_13 : f32 to vector<8x128xf32>
    %17 = arith.addf %16, %15 : vector<8x128xf32>
    %18 = arith.divf %16, %17 : vector<8x128xf32>
    %19 = vector.extract_strided_slice %11 {offsets = [0, 128], sizes = [8, 128], strides = [1, 1]} : vector<8x512xf32> to vector<8x128xf32>
    %20 = arith.negf %19 : vector<8x128xf32>
    %21 = math.exp %20 : vector<8x128xf32>
    %cst_14 = arith.constant 1.000000e+00 : f32
    %22 = vector.broadcast %cst_14 : f32 to vector<8x128xf32>
    %23 = arith.addf %22, %21 : vector<8x128xf32>
    %24 = arith.divf %22, %23 : vector<8x128xf32>
    %25 = vector.extract_strided_slice %11 {offsets = [0, 256], sizes = [8, 128], strides = [1, 1]} : vector<8x512xf32> to vector<8x128xf32>
    %26 = math.tanh %25 : vector<8x128xf32>
    %27 = vector.extract_strided_slice %11 {offsets = [0, 384], sizes = [8, 128], strides = [1, 1]} : vector<8x512xf32> to vector<8x128xf32>
    %28 = arith.negf %27 : vector<8x128xf32>
    %29 = math.exp %28 : vector<8x128xf32>
    %cst_15 = arith.constant 1.000000e+00 : f32
    %30 = vector.broadcast %cst_15 : f32 to vector<8x128xf32>
    %31 = arith.addf %30, %29 : vector<8x128xf32>
    %32 = arith.divf %30, %31 : vector<8x128xf32>
    %33 = arith.mulf %24, %12 : vector<8x128xf32>
    %34 = arith.mulf %18, %26 : vector<8x128xf32>
    %35 = arith.addf %33, %34 : vector<8x128xf32>
    %36 = math.tanh %35 : vector<8x128xf32>
    %37 = arith.mulf %32, %36 : vector<8x128xf32>
    %c0_16 = arith.constant 0 : index
    %c0_17 = arith.constant 0 : index
    %38 = vector.load %arg6[%c0_16, %c0_17] : memref<8x256xf32, #tpu.memory_space<vmem>>, vector<8x128xf32>
    tpu.vector_store %arg6[%c0_16, %c0_17], %37 {strides = array<i32>} : memref<8x256xf32, #tpu.memory_space<vmem>>, vector<8x128xf32>,
    %c0_18 = arith.constant 0 : index
    %c0_19 = arith.constant 0 : index
    %39 = vector.load %arg7[%c0_18, %c0_19] : memref<8x128xf32, #tpu.memory_space<vmem>>, vector<8x128xf32>
    tpu.vector_store %arg7[%c0_18, %c0_19], %35 {strides = array<i32>} : memref<8x128xf32, #tpu.memory_space<vmem>>, vector<8x128xf32>,
    %c0_20 = arith.constant 0 : index
    %c0_21 = arith.constant 0 : index
    %40 = vector.load %arg6[%c0_20, %c0_21] : memref<8x256xf32, #tpu.memory_space<vmem>>, vector<8x256xf32>
    %cst_22 = arith.constant dense<0.000000e+00> : vector<8x512xf32>
    %41 = tpu.matmul %40, %4, %cst_22 {dimension_numbers = #tpu.dot_dimension_numbers<[1], [0], [0], [1], [0, 0, 1, 1], [], []>} : vector<8x256xf32>, vector<256x512xf32>, vector<8x512xf32> -> vector<8x512xf32>
    %42 = arith.addf %41, %5 : vector<8x512xf32>
    %c0_23 = arith.constant 0 : index
    %c0_24 = arith.constant 0 : index
    %43 = vector.load %arg8[%c0_23, %c0_24] : memref<8x128xf32, #tpu.memory_space<vmem>>, vector<8x128xf32>
    %44 = vector.extract_strided_slice %42 {offsets = [0, 0], sizes = [8, 128], strides = [1, 1]} : vector<8x512xf32> to vector<8x128xf32>
    %45 = arith.negf %44 : vector<8x128xf32>
    %46 = math.exp %45 : vector<8x128xf32>
    %cst_25 = arith.constant 1.000000e+00 : f32
    %47 = vector.broadcast %cst_25 : f32 to vector<8x128xf32>
    %48 = arith.addf %47, %46 : vector<8x128xf32>
    %49 = arith.divf %47, %48 : vector<8x128xf32>
    %50 = vector.extract_strided_slice %42 {offsets = [0, 128], sizes = [8, 128], strides = [1, 1]} : vector<8x512xf32> to vector<8x128xf32>
    %51 = arith.negf %50 : vector<8x128xf32>
    %52 = math.exp %51 : vector<8x128xf32>
    %cst_26 = arith.constant 1.000000e+00 : f32
    %53 = vector.broadcast %cst_26 : f32 to vector<8x128xf32>
    %54 = arith.addf %53, %52 : vector<8x128xf32>
    %55 = arith.divf %53, %54 : vector<8x128xf32>
    %56 = vector.extract_strided_slice %42 {offsets = [0, 256], sizes = [8, 128], strides = [1, 1]} : vector<8x512xf32> to vector<8x128xf32>
    %57 = math.tanh %56 : vector<8x128xf32>
    %58 = vector.extract_strided_slice %42 {offsets = [0, 384], sizes = [8, 128], strides = [1, 1]} : vector<8x512xf32> to vector<8x128xf32>
    %59 = arith.negf %58 : vector<8x128xf32>
    %60 = math.exp %59 : vector<8x128xf32>
    %cst_27 = arith.constant 1.000000e+00 : f32
    %61 = vector.broadcast %cst_27 : f32 to vector<8x128xf32>
    %62 = arith.addf %61, %60 : vector<8x128xf32>
    %63 = arith.divf %61, %62 : vector<8x128xf32>
    %64 = arith.mulf %55, %43 : vector<8x128xf32>
    %65 = arith.mulf %49, %57 : vector<8x128xf32>
    %66 = arith.addf %64, %65 : vector<8x128xf32>
    %67 = math.tanh %66 : vector<8x128xf32>
    %68 = arith.mulf %63, %67 : vector<8x128xf32>
    %c0_28 = arith.constant 0 : index
    %c128 = arith.constant 128 : index
    %69 = vector.load %arg6[%c0_28, %c128] : memref<8x256xf32, #tpu.memory_space<vmem>>, vector<8x128xf32>
    tpu.vector_store %arg6[%c0_28, %c128], %68 {strides = array<i32>} : memref<8x256xf32, #tpu.memory_space<vmem>>, vector<8x128xf32>,
    %c0_29 = arith.constant 0 : index
    %c0_30 = arith.constant 0 : index
    %70 = vector.load %arg8[%c0_29, %c0_30] : memref<8x128xf32, #tpu.memory_space<vmem>>, vector<8x128xf32>
    tpu.vector_store %arg8[%c0_29, %c0_30], %66 {strides = array<i32>} : memref<8x128xf32, #tpu.memory_space<vmem>>, vector<8x128xf32>,
    %c1_i32 = arith.constant 1 : i32
    %71 = arith.index_cast %c1_i32 : i32 to index
    %c0_31 = arith.constant 0 : index
    %c0_32 = arith.constant 0 : index
    %72 = vector.load %arg1[%71, %c0_31, %c0_32] : memref<8x8x512xf32, #tpu.memory_space<vmem>>, vector<1x8x512xf32>
    %73 = vector.shape_cast %72 : vector<1x8x512xf32> to vector<8x512xf32>
    %c0_33 = arith.constant 0 : index
    %c0_34 = arith.constant 0 : index
    %74 = vector.load %arg6[%c0_33, %c0_34] : memref<8x256xf32, #tpu.memory_space<vmem>>, vector<8x128xf32>
    %cst_35 = arith.constant dense<0.000000e+00> : vector<8x512xf32>
    %75 = tpu.matmul %74, %3, %cst_35 {dimension_numbers = #tpu.dot_dimension_numbers<[1], [0], [0], [1], [0, 0, 1, 1], [], []>} : vector<8x128xf32>, vector<128x512xf32>, vector<8x512xf32> -> vector<8x512xf32>
    %76 = arith.addf %73, %75 : vector<8x512xf32>
    %c0_36 = arith.constant 0 : index
    %c0_37 = arith.constant 0 : index
    %77 = vector.load %arg7[%c0_36, %c0_37] : memref<8x128xf32, #tpu.memory_space<vmem>>, vector<8x128xf32>
    %78 = vector.extract_strided_slice %76 {offsets = [0, 0], sizes = [8, 128], strides = [1, 1]} : vector<8x512xf32> to vector<8x128xf32>
    %79 = arith.negf %78 : vector<8x128xf32>
    %80 = math.exp %79 : vector<8x128xf32>
    %cst_38 = arith.constant 1.000000e+00 : f32
    %81 = vector.broadcast %cst_38 : f32 to vector<8x128xf32>
    %82 = arith.addf %81, %80 : vector<8x128xf32>
    %83 = arith.divf %81, %82 : vector<8x128xf32>
    %84 = vector.extract_strided_slice %76 {offsets = [0, 128], sizes = [8, 128], strides = [1, 1]} : vector<8x512xf32> to vector<8x128xf32>
    %85 = arith.negf %84 : vector<8x128xf32>
    %86 = math.exp %85 : vector<8x128xf32>
    %cst_39 = arith.constant 1.000000e+00 : f32
    %87 = vector.broadcast %cst_39 : f32 to vector<8x128xf32>
    %88 = arith.addf %87, %86 : vector<8x128xf32>
    %89 = arith.divf %87, %88 : vector<8x128xf32>
    %90 = vector.extract_strided_slice %76 {offsets = [0, 256], sizes = [8, 128], strides = [1, 1]} : vector<8x512xf32> to vector<8x128xf32>
    %91 = math.tanh %90 : vector<8x128xf32>
    %92 = vector.extract_strided_slice %76 {offsets = [0, 384], sizes = [8, 128], strides = [1, 1]} : vector<8x512xf32> to vector<8x128xf32>
    %93 = arith.negf %92 : vector<8x128xf32>
    %94 = math.exp %93 : vector<8x128xf32>
    %cst_40 = arith.constant 1.000000e+00 : f32
    %95 = vector.broadcast %cst_40 : f32 to vector<8x128xf32>
    %96 = arith.addf %95, %94 : vector<8x128xf32>
    %97 = arith.divf %95, %96 : vector<8x128xf32>
    %98 = arith.mulf %89, %77 : vector<8x128xf32>
    %99 = arith.mulf %83, %91 : vector<8x128xf32>
    %100 = arith.addf %98, %99 : vector<8x128xf32>
    %101 = math.tanh %100 : vector<8x128xf32>
    %102 = arith.mulf %97, %101 : vector<8x128xf32>
    %c0_41 = arith.constant 0 : index
    %c0_42 = arith.constant 0 : index
    %103 = vector.load %arg6[%c0_41, %c0_42] : memref<8x256xf32, #tpu.memory_space<vmem>>, vector<8x128xf32>
    tpu.vector_store %arg6[%c0_41, %c0_42], %102 {strides = array<i32>} : memref<8x256xf32, #tpu.memory_space<vmem>>, vector<8x128xf32>,
    %c0_43 = arith.constant 0 : index
    %c0_44 = arith.constant 0 : index
    %104 = vector.load %arg7[%c0_43, %c0_44] : memref<8x128xf32, #tpu.memory_space<vmem>>, vector<8x128xf32>
    tpu.vector_store %arg7[%c0_43, %c0_44], %100 {strides = array<i32>} : memref<8x128xf32, #tpu.memory_space<vmem>>, vector<8x128xf32>,
    %c0_45 = arith.constant 0 : index
    %c0_46 = arith.constant 0 : index
    %105 = vector.load %arg6[%c0_45, %c0_46] : memref<8x256xf32, #tpu.memory_space<vmem>>, vector<8x256xf32>
    %cst_47 = arith.constant dense<0.000000e+00> : vector<8x512xf32>
    %106 = tpu.matmul %105, %4, %cst_47 {dimension_numbers = #tpu.dot_dimension_numbers<[1], [0], [0], [1], [0, 0, 1, 1], [], []>} : vector<8x256xf32>, vector<256x512xf32>, vector<8x512xf32> -> vector<8x512xf32>
    %107 = arith.addf %106, %5 : vector<8x512xf32>
    %c0_48 = arith.constant 0 : index
    %c0_49 = arith.constant 0 : index
    %108 = vector.load %arg8[%c0_48, %c0_49] : memref<8x128xf32, #tpu.memory_space<vmem>>, vector<8x128xf32>
    %109 = vector.extract_strided_slice %107 {offsets = [0, 0], sizes = [8, 128], strides = [1, 1]} : vector<8x512xf32> to vector<8x128xf32>
    %110 = arith.negf %109 : vector<8x128xf32>
    %111 = math.exp %110 : vector<8x128xf32>
    %cst_50 = arith.constant 1.000000e+00 : f32
    %112 = vector.broadcast %cst_50 : f32 to vector<8x128xf32>
    %113 = arith.addf %112, %111 : vector<8x128xf32>
    %114 = arith.divf %112, %113 : vector<8x128xf32>
    %115 = vector.extract_strided_slice %107 {offsets = [0, 128], sizes = [8, 128], strides = [1, 1]} : vector<8x512xf32> to vector<8x128xf32>
    %116 = arith.negf %115 : vector<8x128xf32>
    %117 = math.exp %116 : vector<8x128xf32>
    %cst_51 = arith.constant 1.000000e+00 : f32
    %118 = vector.broadcast %cst_51 : f32 to vector<8x128xf32>
    %119 = arith.addf %118, %117 : vector<8x128xf32>
    %120 = arith.divf %118, %119 : vector<8x128xf32>
    %121 = vector.extract_strided_slice %107 {offsets = [0, 256], sizes = [8, 128], strides = [1, 1]} : vector<8x512xf32> to vector<8x128xf32>
    %122 = math.tanh %121 : vector<8x128xf32>
    %123 = vector.extract_strided_slice %107 {offsets = [0, 384], sizes = [8, 128], strides = [1, 1]} : vector<8x512xf32> to vector<8x128xf32>
    %124 = arith.negf %123 : vector<8x128xf32>
    %125 = math.exp %124 : vector<8x128xf32>
    %cst_52 = arith.constant 1.000000e+00 : f32
    %126 = vector.broadcast %cst_52 : f32 to vector<8x128xf32>
    %127 = arith.addf %126, %125 : vector<8x128xf32>
    %128 = arith.divf %126, %127 : vector<8x128xf32>
    %129 = arith.mulf %120, %108 : vector<8x128xf32>
    %130 = arith.mulf %114, %122 : vector<8x128xf32>
    %131 = arith.addf %129, %130 : vector<8x128xf32>
    %132 = math.tanh %131 : vector<8x128xf32>
    %133 = arith.mulf %128, %132 : vector<8x128xf32>
    %c0_53 = arith.constant 0 : index
    %c128_54 = arith.constant 128 : index
    %134 = vector.load %arg6[%c0_53, %c128_54] : memref<8x256xf32, #tpu.memory_space<vmem>>, vector<8x128xf32>
    tpu.vector_store %arg6[%c0_53, %c128_54], %133 {strides = array<i32>} : memref<8x256xf32, #tpu.memory_space<vmem>>, vector<8x128xf32>,
    %c0_55 = arith.constant 0 : index
    %c0_56 = arith.constant 0 : index
    %135 = vector.load %arg8[%c0_55, %c0_56] : memref<8x128xf32, #tpu.memory_space<vmem>>, vector<8x128xf32>
    tpu.vector_store %arg8[%c0_55, %c0_56], %131 {strides = array<i32>} : memref<8x128xf32, #tpu.memory_space<vmem>>, vector<8x128xf32>,
    %c2_i32 = arith.constant 2 : i32
    %136 = arith.index_cast %c2_i32 : i32 to index
    %c0_57 = arith.constant 0 : index
    %c0_58 = arith.constant 0 : index
    %137 = vector.load %arg1[%136, %c0_57, %c0_58] : memref<8x8x512xf32, #tpu.memory_space<vmem>>, vector<1x8x512xf32>
    %138 = vector.shape_cast %137 : vector<1x8x512xf32> to vector<8x512xf32>
    %c0_59 = arith.constant 0 : index
    %c0_60 = arith.constant 0 : index
    %139 = vector.load %arg6[%c0_59, %c0_60] : memref<8x256xf32, #tpu.memory_space<vmem>>, vector<8x128xf32>
    %cst_61 = arith.constant dense<0.000000e+00> : vector<8x512xf32>
    %140 = tpu.matmul %139, %3, %cst_61 {dimension_numbers = #tpu.dot_dimension_numbers<[1], [0], [0], [1], [0, 0, 1, 1], [], []>} : vector<8x128xf32>, vector<128x512xf32>, vector<8x512xf32> -> vector<8x512xf32>
    %141 = arith.addf %138, %140 : vector<8x512xf32>
    %c0_62 = arith.constant 0 : index
    %c0_63 = arith.constant 0 : index
    %142 = vector.load %arg7[%c0_62, %c0_63] : memref<8x128xf32, #tpu.memory_space<vmem>>, vector<8x128xf32>
    %143 = vector.extract_strided_slice %141 {offsets = [0, 0], sizes = [8, 128], strides = [1, 1]} : vector<8x512xf32> to vector<8x128xf32>
    %144 = arith.negf %143 : vector<8x128xf32>
    %145 = math.exp %144 : vector<8x128xf32>
    %cst_64 = arith.constant 1.000000e+00 : f32
    %146 = vector.broadcast %cst_64 : f32 to vector<8x128xf32>
    %147 = arith.addf %146, %145 : vector<8x128xf32>
    %148 = arith.divf %146, %147 : vector<8x128xf32>
    %149 = vector.extract_strided_slice %141 {offsets = [0, 128], sizes = [8, 128], strides = [1, 1]} : vector<8x512xf32> to vector<8x128xf32>
    %150 = arith.negf %149 : vector<8x128xf32>
    %151 = math.exp %150 : vector<8x128xf32>
    %cst_65 = arith.constant 1.000000e+00 : f32
    %152 = vector.broadcast %cst_65 : f32 to vector<8x128xf32>
    %153 = arith.addf %152, %151 : vector<8x128xf32>
    %154 = arith.divf %152, %153 : vector<8x128xf32>
    %155 = vector.extract_strided_slice %141 {offsets = [0, 256], sizes = [8, 128], strides = [1, 1]} : vector<8x512xf32> to vector<8x128xf32>
    %156 = math.tanh %155 : vector<8x128xf32>
    %157 = vector.extract_strided_slice %141 {offsets = [0, 384], sizes = [8, 128], strides = [1, 1]} : vector<8x512xf32> to vector<8x128xf32>
    %158 = arith.negf %157 : vector<8x128xf32>
    %159 = math.exp %158 : vector<8x128xf32>
    %cst_66 = arith.constant 1.000000e+00 : f32
    %160 = vector.broadcast %cst_66 : f32 to vector<8x128xf32>
    %161 = arith.addf %160, %159 : vector<8x128xf32>
    %162 = arith.divf %160, %161 : vector<8x128xf32>
    %163 = arith.mulf %154, %142 : vector<8x128xf32>
    %164 = arith.mulf %148, %156 : vector<8x128xf32>
    %165 = arith.addf %163, %164 : vector<8x128xf32>
    %166 = math.tanh %165 : vector<8x128xf32>
    %167 = arith.mulf %162, %166 : vector<8x128xf32>
    %c0_67 = arith.constant 0 : index
    %c0_68 = arith.constant 0 : index
    %168 = vector.load %arg6[%c0_67, %c0_68] : memref<8x256xf32, #tpu.memory_space<vmem>>, vector<8x128xf32>
    tpu.vector_store %arg6[%c0_67, %c0_68], %167 {strides = array<i32>} : memref<8x256xf32, #tpu.memory_space<vmem>>, vector<8x128xf32>,
    %c0_69 = arith.constant 0 : index
    %c0_70 = arith.constant 0 : index
    %169 = vector.load %arg7[%c0_69, %c0_70] : memref<8x128xf32, #tpu.memory_space<vmem>>, vector<8x128xf32>
    tpu.vector_store %arg7[%c0_69, %c0_70], %165 {strides = array<i32>} : memref<8x128xf32, #tpu.memory_space<vmem>>, vector<8x128xf32>,
    %c0_71 = arith.constant 0 : index
    %c0_72 = arith.constant 0 : index
    %170 = vector.load %arg6[%c0_71, %c0_72] : memref<8x256xf32, #tpu.memory_space<vmem>>, vector<8x256xf32>
    %cst_73 = arith.constant dense<0.000000e+00> : vector<8x512xf32>
    %171 = tpu.matmul %170, %4, %cst_73 {dimension_numbers = #tpu.dot_dimension_numbers<[1], [0], [0], [1], [0, 0, 1, 1], [], []>} : vector<8x256xf32>, vector<256x512xf32>, vector<8x512xf32> -> vector<8x512xf32>
    %172 = arith.addf %171, %5 : vector<8x512xf32>
    %c0_74 = arith.constant 0 : index
    %c0_75 = arith.constant 0 : index
    %173 = vector.load %arg8[%c0_74, %c0_75] : memref<8x128xf32, #tpu.memory_space<vmem>>, vector<8x128xf32>
    %174 = vector.extract_strided_slice %172 {offsets = [0, 0], sizes = [8, 128], strides = [1, 1]} : vector<8x512xf32> to vector<8x128xf32>
    %175 = arith.negf %174 : vector<8x128xf32>
    %176 = math.exp %175 : vector<8x128xf32>
    %cst_76 = arith.constant 1.000000e+00 : f32
    %177 = vector.broadcast %cst_76 : f32 to vector<8x128xf32>
    %178 = arith.addf %177, %176 : vector<8x128xf32>
    %179 = arith.divf %177, %178 : vector<8x128xf32>
    %180 = vector.extract_strided_slice %172 {offsets = [0, 128], sizes = [8, 128], strides = [1, 1]} : vector<8x512xf32> to vector<8x128xf32>
    %181 = arith.negf %180 : vector<8x128xf32>
    %182 = math.exp %181 : vector<8x128xf32>
    %cst_77 = arith.constant 1.000000e+00 : f32
    %183 = vector.broadcast %cst_77 : f32 to vector<8x128xf32>
    %184 = arith.addf %183, %182 : vector<8x128xf32>
    %185 = arith.divf %183, %184 : vector<8x128xf32>
    %186 = vector.extract_strided_slice %172 {offsets = [0, 256], sizes = [8, 128], strides = [1, 1]} : vector<8x512xf32> to vector<8x128xf32>
    %187 = math.tanh %186 : vector<8x128xf32>
    %188 = vector.extract_strided_slice %172 {offsets = [0, 384], sizes = [8, 128], strides = [1, 1]} : vector<8x512xf32> to vector<8x128xf32>
    %189 = arith.negf %188 : vector<8x128xf32>
    %190 = math.exp %189 : vector<8x128xf32>
    %cst_78 = arith.constant 1.000000e+00 : f32
    %191 = vector.broadcast %cst_78 : f32 to vector<8x128xf32>
    %192 = arith.addf %191, %190 : vector<8x128xf32>
    %193 = arith.divf %191, %192 : vector<8x128xf32>
    %194 = arith.mulf %185, %173 : vector<8x128xf32>
    %195 = arith.mulf %179, %187 : vector<8x128xf32>
    %196 = arith.addf %194, %195 : vector<8x128xf32>
    %197 = math.tanh %196 : vector<8x128xf32>
    %198 = arith.mulf %193, %197 : vector<8x128xf32>
    %c0_79 = arith.constant 0 : index
    %c128_80 = arith.constant 128 : index
    %199 = vector.load %arg6[%c0_79, %c128_80] : memref<8x256xf32, #tpu.memory_space<vmem>>, vector<8x128xf32>
    tpu.vector_store %arg6[%c0_79, %c128_80], %198 {strides = array<i32>} : memref<8x256xf32, #tpu.memory_space<vmem>>, vector<8x128xf32>,
    %c0_81 = arith.constant 0 : index
    %c0_82 = arith.constant 0 : index
    %200 = vector.load %arg8[%c0_81, %c0_82] : memref<8x128xf32, #tpu.memory_space<vmem>>, vector<8x128xf32>
    tpu.vector_store %arg8[%c0_81, %c0_82], %196 {strides = array<i32>} : memref<8x128xf32, #tpu.memory_space<vmem>>, vector<8x128xf32>,
    %c3_i32 = arith.constant 3 : i32
    %201 = arith.index_cast %c3_i32 : i32 to index
    %c0_83 = arith.constant 0 : index
    %c0_84 = arith.constant 0 : index
    %202 = vector.load %arg1[%201, %c0_83, %c0_84] : memref<8x8x512xf32, #tpu.memory_space<vmem>>, vector<1x8x512xf32>
    %203 = vector.shape_cast %202 : vector<1x8x512xf32> to vector<8x512xf32>
    %c0_85 = arith.constant 0 : index
    %c0_86 = arith.constant 0 : index
    %204 = vector.load %arg6[%c0_85, %c0_86] : memref<8x256xf32, #tpu.memory_space<vmem>>, vector<8x128xf32>
    %cst_87 = arith.constant dense<0.000000e+00> : vector<8x512xf32>
    %205 = tpu.matmul %204, %3, %cst_87 {dimension_numbers = #tpu.dot_dimension_numbers<[1], [0], [0], [1], [0, 0, 1, 1], [], []>} : vector<8x128xf32>, vector<128x512xf32>, vector<8x512xf32> -> vector<8x512xf32>
    %206 = arith.addf %203, %205 : vector<8x512xf32>
    %c0_88 = arith.constant 0 : index
    %c0_89 = arith.constant 0 : index
    %207 = vector.load %arg7[%c0_88, %c0_89] : memref<8x128xf32, #tpu.memory_space<vmem>>, vector<8x128xf32>
    %208 = vector.extract_strided_slice %206 {offsets = [0, 0], sizes = [8, 128], strides = [1, 1]} : vector<8x512xf32> to vector<8x128xf32>
    %209 = arith.negf %208 : vector<8x128xf32>
    %210 = math.exp %209 : vector<8x128xf32>
    %cst_90 = arith.constant 1.000000e+00 : f32
    %211 = vector.broadcast %cst_90 : f32 to vector<8x128xf32>
    %212 = arith.addf %211, %210 : vector<8x128xf32>
    %213 = arith.divf %211, %212 : vector<8x128xf32>
    %214 = vector.extract_strided_slice %206 {offsets = [0, 128], sizes = [8, 128], strides = [1, 1]} : vector<8x512xf32> to vector<8x128xf32>
    %215 = arith.negf %214 : vector<8x128xf32>
    %216 = math.exp %215 : vector<8x128xf32>
    %cst_91 = arith.constant 1.000000e+00 : f32
    %217 = vector.broadcast %cst_91 : f32 to vector<8x128xf32>
    %218 = arith.addf %217, %216 : vector<8x128xf32>
    %219 = arith.divf %217, %218 : vector<8x128xf32>
    %220 = vector.extract_strided_slice %206 {offsets = [0, 256], sizes = [8, 128], strides = [1, 1]} : vector<8x512xf32> to vector<8x128xf32>
    %221 = math.tanh %220 : vector<8x128xf32>
    %222 = vector.extract_strided_slice %206 {offsets = [0, 384], sizes = [8, 128], strides = [1, 1]} : vector<8x512xf32> to vector<8x128xf32>
    %223 = arith.negf %222 : vector<8x128xf32>
    %224 = math.exp %223 : vector<8x128xf32>
    %cst_92 = arith.constant 1.000000e+00 : f32
    %225 = vector.broadcast %cst_92 : f32 to vector<8x128xf32>
    %226 = arith.addf %225, %224 : vector<8x128xf32>
    %227 = arith.divf %225, %226 : vector<8x128xf32>
    %228 = arith.mulf %219, %207 : vector<8x128xf32>
    %229 = arith.mulf %213, %221 : vector<8x128xf32>
    %230 = arith.addf %228, %229 : vector<8x128xf32>
    %231 = math.tanh %230 : vector<8x128xf32>
    %232 = arith.mulf %227, %231 : vector<8x128xf32>
    %c0_93 = arith.constant 0 : index
    %c0_94 = arith.constant 0 : index
    %233 = vector.load %arg6[%c0_93, %c0_94] : memref<8x256xf32, #tpu.memory_space<vmem>>, vector<8x128xf32>
    tpu.vector_store %arg6[%c0_93, %c0_94], %232 {strides = array<i32>} : memref<8x256xf32, #tpu.memory_space<vmem>>, vector<8x128xf32>,
    %c0_95 = arith.constant 0 : index
    %c0_96 = arith.constant 0 : index
    %234 = vector.load %arg7[%c0_95, %c0_96] : memref<8x128xf32, #tpu.memory_space<vmem>>, vector<8x128xf32>
    tpu.vector_store %arg7[%c0_95, %c0_96], %230 {strides = array<i32>} : memref<8x128xf32, #tpu.memory_space<vmem>>, vector<8x128xf32>,
    %c0_97 = arith.constant 0 : index
    %c0_98 = arith.constant 0 : index
    %235 = vector.load %arg6[%c0_97, %c0_98] : memref<8x256xf32, #tpu.memory_space<vmem>>, vector<8x256xf32>
    %cst_99 = arith.constant dense<0.000000e+00> : vector<8x512xf32>
    %236 = tpu.matmul %235, %4, %cst_99 {dimension_numbers = #tpu.dot_dimension_numbers<[1], [0], [0], [1], [0, 0, 1, 1], [], []>} : vector<8x256xf32>, vector<256x512xf32>, vector<8x512xf32> -> vector<8x512xf32>
    %237 = arith.addf %236, %5 : vector<8x512xf32>
    %c0_100 = arith.constant 0 : index
    %c0_101 = arith.constant 0 : index
    %238 = vector.load %arg8[%c0_100, %c0_101] : memref<8x128xf32, #tpu.memory_space<vmem>>, vector<8x128xf32>
    %239 = vector.extract_strided_slice %237 {offsets = [0, 0], sizes = [8, 128], strides = [1, 1]} : vector<8x512xf32> to vector<8x128xf32>
    %240 = arith.negf %239 : vector<8x128xf32>
    %241 = math.exp %240 : vector<8x128xf32>
    %cst_102 = arith.constant 1.000000e+00 : f32
    %242 = vector.broadcast %cst_102 : f32 to vector<8x128xf32>
    %243 = arith.addf %242, %241 : vector<8x128xf32>
    %244 = arith.divf %242, %243 : vector<8x128xf32>
    %245 = vector.extract_strided_slice %237 {offsets = [0, 128], sizes = [8, 128], strides = [1, 1]} : vector<8x512xf32> to vector<8x128xf32>
    %246 = arith.negf %245 : vector<8x128xf32>
    %247 = math.exp %246 : vector<8x128xf32>
    %cst_103 = arith.constant 1.000000e+00 : f32
    %248 = vector.broadcast %cst_103 : f32 to vector<8x128xf32>
    %249 = arith.addf %248, %247 : vector<8x128xf32>
    %250 = arith.divf %248, %249 : vector<8x128xf32>
    %251 = vector.extract_strided_slice %237 {offsets = [0, 256], sizes = [8, 128], strides = [1, 1]} : vector<8x512xf32> to vector<8x128xf32>
    %252 = math.tanh %251 : vector<8x128xf32>
    %253 = vector.extract_strided_slice %237 {offsets = [0, 384], sizes = [8, 128], strides = [1, 1]} : vector<8x512xf32> to vector<8x128xf32>
    %254 = arith.negf %253 : vector<8x128xf32>
    %255 = math.exp %254 : vector<8x128xf32>
    %cst_104 = arith.constant 1.000000e+00 : f32
    %256 = vector.broadcast %cst_104 : f32 to vector<8x128xf32>
    %257 = arith.addf %256, %255 : vector<8x128xf32>
    %258 = arith.divf %256, %257 : vector<8x128xf32>
    %259 = arith.mulf %250, %238 : vector<8x128xf32>
    %260 = arith.mulf %244, %252 : vector<8x128xf32>
    %261 = arith.addf %259, %260 : vector<8x128xf32>
    %262 = math.tanh %261 : vector<8x128xf32>
    %263 = arith.mulf %258, %262 : vector<8x128xf32>
    %c0_105 = arith.constant 0 : index
    %c128_106 = arith.constant 128 : index
    %264 = vector.load %arg6[%c0_105, %c128_106] : memref<8x256xf32, #tpu.memory_space<vmem>>, vector<8x128xf32>
    tpu.vector_store %arg6[%c0_105, %c128_106], %263 {strides = array<i32>} : memref<8x256xf32, #tpu.memory_space<vmem>>, vector<8x128xf32>,
    %c0_107 = arith.constant 0 : index
    %c0_108 = arith.constant 0 : index
    %265 = vector.load %arg8[%c0_107, %c0_108] : memref<8x128xf32, #tpu.memory_space<vmem>>, vector<8x128xf32>
    tpu.vector_store %arg8[%c0_107, %c0_108], %261 {strides = array<i32>} : memref<8x128xf32, #tpu.memory_space<vmem>>, vector<8x128xf32>,
    %c4_i32 = arith.constant 4 : i32
    %266 = arith.index_cast %c4_i32 : i32 to index
    %c0_109 = arith.constant 0 : index
    %c0_110 = arith.constant 0 : index
    %267 = vector.load %arg1[%266, %c0_109, %c0_110] : memref<8x8x512xf32, #tpu.memory_space<vmem>>, vector<1x8x512xf32>
    %268 = vector.shape_cast %267 : vector<1x8x512xf32> to vector<8x512xf32>
    %c0_111 = arith.constant 0 : index
    %c0_112 = arith.constant 0 : index
    %269 = vector.load %arg6[%c0_111, %c0_112] : memref<8x256xf32, #tpu.memory_space<vmem>>, vector<8x128xf32>
    %cst_113 = arith.constant dense<0.000000e+00> : vector<8x512xf32>
    %270 = tpu.matmul %269, %3, %cst_113 {dimension_numbers = #tpu.dot_dimension_numbers<[1], [0], [0], [1], [0, 0, 1, 1], [], []>} : vector<8x128xf32>, vector<128x512xf32>, vector<8x512xf32> -> vector<8x512xf32>
    %271 = arith.addf %268, %270 : vector<8x512xf32>
    %c0_114 = arith.constant 0 : index
    %c0_115 = arith.constant 0 : index
    %272 = vector.load %arg7[%c0_114, %c0_115] : memref<8x128xf32, #tpu.memory_space<vmem>>, vector<8x128xf32>
    %273 = vector.extract_strided_slice %271 {offsets = [0, 0], sizes = [8, 128], strides = [1, 1]} : vector<8x512xf32> to vector<8x128xf32>
    %274 = arith.negf %273 : vector<8x128xf32>
    %275 = math.exp %274 : vector<8x128xf32>
    %cst_116 = arith.constant 1.000000e+00 : f32
    %276 = vector.broadcast %cst_116 : f32 to vector<8x128xf32>
    %277 = arith.addf %276, %275 : vector<8x128xf32>
    %278 = arith.divf %276, %277 : vector<8x128xf32>
    %279 = vector.extract_strided_slice %271 {offsets = [0, 128], sizes = [8, 128], strides = [1, 1]} : vector<8x512xf32> to vector<8x128xf32>
    %280 = arith.negf %279 : vector<8x128xf32>
    %281 = math.exp %280 : vector<8x128xf32>
    %cst_117 = arith.constant 1.000000e+00 : f32
    %282 = vector.broadcast %cst_117 : f32 to vector<8x128xf32>
    %283 = arith.addf %282, %281 : vector<8x128xf32>
    %284 = arith.divf %282, %283 : vector<8x128xf32>
    %285 = vector.extract_strided_slice %271 {offsets = [0, 256], sizes = [8, 128], strides = [1, 1]} : vector<8x512xf32> to vector<8x128xf32>
    %286 = math.tanh %285 : vector<8x128xf32>
    %287 = vector.extract_strided_slice %271 {offsets = [0, 384], sizes = [8, 128], strides = [1, 1]} : vector<8x512xf32> to vector<8x128xf32>
    %288 = arith.negf %287 : vector<8x128xf32>
    %289 = math.exp %288 : vector<8x128xf32>
    %cst_118 = arith.constant 1.000000e+00 : f32
    %290 = vector.broadcast %cst_118 : f32 to vector<8x128xf32>
    %291 = arith.addf %290, %289 : vector<8x128xf32>
    %292 = arith.divf %290, %291 : vector<8x128xf32>
    %293 = arith.mulf %284, %272 : vector<8x128xf32>
    %294 = arith.mulf %278, %286 : vector<8x128xf32>
    %295 = arith.addf %293, %294 : vector<8x128xf32>
    %296 = math.tanh %295 : vector<8x128xf32>
    %297 = arith.mulf %292, %296 : vector<8x128xf32>
    %c0_119 = arith.constant 0 : index
    %c0_120 = arith.constant 0 : index
    %298 = vector.load %arg6[%c0_119, %c0_120] : memref<8x256xf32, #tpu.memory_space<vmem>>, vector<8x128xf32>
    tpu.vector_store %arg6[%c0_119, %c0_120], %297 {strides = array<i32>} : memref<8x256xf32, #tpu.memory_space<vmem>>, vector<8x128xf32>,
    %c0_121 = arith.constant 0 : index
    %c0_122 = arith.constant 0 : index
    %299 = vector.load %arg7[%c0_121, %c0_122] : memref<8x128xf32, #tpu.memory_space<vmem>>, vector<8x128xf32>
    tpu.vector_store %arg7[%c0_121, %c0_122], %295 {strides = array<i32>} : memref<8x128xf32, #tpu.memory_space<vmem>>, vector<8x128xf32>,
    %c0_123 = arith.constant 0 : index
    %c0_124 = arith.constant 0 : index
    %300 = vector.load %arg6[%c0_123, %c0_124] : memref<8x256xf32, #tpu.memory_space<vmem>>, vector<8x256xf32>
    %cst_125 = arith.constant dense<0.000000e+00> : vector<8x512xf32>
    %301 = tpu.matmul %300, %4, %cst_125 {dimension_numbers = #tpu.dot_dimension_numbers<[1], [0], [0], [1], [0, 0, 1, 1], [], []>} : vector<8x256xf32>, vector<256x512xf32>, vector<8x512xf32> -> vector<8x512xf32>
    %302 = arith.addf %301, %5 : vector<8x512xf32>
    %c0_126 = arith.constant 0 : index
    %c0_127 = arith.constant 0 : index
    %303 = vector.load %arg8[%c0_126, %c0_127] : memref<8x128xf32, #tpu.memory_space<vmem>>, vector<8x128xf32>
    %304 = vector.extract_strided_slice %302 {offsets = [0, 0], sizes = [8, 128], strides = [1, 1]} : vector<8x512xf32> to vector<8x128xf32>
    %305 = arith.negf %304 : vector<8x128xf32>
    %306 = math.exp %305 : vector<8x128xf32>
    %cst_128 = arith.constant 1.000000e+00 : f32
    %307 = vector.broadcast %cst_128 : f32 to vector<8x128xf32>
    %308 = arith.addf %307, %306 : vector<8x128xf32>
    %309 = arith.divf %307, %308 : vector<8x128xf32>
    %310 = vector.extract_strided_slice %302 {offsets = [0, 128], sizes = [8, 128], strides = [1, 1]} : vector<8x512xf32> to vector<8x128xf32>
    %311 = arith.negf %310 : vector<8x128xf32>
    %312 = math.exp %311 : vector<8x128xf32>
    %cst_129 = arith.constant 1.000000e+00 : f32
    %313 = vector.broadcast %cst_129 : f32 to vector<8x128xf32>
    %314 = arith.addf %313, %312 : vector<8x128xf32>
    %315 = arith.divf %313, %314 : vector<8x128xf32>
    %316 = vector.extract_strided_slice %302 {offsets = [0, 256], sizes = [8, 128], strides = [1, 1]} : vector<8x512xf32> to vector<8x128xf32>
    %317 = math.tanh %316 : vector<8x128xf32>
    %318 = vector.extract_strided_slice %302 {offsets = [0, 384], sizes = [8, 128], strides = [1, 1]} : vector<8x512xf32> to vector<8x128xf32>
    %319 = arith.negf %318 : vector<8x128xf32>
    %320 = math.exp %319 : vector<8x128xf32>
    %cst_130 = arith.constant 1.000000e+00 : f32
    %321 = vector.broadcast %cst_130 : f32 to vector<8x128xf32>
    %322 = arith.addf %321, %320 : vector<8x128xf32>
    %323 = arith.divf %321, %322 : vector<8x128xf32>
    %324 = arith.mulf %315, %303 : vector<8x128xf32>
    %325 = arith.mulf %309, %317 : vector<8x128xf32>
    %326 = arith.addf %324, %325 : vector<8x128xf32>
    %327 = math.tanh %326 : vector<8x128xf32>
    %328 = arith.mulf %323, %327 : vector<8x128xf32>
    %c0_131 = arith.constant 0 : index
    %c128_132 = arith.constant 128 : index
    %329 = vector.load %arg6[%c0_131, %c128_132] : memref<8x256xf32, #tpu.memory_space<vmem>>, vector<8x128xf32>
    tpu.vector_store %arg6[%c0_131, %c128_132], %328 {strides = array<i32>} : memref<8x256xf32, #tpu.memory_space<vmem>>, vector<8x128xf32>,
    %c0_133 = arith.constant 0 : index
    %c0_134 = arith.constant 0 : index
    %330 = vector.load %arg8[%c0_133, %c0_134] : memref<8x128xf32, #tpu.memory_space<vmem>>, vector<8x128xf32>
    tpu.vector_store %arg8[%c0_133, %c0_134], %326 {strides = array<i32>} : memref<8x128xf32, #tpu.memory_space<vmem>>, vector<8x128xf32>,
    %c5_i32 = arith.constant 5 : i32
    %331 = arith.index_cast %c5_i32 : i32 to index
    %c0_135 = arith.constant 0 : index
    %c0_136 = arith.constant 0 : index
    %332 = vector.load %arg1[%331, %c0_135, %c0_136] : memref<8x8x512xf32, #tpu.memory_space<vmem>>, vector<1x8x512xf32>
    %333 = vector.shape_cast %332 : vector<1x8x512xf32> to vector<8x512xf32>
    %c0_137 = arith.constant 0 : index
    %c0_138 = arith.constant 0 : index
    %334 = vector.load %arg6[%c0_137, %c0_138] : memref<8x256xf32, #tpu.memory_space<vmem>>, vector<8x128xf32>
    %cst_139 = arith.constant dense<0.000000e+00> : vector<8x512xf32>
    %335 = tpu.matmul %334, %3, %cst_139 {dimension_numbers = #tpu.dot_dimension_numbers<[1], [0], [0], [1], [0, 0, 1, 1], [], []>} : vector<8x128xf32>, vector<128x512xf32>, vector<8x512xf32> -> vector<8x512xf32>
    %336 = arith.addf %333, %335 : vector<8x512xf32>
    %c0_140 = arith.constant 0 : index
    %c0_141 = arith.constant 0 : index
    %337 = vector.load %arg7[%c0_140, %c0_141] : memref<8x128xf32, #tpu.memory_space<vmem>>, vector<8x128xf32>
    %338 = vector.extract_strided_slice %336 {offsets = [0, 0], sizes = [8, 128], strides = [1, 1]} : vector<8x512xf32> to vector<8x128xf32>
    %339 = arith.negf %338 : vector<8x128xf32>
    %340 = math.exp %339 : vector<8x128xf32>
    %cst_142 = arith.constant 1.000000e+00 : f32
    %341 = vector.broadcast %cst_142 : f32 to vector<8x128xf32>
    %342 = arith.addf %341, %340 : vector<8x128xf32>
    %343 = arith.divf %341, %342 : vector<8x128xf32>
    %344 = vector.extract_strided_slice %336 {offsets = [0, 128], sizes = [8, 128], strides = [1, 1]} : vector<8x512xf32> to vector<8x128xf32>
    %345 = arith.negf %344 : vector<8x128xf32>
    %346 = math.exp %345 : vector<8x128xf32>
    %cst_143 = arith.constant 1.000000e+00 : f32
    %347 = vector.broadcast %cst_143 : f32 to vector<8x128xf32>
    %348 = arith.addf %347, %346 : vector<8x128xf32>
    %349 = arith.divf %347, %348 : vector<8x128xf32>
    %350 = vector.extract_strided_slice %336 {offsets = [0, 256], sizes = [8, 128], strides = [1, 1]} : vector<8x512xf32> to vector<8x128xf32>
    %351 = math.tanh %350 : vector<8x128xf32>
    %352 = vector.extract_strided_slice %336 {offsets = [0, 384], sizes = [8, 128], strides = [1, 1]} : vector<8x512xf32> to vector<8x128xf32>
    %353 = arith.negf %352 : vector<8x128xf32>
    %354 = math.exp %353 : vector<8x128xf32>
    %cst_144 = arith.constant 1.000000e+00 : f32
    %355 = vector.broadcast %cst_144 : f32 to vector<8x128xf32>
    %356 = arith.addf %355, %354 : vector<8x128xf32>
    %357 = arith.divf %355, %356 : vector<8x128xf32>
    %358 = arith.mulf %349, %337 : vector<8x128xf32>
    %359 = arith.mulf %343, %351 : vector<8x128xf32>
    %360 = arith.addf %358, %359 : vector<8x128xf32>
    %361 = math.tanh %360 : vector<8x128xf32>
    %362 = arith.mulf %357, %361 : vector<8x128xf32>
    %c0_145 = arith.constant 0 : index
    %c0_146 = arith.constant 0 : index
    %363 = vector.load %arg6[%c0_145, %c0_146] : memref<8x256xf32, #tpu.memory_space<vmem>>, vector<8x128xf32>
    tpu.vector_store %arg6[%c0_145, %c0_146], %362 {strides = array<i32>} : memref<8x256xf32, #tpu.memory_space<vmem>>, vector<8x128xf32>,
    %c0_147 = arith.constant 0 : index
    %c0_148 = arith.constant 0 : index
    %364 = vector.load %arg7[%c0_147, %c0_148] : memref<8x128xf32, #tpu.memory_space<vmem>>, vector<8x128xf32>
    tpu.vector_store %arg7[%c0_147, %c0_148], %360 {strides = array<i32>} : memref<8x128xf32, #tpu.memory_space<vmem>>, vector<8x128xf32>,
    %c0_149 = arith.constant 0 : index
    %c0_150 = arith.constant 0 : index
    %365 = vector.load %arg6[%c0_149, %c0_150] : memref<8x256xf32, #tpu.memory_space<vmem>>, vector<8x256xf32>
    %cst_151 = arith.constant dense<0.000000e+00> : vector<8x512xf32>
    %366 = tpu.matmul %365, %4, %cst_151 {dimension_numbers = #tpu.dot_dimension_numbers<[1], [0], [0], [1], [0, 0, 1, 1], [], []>} : vector<8x256xf32>, vector<256x512xf32>, vector<8x512xf32> -> vector<8x512xf32>
    %367 = arith.addf %366, %5 : vector<8x512xf32>
    %c0_152 = arith.constant 0 : index
    %c0_153 = arith.constant 0 : index
    %368 = vector.load %arg8[%c0_152, %c0_153] : memref<8x128xf32, #tpu.memory_space<vmem>>, vector<8x128xf32>
    %369 = vector.extract_strided_slice %367 {offsets = [0, 0], sizes = [8, 128], strides = [1, 1]} : vector<8x512xf32> to vector<8x128xf32>
    %370 = arith.negf %369 : vector<8x128xf32>
    %371 = math.exp %370 : vector<8x128xf32>
    %cst_154 = arith.constant 1.000000e+00 : f32
    %372 = vector.broadcast %cst_154 : f32 to vector<8x128xf32>
    %373 = arith.addf %372, %371 : vector<8x128xf32>
    %374 = arith.divf %372, %373 : vector<8x128xf32>
    %375 = vector.extract_strided_slice %367 {offsets = [0, 128], sizes = [8, 128], strides = [1, 1]} : vector<8x512xf32> to vector<8x128xf32>
    %376 = arith.negf %375 : vector<8x128xf32>
    %377 = math.exp %376 : vector<8x128xf32>
    %cst_155 = arith.constant 1.000000e+00 : f32
    %378 = vector.broadcast %cst_155 : f32 to vector<8x128xf32>
    %379 = arith.addf %378, %377 : vector<8x128xf32>
    %380 = arith.divf %378, %379 : vector<8x128xf32>
    %381 = vector.extract_strided_slice %367 {offsets = [0, 256], sizes = [8, 128], strides = [1, 1]} : vector<8x512xf32> to vector<8x128xf32>
    %382 = math.tanh %381 : vector<8x128xf32>
    %383 = vector.extract_strided_slice %367 {offsets = [0, 384], sizes = [8, 128], strides = [1, 1]} : vector<8x512xf32> to vector<8x128xf32>
    %384 = arith.negf %383 : vector<8x128xf32>
    %385 = math.exp %384 : vector<8x128xf32>
    %cst_156 = arith.constant 1.000000e+00 : f32
    %386 = vector.broadcast %cst_156 : f32 to vector<8x128xf32>
    %387 = arith.addf %386, %385 : vector<8x128xf32>
    %388 = arith.divf %386, %387 : vector<8x128xf32>
    %389 = arith.mulf %380, %368 : vector<8x128xf32>
    %390 = arith.mulf %374, %382 : vector<8x128xf32>
    %391 = arith.addf %389, %390 : vector<8x128xf32>
    %392 = math.tanh %391 : vector<8x128xf32>
    %393 = arith.mulf %388, %392 : vector<8x128xf32>
    %c0_157 = arith.constant 0 : index
    %c128_158 = arith.constant 128 : index
    %394 = vector.load %arg6[%c0_157, %c128_158] : memref<8x256xf32, #tpu.memory_space<vmem>>, vector<8x128xf32>
    tpu.vector_store %arg6[%c0_157, %c128_158], %393 {strides = array<i32>} : memref<8x256xf32, #tpu.memory_space<vmem>>, vector<8x128xf32>,
    %c0_159 = arith.constant 0 : index
    %c0_160 = arith.constant 0 : index
    %395 = vector.load %arg8[%c0_159, %c0_160] : memref<8x128xf32, #tpu.memory_space<vmem>>, vector<8x128xf32>
    tpu.vector_store %arg8[%c0_159, %c0_160], %391 {strides = array<i32>} : memref<8x128xf32, #tpu.memory_space<vmem>>, vector<8x128xf32>,
    %c6_i32 = arith.constant 6 : i32
    %396 = arith.index_cast %c6_i32 : i32 to index
    %c0_161 = arith.constant 0 : index
    %c0_162 = arith.constant 0 : index
    %397 = vector.load %arg1[%396, %c0_161, %c0_162] : memref<8x8x512xf32, #tpu.memory_space<vmem>>, vector<1x8x512xf32>
    %398 = vector.shape_cast %397 : vector<1x8x512xf32> to vector<8x512xf32>
    %c0_163 = arith.constant 0 : index
    %c0_164 = arith.constant 0 : index
    %399 = vector.load %arg6[%c0_163, %c0_164] : memref<8x256xf32, #tpu.memory_space<vmem>>, vector<8x128xf32>
    %cst_165 = arith.constant dense<0.000000e+00> : vector<8x512xf32>
    %400 = tpu.matmul %399, %3, %cst_165 {dimension_numbers = #tpu.dot_dimension_numbers<[1], [0], [0], [1], [0, 0, 1, 1], [], []>} : vector<8x128xf32>, vector<128x512xf32>, vector<8x512xf32> -> vector<8x512xf32>
    %401 = arith.addf %398, %400 : vector<8x512xf32>
    %c0_166 = arith.constant 0 : index
    %c0_167 = arith.constant 0 : index
    %402 = vector.load %arg7[%c0_166, %c0_167] : memref<8x128xf32, #tpu.memory_space<vmem>>, vector<8x128xf32>
    %403 = vector.extract_strided_slice %401 {offsets = [0, 0], sizes = [8, 128], strides = [1, 1]} : vector<8x512xf32> to vector<8x128xf32>
    %404 = arith.negf %403 : vector<8x128xf32>
    %405 = math.exp %404 : vector<8x128xf32>
    %cst_168 = arith.constant 1.000000e+00 : f32
    %406 = vector.broadcast %cst_168 : f32 to vector<8x128xf32>
    %407 = arith.addf %406, %405 : vector<8x128xf32>
    %408 = arith.divf %406, %407 : vector<8x128xf32>
    %409 = vector.extract_strided_slice %401 {offsets = [0, 128], sizes = [8, 128], strides = [1, 1]} : vector<8x512xf32> to vector<8x128xf32>
    %410 = arith.negf %409 : vector<8x128xf32>
    %411 = math.exp %410 : vector<8x128xf32>
    %cst_169 = arith.constant 1.000000e+00 : f32
    %412 = vector.broadcast %cst_169 : f32 to vector<8x128xf32>
    %413 = arith.addf %412, %411 : vector<8x128xf32>
    %414 = arith.divf %412, %413 : vector<8x128xf32>
    %415 = vector.extract_strided_slice %401 {offsets = [0, 256], sizes = [8, 128], strides = [1, 1]} : vector<8x512xf32> to vector<8x128xf32>
    %416 = math.tanh %415 : vector<8x128xf32>
    %417 = vector.extract_strided_slice %401 {offsets = [0, 384], sizes = [8, 128], strides = [1, 1]} : vector<8x512xf32> to vector<8x128xf32>
    %418 = arith.negf %417 : vector<8x128xf32>
    %419 = math.exp %418 : vector<8x128xf32>
    %cst_170 = arith.constant 1.000000e+00 : f32
    %420 = vector.broadcast %cst_170 : f32 to vector<8x128xf32>
    %421 = arith.addf %420, %419 : vector<8x128xf32>
    %422 = arith.divf %420, %421 : vector<8x128xf32>
    %423 = arith.mulf %414, %402 : vector<8x128xf32>
    %424 = arith.mulf %408, %416 : vector<8x128xf32>
    %425 = arith.addf %423, %424 : vector<8x128xf32>
    %426 = math.tanh %425 : vector<8x128xf32>
    %427 = arith.mulf %422, %426 : vector<8x128xf32>
    %c0_171 = arith.constant 0 : index
    %c0_172 = arith.constant 0 : index
    %428 = vector.load %arg6[%c0_171, %c0_172] : memref<8x256xf32, #tpu.memory_space<vmem>>, vector<8x128xf32>
    tpu.vector_store %arg6[%c0_171, %c0_172], %427 {strides = array<i32>} : memref<8x256xf32, #tpu.memory_space<vmem>>, vector<8x128xf32>,
    %c0_173 = arith.constant 0 : index
    %c0_174 = arith.constant 0 : index
    %429 = vector.load %arg7[%c0_173, %c0_174] : memref<8x128xf32, #tpu.memory_space<vmem>>, vector<8x128xf32>
    tpu.vector_store %arg7[%c0_173, %c0_174], %425 {strides = array<i32>} : memref<8x128xf32, #tpu.memory_space<vmem>>, vector<8x128xf32>,
    %c0_175 = arith.constant 0 : index
    %c0_176 = arith.constant 0 : index
    %430 = vector.load %arg6[%c0_175, %c0_176] : memref<8x256xf32, #tpu.memory_space<vmem>>, vector<8x256xf32>
    %cst_177 = arith.constant dense<0.000000e+00> : vector<8x512xf32>
    %431 = tpu.matmul %430, %4, %cst_177 {dimension_numbers = #tpu.dot_dimension_numbers<[1], [0], [0], [1], [0, 0, 1, 1], [], []>} : vector<8x256xf32>, vector<256x512xf32>, vector<8x512xf32> -> vector<8x512xf32>
    %432 = arith.addf %431, %5 : vector<8x512xf32>
    %c0_178 = arith.constant 0 : index
    %c0_179 = arith.constant 0 : index
    %433 = vector.load %arg8[%c0_178, %c0_179] : memref<8x128xf32, #tpu.memory_space<vmem>>, vector<8x128xf32>
    %434 = vector.extract_strided_slice %432 {offsets = [0, 0], sizes = [8, 128], strides = [1, 1]} : vector<8x512xf32> to vector<8x128xf32>
    %435 = arith.negf %434 : vector<8x128xf32>
    %436 = math.exp %435 : vector<8x128xf32>
    %cst_180 = arith.constant 1.000000e+00 : f32
    %437 = vector.broadcast %cst_180 : f32 to vector<8x128xf32>
    %438 = arith.addf %437, %436 : vector<8x128xf32>
    %439 = arith.divf %437, %438 : vector<8x128xf32>
    %440 = vector.extract_strided_slice %432 {offsets = [0, 128], sizes = [8, 128], strides = [1, 1]} : vector<8x512xf32> to vector<8x128xf32>
    %441 = arith.negf %440 : vector<8x128xf32>
    %442 = math.exp %441 : vector<8x128xf32>
    %cst_181 = arith.constant 1.000000e+00 : f32
    %443 = vector.broadcast %cst_181 : f32 to vector<8x128xf32>
    %444 = arith.addf %443, %442 : vector<8x128xf32>
    %445 = arith.divf %443, %444 : vector<8x128xf32>
    %446 = vector.extract_strided_slice %432 {offsets = [0, 256], sizes = [8, 128], strides = [1, 1]} : vector<8x512xf32> to vector<8x128xf32>
    %447 = math.tanh %446 : vector<8x128xf32>
    %448 = vector.extract_strided_slice %432 {offsets = [0, 384], sizes = [8, 128], strides = [1, 1]} : vector<8x512xf32> to vector<8x128xf32>
    %449 = arith.negf %448 : vector<8x128xf32>
    %450 = math.exp %449 : vector<8x128xf32>
    %cst_182 = arith.constant 1.000000e+00 : f32
    %451 = vector.broadcast %cst_182 : f32 to vector<8x128xf32>
    %452 = arith.addf %451, %450 : vector<8x128xf32>
    %453 = arith.divf %451, %452 : vector<8x128xf32>
    %454 = arith.mulf %445, %433 : vector<8x128xf32>
    %455 = arith.mulf %439, %447 : vector<8x128xf32>
    %456 = arith.addf %454, %455 : vector<8x128xf32>
    %457 = math.tanh %456 : vector<8x128xf32>
    %458 = arith.mulf %453, %457 : vector<8x128xf32>
    %c0_183 = arith.constant 0 : index
    %c128_184 = arith.constant 128 : index
    %459 = vector.load %arg6[%c0_183, %c128_184] : memref<8x256xf32, #tpu.memory_space<vmem>>, vector<8x128xf32>
    tpu.vector_store %arg6[%c0_183, %c128_184], %458 {strides = array<i32>} : memref<8x256xf32, #tpu.memory_space<vmem>>, vector<8x128xf32>,
    %c0_185 = arith.constant 0 : index
    %c0_186 = arith.constant 0 : index
    %460 = vector.load %arg8[%c0_185, %c0_186] : memref<8x128xf32, #tpu.memory_space<vmem>>, vector<8x128xf32>
    tpu.vector_store %arg8[%c0_185, %c0_186], %456 {strides = array<i32>} : memref<8x128xf32, #tpu.memory_space<vmem>>, vector<8x128xf32>,
    %c7_i32 = arith.constant 7 : i32
    %461 = arith.index_cast %c7_i32 : i32 to index
    %c0_187 = arith.constant 0 : index
    %c0_188 = arith.constant 0 : index
    %462 = vector.load %arg1[%461, %c0_187, %c0_188] : memref<8x8x512xf32, #tpu.memory_space<vmem>>, vector<1x8x512xf32>
    %463 = vector.shape_cast %462 : vector<1x8x512xf32> to vector<8x512xf32>
    %c0_189 = arith.constant 0 : index
    %c0_190 = arith.constant 0 : index
    %464 = vector.load %arg6[%c0_189, %c0_190] : memref<8x256xf32, #tpu.memory_space<vmem>>, vector<8x128xf32>
    %cst_191 = arith.constant dense<0.000000e+00> : vector<8x512xf32>
    %465 = tpu.matmul %464, %3, %cst_191 {dimension_numbers = #tpu.dot_dimension_numbers<[1], [0], [0], [1], [0, 0, 1, 1], [], []>} : vector<8x128xf32>, vector<128x512xf32>, vector<8x512xf32> -> vector<8x512xf32>
    %466 = arith.addf %463, %465 : vector<8x512xf32>
    %c0_192 = arith.constant 0 : index
    %c0_193 = arith.constant 0 : index
    %467 = vector.load %arg7[%c0_192, %c0_193] : memref<8x128xf32, #tpu.memory_space<vmem>>, vector<8x128xf32>
    %468 = vector.extract_strided_slice %466 {offsets = [0, 0], sizes = [8, 128], strides = [1, 1]} : vector<8x512xf32> to vector<8x128xf32>
    %469 = arith.negf %468 : vector<8x128xf32>
    %470 = math.exp %469 : vector<8x128xf32>
    %cst_194 = arith.constant 1.000000e+00 : f32
    %471 = vector.broadcast %cst_194 : f32 to vector<8x128xf32>
    %472 = arith.addf %471, %470 : vector<8x128xf32>
    %473 = arith.divf %471, %472 : vector<8x128xf32>
    %474 = vector.extract_strided_slice %466 {offsets = [0, 128], sizes = [8, 128], strides = [1, 1]} : vector<8x512xf32> to vector<8x128xf32>
    %475 = arith.negf %474 : vector<8x128xf32>
    %476 = math.exp %475 : vector<8x128xf32>
    %cst_195 = arith.constant 1.000000e+00 : f32
    %477 = vector.broadcast %cst_195 : f32 to vector<8x128xf32>
    %478 = arith.addf %477, %476 : vector<8x128xf32>
    %479 = arith.divf %477, %478 : vector<8x128xf32>
    %480 = vector.extract_strided_slice %466 {offsets = [0, 256], sizes = [8, 128], strides = [1, 1]} : vector<8x512xf32> to vector<8x128xf32>
    %481 = math.tanh %480 : vector<8x128xf32>
    %482 = vector.extract_strided_slice %466 {offsets = [0, 384], sizes = [8, 128], strides = [1, 1]} : vector<8x512xf32> to vector<8x128xf32>
    %483 = arith.negf %482 : vector<8x128xf32>
    %484 = math.exp %483 : vector<8x128xf32>
    %cst_196 = arith.constant 1.000000e+00 : f32
    %485 = vector.broadcast %cst_196 : f32 to vector<8x128xf32>
    %486 = arith.addf %485, %484 : vector<8x128xf32>
    %487 = arith.divf %485, %486 : vector<8x128xf32>
    %488 = arith.mulf %479, %467 : vector<8x128xf32>
    %489 = arith.mulf %473, %481 : vector<8x128xf32>
    %490 = arith.addf %488, %489 : vector<8x128xf32>
    %491 = math.tanh %490 : vector<8x128xf32>
    %492 = arith.mulf %487, %491 : vector<8x128xf32>
    %c0_197 = arith.constant 0 : index
    %c0_198 = arith.constant 0 : index
    %493 = vector.load %arg6[%c0_197, %c0_198] : memref<8x256xf32, #tpu.memory_space<vmem>>, vector<8x128xf32>
    tpu.vector_store %arg6[%c0_197, %c0_198], %492 {strides = array<i32>} : memref<8x256xf32, #tpu.memory_space<vmem>>, vector<8x128xf32>,
    %c0_199 = arith.constant 0 : index
    %c0_200 = arith.constant 0 : index
    %494 = vector.load %arg7[%c0_199, %c0_200] : memref<8x128xf32, #tpu.memory_space<vmem>>, vector<8x128xf32>
    tpu.vector_store %arg7[%c0_199, %c0_200], %490 {strides = array<i32>} : memref<8x128xf32, #tpu.memory_space<vmem>>, vector<8x128xf32>,
    %c0_201 = arith.constant 0 : index
    %c0_202 = arith.constant 0 : index
    %495 = vector.load %arg6[%c0_201, %c0_202] : memref<8x256xf32, #tpu.memory_space<vmem>>, vector<8x256xf32>
    %cst_203 = arith.constant dense<0.000000e+00> : vector<8x512xf32>
    %496 = tpu.matmul %495, %4, %cst_203 {dimension_numbers = #tpu.dot_dimension_numbers<[1], [0], [0], [1], [0, 0, 1, 1], [], []>} : vector<8x256xf32>, vector<256x512xf32>, vector<8x512xf32> -> vector<8x512xf32>
    %497 = arith.addf %496, %5 : vector<8x512xf32>
    %c0_204 = arith.constant 0 : index
    %c0_205 = arith.constant 0 : index
    %498 = vector.load %arg8[%c0_204, %c0_205] : memref<8x128xf32, #tpu.memory_space<vmem>>, vector<8x128xf32>
    %499 = vector.extract_strided_slice %497 {offsets = [0, 0], sizes = [8, 128], strides = [1, 1]} : vector<8x512xf32> to vector<8x128xf32>
    %500 = arith.negf %499 : vector<8x128xf32>
    %501 = math.exp %500 : vector<8x128xf32>
    %cst_206 = arith.constant 1.000000e+00 : f32
    %502 = vector.broadcast %cst_206 : f32 to vector<8x128xf32>
    %503 = arith.addf %502, %501 : vector<8x128xf32>
    %504 = arith.divf %502, %503 : vector<8x128xf32>
    %505 = vector.extract_strided_slice %497 {offsets = [0, 128], sizes = [8, 128], strides = [1, 1]} : vector<8x512xf32> to vector<8x128xf32>
    %506 = arith.negf %505 : vector<8x128xf32>
    %507 = math.exp %506 : vector<8x128xf32>
    %cst_207 = arith.constant 1.000000e+00 : f32
    %508 = vector.broadcast %cst_207 : f32 to vector<8x128xf32>
    %509 = arith.addf %508, %507 : vector<8x128xf32>
    %510 = arith.divf %508, %509 : vector<8x128xf32>
    %511 = vector.extract_strided_slice %497 {offsets = [0, 256], sizes = [8, 128], strides = [1, 1]} : vector<8x512xf32> to vector<8x128xf32>
    %512 = math.tanh %511 : vector<8x128xf32>
    %513 = vector.extract_strided_slice %497 {offsets = [0, 384], sizes = [8, 128], strides = [1, 1]} : vector<8x512xf32> to vector<8x128xf32>
    %514 = arith.negf %513 : vector<8x128xf32>
    %515 = math.exp %514 : vector<8x128xf32>
    %cst_208 = arith.constant 1.000000e+00 : f32
    %516 = vector.broadcast %cst_208 : f32 to vector<8x128xf32>
    %517 = arith.addf %516, %515 : vector<8x128xf32>
    %518 = arith.divf %516, %517 : vector<8x128xf32>
    %519 = arith.mulf %510, %498 : vector<8x128xf32>
    %520 = arith.mulf %504, %512 : vector<8x128xf32>
    %521 = arith.addf %519, %520 : vector<8x128xf32>
    %522 = math.tanh %521 : vector<8x128xf32>
    %523 = arith.mulf %518, %522 : vector<8x128xf32>
    %c0_209 = arith.constant 0 : index
    %c128_210 = arith.constant 128 : index
    %524 = vector.load %arg6[%c0_209, %c128_210] : memref<8x256xf32, #tpu.memory_space<vmem>>, vector<8x128xf32>
    tpu.vector_store %arg6[%c0_209, %c128_210], %523 {strides = array<i32>} : memref<8x256xf32, #tpu.memory_space<vmem>>, vector<8x128xf32>,
    %c0_211 = arith.constant 0 : index
    %c0_212 = arith.constant 0 : index
    %525 = vector.load %arg8[%c0_211, %c0_212] : memref<8x128xf32, #tpu.memory_space<vmem>>, vector<8x128xf32>
    tpu.vector_store %arg8[%c0_211, %c0_212], %521 {strides = array<i32>} : memref<8x128xf32, #tpu.memory_space<vmem>>, vector<8x128xf32>,
    %c8_i32 = arith.constant 8 : i32
    %c0_i32_213 = arith.constant 0 : i32
    %526 = arith.cmpi eq, %arg0, %c0_i32_213 : i32
    %527 = arith.extui %526 : i1 to i32
    %c0_i32_214 = arith.constant 0 : i32
    %528 = arith.cmpi ne, %527, %c0_i32_214 : i32
    scf.if %528 {
      %c0_215 = arith.constant 0 : index
      %c128_216 = arith.constant 128 : index
      %529 = vector.load %arg6[%c0_215, %c128_216] : memref<8x256xf32, #tpu.memory_space<vmem>>, vector<8x128xf32>
      %c0_217 = arith.constant 0 : index
      %c0_218 = arith.constant 0 : index
      %530 = vector.load %arg5[%c0_217, %c0_218] : memref<8x128xf32, #tpu.memory_space<vmem>>, vector<8x128xf32>
      tpu.vector_store %arg5[%c0_217, %c0_218], %529 {strides = array<i32>} : memref<8x128xf32, #tpu.memory_space<vmem>>, vector<8x128xf32>,
    } else {
    }
    return
  }
  func.func @transform_0(%arg0: i32) -> (i32, i32, i32) {
    %c0_i32 = arith.constant 0 : i32
    %c0_i32_0 = arith.constant 0 : i32
    %c0_i32_1 = arith.constant 0 : i32
    return %arg0, %c0_i32, %c0_i32_0 : i32, i32, i32
  }
  func.func @transform_1(%arg0: i32) -> (i32, i32) {
    %c0_i32 = arith.constant 0 : i32
    %c0_i32_0 = arith.constant 0 : i32
    %c0_i32_1 = arith.constant 0 : i32
    return %c0_i32, %c0_i32_0 : i32, i32
  }
  func.func @transform_2(%arg0: i32) -> (i32, i32) {
    %c0_i32 = arith.constant 0 : i32
    %c0_i32_0 = arith.constant 0 : i32
    %c0_i32_1 = arith.constant 0 : i32
    return %c0_i32, %c0_i32_0 : i32, i32
  }
  func.func @transform_3(%arg0: i32) -> (i32, i32) {
    %c0_i32 = arith.constant 0 : i32
    %c0_i32_0 = arith.constant 0 : i32
    %c0_i32_1 = arith.constant 0 : i32
    return %c0_i32, %c0_i32_0 : i32, i32
  }
  func.func @transform_4(%arg0: i32) -> (i32, i32) {
    %c0_i32 = arith.constant 0 : i32
    %c0_i32_0 = arith.constant 0 : i32
    %c0_i32_1 = arith.constant 0 : i32
    return %c0_i32, %c0_i32_0 : i32, i32
  }
}

</mosaic_0001>

<bundles_post_ra>
// kernel: tpu_custom_call.1
= control target key start
LH: loop header
LB: loop body
LE: loop exit
PB: predicated region body
PF: predicated region fallthrough
CT: control target
= control target key end

     0   :  { %9 = vsyncpa [#allocation6], 0  ;;  %s6271_s0 = inlined_call_operand.hbm [shape: f32[8,8,512], index: 0, kind: input, shape index: {}]   ;;  %s6272_s1 = inlined_call_operand.hbm [shape: f32[128,512], index: 1, kind: input, shape index: {}]   ;;  %s6273_s2 = inlined_call_operand.hbm [shape: f32[256,512], index: 2, kind: input, shape index: {}]   ;;  %s6274_s3 = inlined_call_operand.hbm [shape: f32[8,512], index: 3, kind: input, shape index: {}]   ;;  %s6275_s4 = inlined_call_operand.hbm [shape: f32[8,128], index: 4, kind: output, shape index: {}]  }
   0x1   :  { %10 = vsyncpa [#allocation9], 0 }
   0x2   :  { %11 = vsyncpa [#allocation12], 0 }
   0x3   :  { %12 = vsyncpa [#allocation7], 0  ;;  %s5070_s15 = smov [#allocation8]   ;;  %s5071_s17 = smov [#allocation5]  }
   0x4   :  { %s30_s16 = sshll.u32 %s5070_s15, 4  ;;  %s18_s18 = sshll.u32 %s5071_s17, 4  ;;  %s31_s16 = int_to_ptr.vmem [resolvable:$true] %s30_s16  ;;  %s5103_s18 = int_to_ptr.vmem [resolvable:$true] %s18_s18 }
   0x5   :  { %s4952_s21 = scalar_lea.hbm %s6272_s1, 8192 }
   0x6   :  { %p4953_p0 = scmp.ne.s32.totalorder %s6272_s1, %s4952_s21  ;;  %p4956_p1 = scmp.lt.u32.totalorder %s4952_s21, %s6272_s1 }
   0x8   :  { %p4958_p2 = pnand %p4956_p1, %p4953_p0 }
   0xa   :  { %4961 = shalt.err (!%p4958_p2)
}
   0xb   :  { %s4962_s26 = scalar_lea.vmem %s31_s16, 8192  ;;  %p4967_p4 = scmp.lt.s32.totalorder %s31_s16, %s31_s16 }
   0xc   :  { %p4963_p3 = scmp.ne.s32.totalorder %s31_s16, %s4962_s26  ;;  %p4968_p5 = scmp.lt.s32.totalorder %s4962_s26, %s4962_s26 }
   0xe   :  { %p4969_p6 = por %p4968_p5, %p4967_p4 }
  0x10   :  { %p4970_p7 = pnand %p4969_p6, %p4963_p3 }
  0x12   :  { %4973 = shalt.err (!%p4970_p7)
}
  0x13   :  { %s5072_s27 = smov 512   ;;  %s5073_s28 = smov 32  }
  0x14   :  { %36 = dma.hbm_to_vmem [thread:$0]  %s6272_s1, 8192, %s31_s16, [#allocation9], %s5072_s27, %s5072_s27, %s5073_s28  }
  0x15   :  { %s4974_s7 = scalar_lea.hbm %s6271_s0, 4096 }
  0x16   :  { %p4975_p8 = scmp.ne.s32.totalorder %s6271_s0, %s4974_s7  ;;  %p4978_p9 = scmp.lt.u32.totalorder %s4974_s7, %s6271_s0 }
  0x18   :  { %p4980_p10 = pnand %p4978_p9, %p4975_p8 }
  0x1a   :  { %4983 = shalt.err (!%p4980_p10)
}
  0x1b   :  { %s4984_s12 = scalar_lea.vmem %s5103_s18, 4096  ;;  %p4989_p12 = scmp.lt.s32.totalorder %s5103_s18, %s5103_s18 }
  0x1c   :  { %p4985_p11 = scmp.ne.s32.totalorder %s5103_s18, %s4984_s12  ;;  %p4990_p13 = scmp.lt.s32.totalorder %s4984_s12, %s4984_s12 }
  0x1e   :  { %p4991_p0 = por %p4990_p13, %p4989_p12 }
  0x20   :  { %p4992_p1 = pnand %p4991_p0, %p4985_p11 }
  0x22   :  { %4995 = shalt.err (!%p4992_p1)
}
  0x23   :  { %24 = dma.hbm_to_vmem [thread:$0]  %s6271_s0, 4096, %s5103_s18, [#allocation6], %s5072_s27, %s5072_s27, %s5073_s28  }
  0x24   :  { %s5074_s14 = smov [#allocation10]   ;;  %s5075_s16 = smov [#allocation11]  }
  0x25   :  { %s42_s15 = sshll.u32 %s5074_s14, 4  ;;  %s55_s17 = sshll.u32 %s5075_s16, 4  ;;  %s43_s15 = int_to_ptr.vmem [resolvable:$true] %s42_s15  ;;  %s56_s17 = int_to_ptr.vmem [resolvable:$true] %s55_s17 }
  0x26   :  { %s4996_s21 = scalar_lea.hbm %s6273_s2, 16384 }
  0x27   :  { %p4997_p2 = scmp.ne.s32.totalorder %s6273_s2, %s4996_s21  ;;  %p5000_p3 = scmp.lt.u32.totalorder %s4996_s21, %s6273_s2 }
  0x29   :  { %p5002_p4 = pnand %p5000_p3, %p4997_p2 }
  0x2b   :  { %5005 = shalt.err (!%p5002_p4)
}
  0x2c   :  { %s5006_s0 = scalar_lea.vmem %s43_s15, 16384  ;;  %p5011_p6 = scmp.lt.s32.totalorder %s43_s15, %s43_s15 }
  0x2d   :  { %p5007_p5 = scmp.ne.s32.totalorder %s43_s15, %s5006_s0  ;;  %p5012_p7 = scmp.lt.s32.totalorder %s5006_s0, %s5006_s0 }
  0x2f   :  { %p5013_p8 = por %p5012_p7, %p5011_p6 }
  0x31   :  { %p5014_p9 = pnand %p5013_p8, %p5007_p5 }
  0x33   :  { %5017 = shalt.err (!%p5014_p9)
}
  0x34   :  { %48 = dma.hbm_to_vmem [thread:$0]  %s6273_s2, 16384, %s43_s15, [#allocation9], %s5072_s27, %s5072_s27, %s5073_s28  }
  0x35   :  { %s5018_s5 = scalar_lea.hbm %s6274_s3, 512 }
  0x36   :  { %p5019_p10 = scmp.ne.s32.totalorder %s6274_s3, %s5018_s5  ;;  %p5022_p11 = scmp.lt.u32.totalorder %s5018_s5, %s6274_s3 }
  0x38   :  { %p5024_p12 = pnand %p5022_p11, %p5019_p10 }
  0x3a   :  { %5027 = shalt.err (!%p5024_p12)
}
  0x3b   :  { %s5028_s10 = scalar_lea.vmem %s56_s17, 512  ;;  %p5033_p0 = scmp.lt.s32.totalorder %s56_s17, %s56_s17 }
  0x3c   :  { %p5029_p13 = scmp.ne.s32.totalorder %s56_s17, %s5028_s10  ;;  %p5034_p1 = scmp.lt.s32.totalorder %s5028_s10, %s5028_s10 }
  0x3e   :  { %p5035_p2 = por %p5034_p1, %p5033_p0 }
  0x40   :  { %p5036_p3 = pnand %p5035_p2, %p5029_p13 }
  0x42   :  { %5039 = shalt.err (!%p5036_p3)
}
  0x43   :  { %58 = dma.hbm_to_vmem [thread:$0]  %s6274_s3, 512, %s56_s17, [#allocation12]  }
  0x44   :  { %5062 = dma.done.wait [#allocation6], 4096  }
  0x45   :  { %5063 = vsyncadd [#allocation6], 4294963200 }
  0x46   :  { %5064 = dma.done.wait [#allocation9], 24576  }
  0x47   :  { %5065 = vsyncadd [#allocation9], 4294942720 }
  0x48   :  { %5066 = dma.done.wait [#allocation12], 512  }
  0x49   :  { %5067 = vsyncadd [#allocation12], 4294966784  ;;  %v6276_v0 = vmov 0.0   ;;  %v80_v1 = vld [vmem:[#allocation8 + $0x8] sm:$0xff]  ;;  %v79_v3 = vld [vmem:[#allocation8] sm:$0xff]  ;;  %s5077_s3 = smov [#allocation13]  }
  0x4a   :  { %344 = vmatprep.mubr.f32.mxu0 %v6276_v0  ;;  %415 = vmatprep.mubr.f32.mxu1 %v6276_v0  ;;  %v84_v2 = vld [vmem:[#allocation8 + $0x28] sm:$0xff]  ;;  %v83_v5 = vld [vmem:[#allocation8 + $0x20] sm:$0xff]  ;;  %v82_v19 = vld [vmem:[#allocation8 + $0x18] sm:$0xff]  ;;  %s3085_s28 = sshll.u32 %s5077_s3, 4  ;;  %s3086_s28 = int_to_ptr.vmem [resolvable:$true] %s3085_s28 }
  0x4b   :  { %v5169_v4 = vpack.c.bf16 %v84_v2, %v80_v1  ;;  %v88_v6 = vld [vmem:[#allocation8 + $0x48] sm:$0xff]  ;;  %v5171_v8 = vpack.c.bf16 %v83_v5, %v79_v3  ;;  %v87_v10 = vld [vmem:[#allocation8 + $0x40] sm:$0xff]  ;;  %v86_v20 = vld [vmem:[#allocation8 + $0x38] sm:$0xff]  ;;  %s5040_s11 = scalar_lea.vmem %s3086_s28, 128  ;;  %p5045_p5 = scmp.lt.s32.totalorder %s3086_s28, %s3086_s28 }
  0x4c   :  { %v92_v7 = vld [vmem:[#allocation8 + $0x68] sm:$0xff]  ;;  %v91_v11 = vld [vmem:[#allocation8 + $0x60] sm:$0xff]  ;;  %v5182_v22 = vpack.c.bf16 %v86_v20, %v82_v19  ;;  %v81_v23 = vld [vmem:[#allocation8 + $0x10] sm:$0xff]  ;;  %p5041_p4 = scmp.ne.s32.totalorder %s3086_s28, %s5040_s11  ;;  %p5046_p6 = scmp.lt.s32.totalorder %s5040_s11, %s5040_s11 }
  0x4d   :  { %6404 = vst [vmem:[#allocation18_spill] sm:$0xff] %v5169_v4  ;;  %v5173_v9 = vpack.c.bf16 %v92_v7, %v88_v6  ;;  %v96_v12 = vld [vmem:[#allocation8 + $0x88] sm:$0xff]  ;;  %3145 = vmatprep.subr.bf16.mxu0 %v5169_v4  ;;  %v5177_v14 = vpack.c.bf16 %v91_v11, %v87_v10  ;;  %v95_v15 = vld [vmem:[#allocation8 + $0x80] sm:$0xff]  ;;  %v85_v24 = vld [vmem:[#allocation8 + $0x30] sm:$0xff] }
  0x4e   :  { %v100_v13 = vld [vmem:[#allocation8 + $0xa8] sm:$0xff]  ;;  %3147 = vmatpush1.bf16.msra.mxu0 %v5171_v8  ;;  %v99_v16 = vld [vmem:[#allocation8 + $0xa0] sm:$0xff]  ;;  %6405 = vst [vmem:[#allocation19_spill] sm:$0xff] %v5182_v22  ;;  %v5184_v25 = vpack.c.bf16 %v85_v24, %v81_v23  ;;  %3177 = vmatprep.subr.bf16.mxu1 %v5182_v22  ;;  %v90_v27 = vld [vmem:[#allocation8 + $0x58] sm:$0xff]  ;;  %p5047_p7 = por %p5046_p6, %p5045_p5 }
  0x4f   :  { %3149 = vmatprep.subr.bf16.mxu0 %v5173_v9  ;;  %v5180_v17 = vpack.c.bf16 %v100_v13, %v96_v12  ;;  %v104_v18 = vld [vmem:[#allocation8 + $0xc8] sm:$0xff]  ;;  %v5187_v26 = vpack.c.bf16 %v99_v16, %v95_v15  ;;  %v94_v28 = vld [vmem:[#allocation8 + $0x78] sm:$0xff]  ;;  %v89_v29 = vld [vmem:[#allocation8 + $0x50] sm:$0xff] }
  0x50   :  { %v108_v21 = vld [vmem:[#allocation8 + $0xe8] sm:$0xff]  ;;  %v103_v31 = vld [vmem:[#allocation8 + $0xc0] sm:$0xff]  ;;  %3179 = vmatpush1.bf16.msra.mxu1 %v5184_v25  ;;  %v5194_v33 = vpack.c.bf16 %v94_v28, %v90_v27  ;;  %v93_v34 = vld [vmem:[#allocation8 + $0x70] sm:$0xff]  ;;  %p5048_p8 = pnand %p5047_p7, %p5041_p4 }
  0x51   :  { %v5191_v30 = vpack.c.bf16 %v108_v21, %v104_v18  ;;  %v107_v32 = vld [vmem:[#allocation8 + $0xe0] sm:$0xff]  ;;  %v112_v35 = vld [vmem:[#allocation8 + $0x108] sm:$0xff]  ;;  %v5196_v37 = vpack.c.bf16 %v93_v34, %v89_v29  ;;  %v98_v38 = vld [vmem:[#allocation8 + $0x98] sm:$0xff] }
  0x52   :  { %3151 = vmatpush1.bf16.msra.mxu0 %v5177_v14  ;;  %v116_v36 = vld [vmem:[#allocation8 + $0x128] sm:$0xff]  ;;  %3181 = vmatprep.subr.bf16.mxu1 %v5194_v33  ;;  %v102_v39 = vld [vmem:[#allocation8 + $0xb8] sm:$0xff]  ;;  %v97_v40 = vld [vmem:[#allocation8 + $0x90] sm:$0xff]  ;;  %v5200_v42 = vpack.c.bf16 %v107_v32, %v103_v31 }
  0x53   :  { %3153 = vmatprep.subr.bf16.mxu0 %v5180_v17  ;;  %v101_v41 = vld [vmem:[#allocation8 + $0xb0] sm:$0xff]  ;;  %v111_v43 = vld [vmem:[#allocation8 + $0x100] sm:$0xff]  ;;  %v5202_v45 = vpack.c.bf16 %v102_v39, %v98_v38  ;;  %v5205_v46 = vpack.c.bf16 %v116_v36, %v112_v35  ;;  %v120_v47 = vld [vmem:[#allocation8 + $0x148] sm:$0xff] }
  0x54   :  { %v115_v44 = vld [vmem:[#allocation8 + $0x120] sm:$0xff]  ;;  %3183 = vmatpush1.bf16.msra.mxu1 %v5196_v37  ;;  %v5208_v48 = vpack.c.bf16 %v101_v41, %v97_v40  ;;  %v106_v49 = vld [vmem:[#allocation8 + $0xd8] sm:$0xff]  ;;  %v124_v51 = vld [vmem:[#allocation8 + $0x168] sm:$0xff] }
  0x55   :  { %v110_v50 = vld [vmem:[#allocation8 + $0xf8] sm:$0xff]  ;;  %3185 = vmatprep.subr.bf16.mxu1 %v5202_v45  ;;  %v105_v53 = vld [vmem:[#allocation8 + $0xd0] sm:$0xff]  ;;  %v5214_v55 = vpack.c.bf16 %v115_v44, %v111_v43  ;;  %v5217_v58 = vpack.c.bf16 %v124_v51, %v120_v47  ;;  %v119_v59 = vld [vmem:[#allocation8 + $0x140] sm:$0xff] }
  0x56   :  { %3155 = vmatpush1.bf16.msra.mxu0 %v5187_v26  ;;  %v5211_v52 = vpack.c.bf16 %v110_v50, %v106_v49  ;;  %v109_v54 = vld [vmem:[#allocation8 + $0xf0] sm:$0xff]  ;;  %v114_v56 = vld [vmem:[#allocation8 + $0x118] sm:$0xff]  ;;  %v123_v60 = vld [vmem:[#allocation8 + $0x160] sm:$0xff] }
  0x57   :  { %3157 = vmatprep.subr.bf16.mxu0 %v5191_v30  ;;  %v118_v57 = vld [vmem:[#allocation8 + $0x138] sm:$0xff]  ;;  %v128_v61 = vld [vmem:[#allocation8 + $0x188] sm:$0xff]  ;;  %v5220_v62 = vpack.c.bf16 %v109_v54, %v105_v53  ;;  %v113_v2 = vld [vmem:[#allocation8 + $0x110] sm:$0xff]  ;;  %v5226_v7 = vpack.c.bf16 %v123_v60, %v119_v59 }
  0x58   :  { %3187 = vmatpush1.bf16.msra.mxu1 %v5208_v48  ;;  %v132_v63 = vld [vmem:[#allocation8 + $0x1a8] sm:$0xff]  ;;  %v5223_v1 = vpack.c.bf16 %v118_v57, %v114_v56  ;;  %v117_v3 = vld [vmem:[#allocation8 + $0x130] sm:$0xff]  ;;  %v122_v5 = vld [vmem:[#allocation8 + $0x158] sm:$0xff] }
  0x59   :  { %3189 = vmatprep.subr.bf16.mxu1 %v5211_v52  ;;  %v126_v6 = vld [vmem:[#allocation8 + $0x178] sm:$0xff]  ;;  %v5229_v10 = vpack.c.bf16 %v132_v63, %v128_v61  ;;  %v127_v11 = vld [vmem:[#allocation8 + $0x180] sm:$0xff]  ;;  %v136_v13 = vld [vmem:[#allocation8 + $0x1c8] sm:$0xff]  ;;  %v5232_v15 = vpack.c.bf16 %v117_v3, %v113_v2 }
  0x5a   :  { %3159 = vmatpush1.bf16.msra.mxu0 %v5200_v42  ;;  %v131_v12 = vld [vmem:[#allocation8 + $0x1a0] sm:$0xff]  ;;  %v140_v16 = vld [vmem:[#allocation8 + $0x1e8] sm:$0xff]  ;;  %v5235_v18 = vpack.c.bf16 %v126_v6, %v122_v5  ;;  %v121_v19 = vld [vmem:[#allocation8 + $0x150] sm:$0xff] }
  0x5b   :  { %3161 = vmatprep.subr.bf16.mxu0 %v5205_v46  ;;  %v125_v20 = vld [vmem:[#allocation8 + $0x170] sm:$0xff]  ;;  %v130_v21 = vld [vmem:[#allocation8 + $0x198] sm:$0xff]  ;;  %v5238_v24 = vpack.c.bf16 %v131_v12, %v127_v11  ;;  %v5241_v27 = vpack.c.bf16 %v140_v16, %v136_v13  ;;  %v135_v28 = vld [vmem:[#allocation8 + $0x1c0] sm:$0xff] }
  0x5c   :  { %3191 = vmatpush1.bf16.msra.mxu1 %v5220_v62  ;;  %v134_v23 = vld [vmem:[#allocation8 + $0x1b8] sm:$0xff]  ;;  %v139_v29 = vld [vmem:[#allocation8 + $0x1e0] sm:$0xff]  ;;  %v5244_v31 = vpack.c.bf16 %v125_v20, %v121_v19  ;;  %v129_v32 = vld [vmem:[#allocation8 + $0x190] sm:$0xff] }
  0x5d   :  { %3193 = vmatprep.subr.bf16.mxu1 %v5223_v1  ;;  %v5247_v34 = vpack.c.bf16 %v134_v23, %v130_v21  ;;  %v133_v35 = vld [vmem:[#allocation8 + $0x1b0] sm:$0xff]  ;;  %v144_v36 = vld [vmem:[#allocation10 + $0x8] sm:$0xff]  ;;  %v138_v39 = vld [vmem:[#allocation8 + $0x1d8] sm:$0xff]  ;;  %v5250_v41 = vpack.c.bf16 %v139_v29, %v135_v28 }
  0x5e   :  { %3163 = vmatpush1.bf16.msra.mxu0 %v5214_v55  ;;  %v148_v38 = vld [vmem:[#allocation10 + $0x28] sm:$0xff]  ;;  %v142_v40 = vld [vmem:[#allocation8 + $0x1f8] sm:$0xff]  ;;  %v5254_v43 = vpack.c.bf16 %v133_v35, %v129_v32  ;;  %v137_v44 = vld [vmem:[#allocation8 + $0x1d0] sm:$0xff] }
  0x5f   :  { %3165 = vmatprep.subr.bf16.mxu0 %v5217_v58  ;;  %v5256_v47 = vpack.c.bf16 %v148_v38, %v144_v36  ;;  %v143_v49 = vld [vmem:[#allocation10] sm:$0xff]  ;;  %v5259_v51 = vpack.c.bf16 %v142_v40, %v138_v39  ;;  %v141_v53 = vld [vmem:[#allocation8 + $0x1f0] sm:$0xff]  ;;  %v152_v54 = vld [vmem:[#allocation10 + $0x48] sm:$0xff] }
  0x60   :  { %3195 = vmatpush1.bf16.msra.mxu1 %v5232_v15  ;;  %v147_v50 = vld [vmem:[#allocation10 + $0x20] sm:$0xff]  ;;  %v156_v56 = vld [vmem:[#allocation10 + $0x68] sm:$0xff]  ;;  %v146_v57 = vld [vmem:[#allocation10 + $0x18] sm:$0xff]  ;;  %v5265_v61 = vpack.c.bf16 %v141_v53, %v137_v44 }
  0x61   :  { %3197 = vmatprep.subr.bf16.mxu1 %v5235_v18  ;;  %v150_v59 = vld [vmem:[#allocation10 + $0x38] sm:$0xff]  ;;  %v5262_v60 = vpack.c.bf16 %v147_v50, %v143_v49  ;;  %v145_v63 = vld [vmem:[#allocation10 + $0x10] sm:$0xff]  ;;  %v5268_v2 = vpack.c.bf16 %v156_v56, %v152_v54  ;;  %v151_v3 = vld [vmem:[#allocation10 + $0x40] sm:$0xff] }
  0x62   :  { %3167 = vmatpush1.bf16.msra.mxu0 %v5226_v7  ;;  %v155_v5 = vld [vmem:[#allocation10 + $0x60] sm:$0xff]  ;;  %v5271_v6 = vpack.c.bf16 %v150_v59, %v146_v57  ;;  %v149_v11 = vld [vmem:[#allocation10 + $0x30] sm:$0xff]  ;;  %v160_v12 = vld [vmem:[#allocation10 + $0x88] sm:$0xff] }
  0x63   :  { %3169 = vmatprep.subr.bf16.mxu0 %v5229_v10  ;;  %v164_v13 = vld [vmem:[#allocation10 + $0xa8] sm:$0xff]  ;;  %v154_v16 = vld [vmem:[#allocation10 + $0x58] sm:$0xff]  ;;  %v5275_v20 = vpack.c.bf16 %v155_v5, %v151_v3  ;;  %v5279_v21 = vpack.c.bf16 %v149_v11, %v145_v63  ;;  %v153_v23 = vld [vmem:[#allocation10 + $0x50] sm:$0xff] }
  0x64   :  { %3199 = vmatpush1.bf16.msra.mxu1 %v5244_v31  ;;  %v158_v19 = vld [vmem:[#allocation10 + $0x78] sm:$0xff]  ;;  %v5282_v28 = vpack.c.bf16 %v164_v13, %v160_v12  ;;  %v159_v29 = vld [vmem:[#allocation10 + $0x80] sm:$0xff]  ;;  %v157_v36 = vld [vmem:[#allocation10 + $0x70] sm:$0xff] }
  0x65   :  { %3201 = vmatprep.subr.bf16.mxu1 %v5247_v34  ;;  %v163_v32 = vld [vmem:[#allocation10 + $0xa0] sm:$0xff]  ;;  %v5285_v35 = vpack.c.bf16 %v158_v19, %v154_v16  ;;  %v168_v38 = vld [vmem:[#allocation10 + $0xc8] sm:$0xff]  ;;  %v162_v40 = vld [vmem:[#allocation10 + $0x98] sm:$0xff]  ;;  %v5292_v50 = vpack.c.bf16 %v157_v36, %v153_v23 }
  0x66   :  { %3171 = vmatpush1.bf16.msra.mxu0 %v5238_v24  ;;  %v172_v39 = vld [vmem:[#allocation10 + $0xe8] sm:$0xff]  ;;  %v166_v44 = vld [vmem:[#allocation10 + $0xb8] sm:$0xff]  ;;  %v5289_v49 = vpack.c.bf16 %v163_v32, %v159_v29  ;;  %v161_v53 = vld [vmem:[#allocation10 + $0x90] sm:$0xff] }
  0x67   :  { %3173 = vmatprep.subr.bf16.mxu0 %v5241_v27  ;;  %v5295_v54 = vpack.c.bf16 %v172_v39, %v168_v38  ;;  %v167_v56 = vld [vmem:[#allocation10 + $0xc0] sm:$0xff]  ;;  %v5298_v59 = vpack.c.bf16 %v166_v44, %v162_v40  ;;  %v165_v63 = vld [vmem:[#allocation10 + $0xb0] sm:$0xff]  ;;  %v176_v3 = vld [vmem:[#allocation10 + $0x108] sm:$0xff] }
  0x68   :  { %3203 = vmatpush1.bf16.msra.mxu1 %v5254_v43  ;;  %v171_v57 = vld [vmem:[#allocation10 + $0xe0] sm:$0xff]  ;;  %v180_v5 = vld [vmem:[#allocation10 + $0x128] sm:$0xff]  ;;  %v170_v11 = vld [vmem:[#allocation10 + $0xd8] sm:$0xff]  ;;  %v5305_v16 = vpack.c.bf16 %v165_v63, %v161_v53 }
  0x69   :  { %3205 = vmatprep.subr.bf16.mxu1 %v5259_v51  ;;  %6406 = vst [vmem:[#allocation20_spill] sm:$0xff] %v5295_v54  ;;  %v174_v12 = vld [vmem:[#allocation10 + $0xf8] sm:$0xff]  ;;  %v5302_v13 = vpack.c.bf16 %v171_v57, %v167_v56  ;;  %v5308_v19 = vpack.c.bf16 %v180_v5, %v176_v3  ;;  %v175_v23 = vld [vmem:[#allocation10 + $0x100] sm:$0xff]  ;;  %v169_v36 = vld [vmem:[#allocation10 + $0xd0] sm:$0xff] }
  0x6a   :  { %3175 = vmatpush1.bf16.msra.mxu0 %v5250_v41  ;;  %6408 = vst [vmem:[#allocation22_spill] sm:$0xff] %v5305_v16  ;;  %v179_v29 = vld [vmem:[#allocation10 + $0x120] sm:$0xff]  ;;  %v5311_v32 = vpack.c.bf16 %v174_v12, %v170_v11  ;;  %v173_v38 = vld [vmem:[#allocation10 + $0xf0] sm:$0xff]  ;;  %v178_v39 = vld [vmem:[#allocation10 + $0x118] sm:$0xff] }
  0x6b   :  { %3209 = vmatprep.subr.bf16.mxu0 %v5256_v47  ;;  %6407 = vst [vmem:[#allocation21_spill] sm:$0xff] %v5302_v13  ;;  %6409 = vst [vmem:[#allocation23_spill] sm:$0xff] %v5308_v19  ;;  %v182_v40 = vld [vmem:[#allocation10 + $0x138] sm:$0xff]  ;;  %v5314_v44 = vpack.c.bf16 %v179_v29, %v175_v23  ;;  %v5317_v53 = vpack.c.bf16 %v173_v38, %v169_v36  ;;  %v177_v57 = vld [vmem:[#allocation10 + $0x110] sm:$0xff] }
  0x6c   :  { %3207 = vmatpush1.bf16.msra.mxu1 %v5265_v61  ;;  %6410 = vst [vmem:[#allocation24_spill] sm:$0xff] %v5311_v32  ;;  %v5321_v56 = vpack.c.bf16 %v182_v40, %v178_v39  ;;  %v181_v63 = vld [vmem:[#allocation10 + $0x130] sm:$0xff]  ;;  %v184_v5 = vld [vmem:[#allocation10 + $0x148] sm:$0xff]  ;;  %v186_v12 = vld [vmem:[#allocation10 + $0x158] sm:$0xff] }
  0x6d   :  { %345 = vmatmul.mubr.f32.vlgmr.msra.gmra.mrb[0].mxu0 %v6276_v0  ;;  %3273 = vmatprep.subr.bf16.mxu1 %v5271_v6  ;;  %6411 = vst [vmem:[#allocation25_spill] sm:$0xff] %v5314_v44  ;;  %6412 = vst [vmem:[#allocation26_spill] sm:$0xff] %v5317_v53  ;;  %v5325_v3 = vpack.c.bf16 %v181_v63, %v177_v57  ;;  %v188_v11 = vld [vmem:[#allocation10 + $0x168] sm:$0xff]  ;;  %v190_v29 = vld [vmem:[#allocation10 + $0x178] sm:$0xff] }
  0x6e   :  { %3211 = vmatpush1.bf16.msra.mxu0 %v5262_v60  ;;  %519 = vmatprep.mubr.f32.mxu0 %v6276_v0  ;;  %6413 = vst [vmem:[#allocation27_spill] sm:$0xff] %v5321_v56  ;;  %v5329_v23 = vpack.c.bf16 %v188_v11, %v184_v5  ;;  %v183_v36 = vld [vmem:[#allocation10 + $0x140] sm:$0xff]  ;;  %v5331_v39 = vpack.c.bf16 %v190_v29, %v186_v12  ;;  %v192_v63 = vld [vmem:[#allocation10 + $0x188] sm:$0xff]  ;;  %v194_v11 = vld [vmem:[#allocation10 + $0x198] sm:$0xff] }
  0x6f   :  { %3213 = vmatprep.subr.bf16.mxu0 %v5268_v2  ;;  %416 = vmatmul.mubr.f32.vlgmr.msra.gmra.mrb[0].mxu1 %v6276_v0  ;;  %6414 = vst [vmem:[#allocation28_spill] sm:$0xff] %v5325_v3  ;;  %v187_v38 = vld [vmem:[#allocation10 + $0x160] sm:$0xff]  ;;  %v196_v5 = vld [vmem:[#allocation10 + $0x1a8] sm:$0xff]  ;;  %v198_v12 = vld [vmem:[#allocation10 + $0x1b8] sm:$0xff] }
  0x70   :  { %3275 = vmatpush1.bf16.msra.mxu1 %v5279_v21  ;;  %590 = vmatprep.mubr.f32.mxu1 %v6276_v0  ;;  %6415 = vst [vmem:[#allocation29_spill] sm:$0xff] %v5329_v23  ;;  %6416 = vst [vmem:[#allocation30_spill] sm:$0xff] %v5331_v39  ;;  %v5333_v40 = vpack.c.bf16 %v187_v38, %v183_v36  ;;  %v185_v0 = vld [vmem:[#allocation10 + $0x150] sm:$0xff]  ;;  %v191_v29 = vld [vmem:[#allocation10 + $0x180] sm:$0xff]  ;;  %v5343_v38 = vpack.c.bf16 %v198_v12, %v194_v11 }
  0x71   :  { %3277 = vmatprep.subr.bf16.mxu1 %v5285_v35  ;;  %v195_v36 = vld [vmem:[#allocation10 + $0x1a0] sm:$0xff]  ;;  %v206_v11 = vld [vmem:[#allocation10 + $0x1f8] sm:$0xff] }
  0x72   :  { %3215 = vmatpush1.bf16.msra.mxu0 %v5275_v20  ;;  %6417 = vst [vmem:[#allocation31_spill] sm:$0xff] %v5333_v40  ;;  %6420 = vst [vmem:[#allocation34_spill] sm:$0xff] %v5343_v38  ;;  %v199_v12 = vld [vmem:[#allocation10 + $0x1c0] sm:$0xff] }
  0x73   :  { %3217 = vmatprep.subr.bf16.mxu0 %v5282_v28 }
  0x74   :  { %3279 = vmatpush1.bf16.msra.mxu1 %v5292_v50 }
  0x75   :  { %3281 = vmatprep.subr.bf16.mxu1 %v5298_v59 }
  0x76   :  { %3219 = vmatpush1.bf16.msra.mxu0 %v5289_v49 }
  0x77   :  { %3221 = vmatprep.subr.bf16.mxu0 %v5295_v54 }
  0x78   :  { %3283 = vmatpush1.bf16.msra.mxu1 %v5305_v16 }
  0x79   :  { %3285 = vmatprep.subr.bf16.mxu1 %v5311_v32 }
  0x7a   :  { %3223 = vmatpush1.bf16.msra.mxu0 %v5302_v13 }
  0x7b   :  { %3225 = vmatprep.subr.bf16.mxu0 %v5308_v19  ;;  %v260_v19 = vld [vmem:[#allocation10 + $0x3a8] sm:$0xff] }
  0x7c   :  { %3287 = vmatpush1.bf16.msra.mxu1 %v5317_v53  ;;  %v255_v53 = vld [vmem:[#allocation10 + $0x380] sm:$0xff] }
  0x7d   :  { %3289 = vmatprep.subr.bf16.mxu1 %v5321_v56  ;;  %v5345_v56 = vpack.c.bf16 %v195_v36, %v191_v29  ;;  %v203_v29 = vld [vmem:[#allocation10 + $0x1e0] sm:$0xff] }
  0x7e   :  { %3227 = vmatpush1.bf16.msra.mxu0 %v5314_v44  ;;  %v189_v44 = vld [vmem:[#allocation10 + $0x170] sm:$0xff] }
  0x7f   :  { %3229 = vmatprep.subr.bf16.mxu0 %v5329_v23  ;;  %v5336_v57 = vpack.c.bf16 %v189_v44, %v185_v0  ;;  %6421 = vst [vmem:[#allocation35_spill] sm:$0xff] %v5345_v56  ;;  %v193_v0 = vld [vmem:[#allocation10 + $0x190] sm:$0xff]  ;;  %v5357_v23 = vpack.c.bf16 %v203_v29, %v199_v12  ;;  %v211_v12 = vld [vmem:[#allocation10 + $0x220] sm:$0xff] }
  0x80   :  { %3291 = vmatpush1.bf16.msra.mxu1 %v5325_v3  ;;  %v5341_v3 = vpack.c.bf16 %v196_v5, %v192_v63  ;;  %v197_v44 = vld [vmem:[#allocation10 + $0x1b0] sm:$0xff]  ;;  %v204_v63 = vld [vmem:[#allocation10 + $0x1e8] sm:$0xff]  ;;  %v202_v5 = vld [vmem:[#allocation10 + $0x1d8] sm:$0xff] }
  0x81   :  { %6418 = vst [vmem:[#allocation32_spill] sm:$0xff] %v5336_v57  ;;  %3293 = vmatprep.subr.bf16.mxu1 %v5331_v39  ;;  %v5348_v39 = vpack.c.bf16 %v197_v44, %v193_v0  ;;  %v5355_v36 = vpack.c.bf16 %v206_v11, %v202_v5  ;;  %6425 = vst [vmem:[#allocation39_spill] sm:$0xff] %v5357_v23  ;;  %v201_v0 = vld [vmem:[#allocation10 + $0x1d0] sm:$0xff]  ;;  %v214_v5 = vld [vmem:[#allocation10 + $0x238] sm:$0xff] }
  0x82   :  { %3231 = vmatpush1.bf16.msra.mxu0 %v5333_v40  ;;  %6419 = vst [vmem:[#allocation33_spill] sm:$0xff] %v5341_v3  ;;  %v205_v44 = vld [vmem:[#allocation10 + $0x1f0] sm:$0xff]  ;;  %v207_v11 = vld [vmem:[#allocation10 + $0x200] sm:$0xff] }
  0x83   :  { %3233 = vmatprep.subr.bf16.mxu0 %v5341_v3  ;;  %6422 = vst [vmem:[#allocation36_spill] sm:$0xff] %v5348_v39  ;;  %6424 = vst [vmem:[#allocation38_spill] sm:$0xff] %v5355_v36  ;;  %v5369_v3 = vpack.c.bf16 %v211_v12, %v207_v11  ;;  %v215_v11 = vld [vmem:[#allocation10 + $0x240] sm:$0xff] }
  0x84   :  { %3295 = vmatpush1.bf16.msra.mxu1 %v5336_v57  ;;  %v200_v57 = vld [vmem:[#allocation10 + $0x1c8] sm:$0xff]  ;;  %v219_v12 = vld [vmem:[#allocation10 + $0x260] sm:$0xff] }
  0x85   :  { %3297 = vmatprep.subr.bf16.mxu1 %v5343_v38  ;;  %v5353_v40 = vpack.c.bf16 %v204_v63, %v200_v57  ;;  %v5360_v38 = vpack.c.bf16 %v205_v44, %v201_v0  ;;  %v212_v57 = vld [vmem:[#allocation10 + $0x228] sm:$0xff]  ;;  %v210_v63 = vld [vmem:[#allocation10 + $0x218] sm:$0xff]  ;;  %6429 = vst [vmem:[#allocation43_spill] sm:$0xff] %v5369_v3  ;;  %v209_v0 = vld [vmem:[#allocation10 + $0x210] sm:$0xff] }
  0x86   :  { %3235 = vmatpush1.bf16.msra.mxu0 %v5345_v56  ;;  %v5367_v29 = vpack.c.bf16 %v214_v5, %v210_v63  ;;  %v213_v44 = vld [vmem:[#allocation10 + $0x230] sm:$0xff] }
  0x87   :  { %6423 = vst [vmem:[#allocation37_spill] sm:$0xff] %v5353_v40  ;;  %3237 = vmatprep.subr.bf16.mxu0 %v5353_v40  ;;  %6426 = vst [vmem:[#allocation40_spill] sm:$0xff] %v5360_v38  ;;  %v217_v40 = vld [vmem:[#allocation10 + $0x250] sm:$0xff] }
  0x88   :  { %3299 = vmatpush1.bf16.msra.mxu1 %v5348_v39  ;;  %v208_v39 = vld [vmem:[#allocation10 + $0x208] sm:$0xff]  ;;  %6428 = vst [vmem:[#allocation42_spill] sm:$0xff] %v5367_v29 }
  0x89   :  { %3301 = vmatprep.subr.bf16.mxu1 %v5355_v36  ;;  %v5365_v56 = vpack.c.bf16 %v212_v57, %v208_v39  ;;  %v5372_v36 = vpack.c.bf16 %v213_v44, %v209_v0  ;;  %v220_v39 = vld [vmem:[#allocation10 + $0x268] sm:$0xff]  ;;  %v218_v57 = vld [vmem:[#allocation10 + $0x258] sm:$0xff]  ;;  %v221_v0 = vld [vmem:[#allocation10 + $0x270] sm:$0xff] }
  0x8a   :  { %3239 = vmatpush1.bf16.msra.mxu0 %v5357_v23  ;;  %v222_v23 = vld [vmem:[#allocation10 + $0x278] sm:$0xff]  ;;  %v5385_v44 = vpack.c.bf16 %v221_v0, %v217_v40  ;;  %v232_v0 = vld [vmem:[#allocation10 + $0x2c8] sm:$0xff] }
  0x8b   :  { %6427 = vst [vmem:[#allocation41_spill] sm:$0xff] %v5365_v56  ;;  %3241 = vmatprep.subr.bf16.mxu0 %v5365_v56  ;;  %6430 = vst [vmem:[#allocation44_spill] sm:$0xff] %v5372_v36  ;;  %v5379_v5 = vpack.c.bf16 %v222_v23, %v218_v57  ;;  %v5381_v56 = vpack.c.bf16 %v219_v12, %v215_v11  ;;  %v230_v23 = vld [vmem:[#allocation10 + $0x2b8] sm:$0xff]  ;;  %v227_v57 = vld [vmem:[#allocation10 + $0x2a0] sm:$0xff] }
  0x8c   :  { %3303 = vmatpush1.bf16.msra.mxu1 %v5360_v38  ;;  %v216_v38 = vld [vmem:[#allocation10 + $0x248] sm:$0xff]  ;;  %6434 = vst [vmem:[#allocation48_spill] sm:$0xff] %v5385_v44 }
  0x8d   :  { %3305 = vmatprep.subr.bf16.mxu1 %v5367_v29  ;;  %v5377_v63 = vpack.c.bf16 %v220_v39, %v216_v38  ;;  %6432 = vst [vmem:[#allocation46_spill] sm:$0xff] %v5379_v5  ;;  %6433 = vst [vmem:[#allocation47_spill] sm:$0xff] %v5381_v56  ;;  %v226_v29 = vld [vmem:[#allocation10 + $0x298] sm:$0xff]  ;;  %v223_v39 = vld [vmem:[#allocation10 + $0x280] sm:$0xff] }
  0x8e   :  { %3243 = vmatpush1.bf16.msra.mxu0 %v5369_v3  ;;  %v228_v3 = vld [vmem:[#allocation10 + $0x2a8] sm:$0xff]  ;;  %v5391_v11 = vpack.c.bf16 %v230_v23, %v226_v29  ;;  %v5393_v12 = vpack.c.bf16 %v227_v57, %v223_v39  ;;  %v231_v29 = vld [vmem:[#allocation10 + $0x2c0] sm:$0xff] }
  0x8f   :  { %6431 = vst [vmem:[#allocation45_spill] sm:$0xff] %v5377_v63  ;;  %3245 = vmatprep.subr.bf16.mxu0 %v5377_v63  ;;  %v225_v63 = vld [vmem:[#allocation10 + $0x290] sm:$0xff]  ;;  %v235_v23 = vld [vmem:[#allocation10 + $0x2e0] sm:$0xff] }
  0x90   :  { %3307 = vmatpush1.bf16.msra.mxu1 %v5372_v36  ;;  %v224_v36 = vld [vmem:[#allocation10 + $0x288] sm:$0xff]  ;;  %6436 = vst [vmem:[#allocation50_spill] sm:$0xff] %v5391_v11  ;;  %6437 = vst [vmem:[#allocation51_spill] sm:$0xff] %v5393_v12  ;;  %v5405_v57 = vpack.c.bf16 %v235_v23, %v231_v29 }
  0x91   :  { %3309 = vmatprep.subr.bf16.mxu1 %v5379_v5  ;;  %v5388_v38 = vpack.c.bf16 %v228_v3, %v224_v36  ;;  %v229_v5 = vld [vmem:[#allocation10 + $0x2b0] sm:$0xff]  ;;  %v236_v3 = vld [vmem:[#allocation10 + $0x2e8] sm:$0xff]  ;;  %v234_v36 = vld [vmem:[#allocation10 + $0x2d8] sm:$0xff] }
  0x92   :  { %3247 = vmatpush1.bf16.msra.mxu0 %v5381_v56  ;;  %v5396_v40 = vpack.c.bf16 %v229_v5, %v225_v63  ;;  %v5400_v56 = vpack.c.bf16 %v236_v3, %v232_v0  ;;  %6441 = vst [vmem:[#allocation55_spill] sm:$0xff] %v5405_v57  ;;  %v233_v63 = vld [vmem:[#allocation10 + $0x2d0] sm:$0xff]  ;;  %v244_v0 = vld [vmem:[#allocation10 + $0x328] sm:$0xff]  ;;  %v242_v3 = vld [vmem:[#allocation10 + $0x318] sm:$0xff] }
  0x93   :  { %6435 = vst [vmem:[#allocation49_spill] sm:$0xff] %v5388_v38  ;;  %3249 = vmatprep.subr.bf16.mxu0 %v5388_v38  ;;  %v237_v5 = vld [vmem:[#allocation10 + $0x2f0] sm:$0xff] }
  0x94   :  { %3311 = vmatpush1.bf16.msra.mxu1 %v5385_v44  ;;  %6438 = vst [vmem:[#allocation52_spill] sm:$0xff] %v5396_v40  ;;  %6439 = vst [vmem:[#allocation53_spill] sm:$0xff] %v5400_v56  ;;  %v238_v44 = vld [vmem:[#allocation10 + $0x2f8] sm:$0xff] }
  0x95   :  { %3313 = vmatprep.subr.bf16.mxu1 %v5391_v11  ;;  %v5403_v39 = vpack.c.bf16 %v238_v44, %v234_v36  ;;  %v5408_v11 = vpack.c.bf16 %v237_v5, %v233_v63  ;;  %v239_v44 = vld [vmem:[#allocation10 + $0x300] sm:$0xff]  ;;  %v241_v63 = vld [vmem:[#allocation10 + $0x310] sm:$0xff] }
  0x96   :  { %3251 = vmatpush1.bf16.msra.mxu0 %v5393_v12  ;;  %v240_v12 = vld [vmem:[#allocation10 + $0x308] sm:$0xff]  ;;  %v243_v36 = vld [vmem:[#allocation10 + $0x320] sm:$0xff]  ;;  %v245_v5 = vld [vmem:[#allocation10 + $0x330] sm:$0xff] }
  0x97   :  { %6440 = vst [vmem:[#allocation54_spill] sm:$0xff] %v5403_v39  ;;  %3253 = vmatprep.subr.bf16.mxu0 %v5400_v56  ;;  %6442 = vst [vmem:[#allocation56_spill] sm:$0xff] %v5408_v11  ;;  %v5412_v38 = vpack.c.bf16 %v244_v0, %v240_v12  ;;  %v5417_v23 = vpack.c.bf16 %v243_v36, %v239_v44  ;;  %v252_v12 = vld [vmem:[#allocation10 + $0x368] sm:$0xff]  ;;  %v250_v0 = vld [vmem:[#allocation10 + $0x358] sm:$0xff] }
  0x98   :  { %3315 = vmatpush1.bf16.msra.mxu1 %v5396_v40  ;;  %v246_v40 = vld [vmem:[#allocation10 + $0x338] sm:$0xff] }
  0x99   :  { %3317 = vmatprep.subr.bf16.mxu1 %v5403_v39  ;;  %6443 = vst [vmem:[#allocation57_spill] sm:$0xff] %v5412_v38  ;;  %v5415_v29 = vpack.c.bf16 %v246_v40, %v242_v3  ;;  %6445 = vst [vmem:[#allocation59_spill] sm:$0xff] %v5417_v23  ;;  %v5420_v39 = vpack.c.bf16 %v245_v5, %v241_v63  ;;  %v247_v40 = vld [vmem:[#allocation10 + $0x340] sm:$0xff]  ;;  %v249_v63 = vld [vmem:[#allocation10 + $0x350] sm:$0xff] }
  0x9a   :  { %3255 = vmatpush1.bf16.msra.mxu0 %v5405_v57  ;;  %v248_v57 = vld [vmem:[#allocation10 + $0x348] sm:$0xff]  ;;  %v251_v3 = vld [vmem:[#allocation10 + $0x360] sm:$0xff]  ;;  %v253_v5 = vld [vmem:[#allocation10 + $0x370] sm:$0xff] }
  0x9b   :  { %6444 = vst [vmem:[#allocation58_spill] sm:$0xff] %v5415_v29  ;;  %3257 = vmatprep.subr.bf16.mxu0 %v5412_v38  ;;  %6446 = vst [vmem:[#allocation60_spill] sm:$0xff] %v5420_v39  ;;  %v5424_v56 = vpack.c.bf16 %v252_v12, %v248_v57  ;;  %v5429_v36 = vpack.c.bf16 %v251_v3, %v247_v40  ;;  %v256_v38 = vld [vmem:[#allocation10 + $0x388] sm:$0xff]  ;;  %v262_v12 = vld [vmem:[#allocation10 + $0x3b8] sm:$0xff] }
  0x9c   :  { %3319 = vmatpush1.bf16.msra.mxu1 %v5408_v11  ;;  %v254_v11 = vld [vmem:[#allocation10 + $0x378] sm:$0xff]  ;;  %v5435_v57 = vpack.c.bf16 %v260_v19, %v256_v38  ;;  %v257_v40 = vld [vmem:[#allocation10 + $0x390] sm:$0xff]  ;;  %v268_v19 = vld [vmem:[#allocation10 + $0x3e8] sm:$0xff] }
  0x9d   :  { %3321 = vmatprep.subr.bf16.mxu1 %v5415_v29  ;;  %6447 = vst [vmem:[#allocation61_spill] sm:$0xff] %v5424_v56  ;;  %v5427_v44 = vpack.c.bf16 %v254_v11, %v250_v0  ;;  %6449 = vst [vmem:[#allocation63_spill] sm:$0xff] %v5429_v36  ;;  %v5432_v29 = vpack.c.bf16 %v253_v5, %v249_v63  ;;  %v261_v3 = vld [vmem:[#allocation10 + $0x3b0] sm:$0xff]  ;;  %v264_v63 = vld [vmem:[#allocation10 + $0x3c8] sm:$0xff] }
  0x9e   :  { %3259 = vmatpush1.bf16.msra.mxu0 %v5417_v23  ;;  %v258_v23 = vld [vmem:[#allocation10 + $0x398] sm:$0xff]  ;;  %6451 = vst [vmem:[#allocation65_spill] sm:$0xff] %v5435_v57  ;;  %v5444_v5 = vpack.c.bf16 %v261_v3, %v257_v40  ;;  %v276_v3 = vld [vmem:[#allocation5 + $0x8] sm:$0xff] }
  0x9f   :  { %6448 = vst [vmem:[#allocation62_spill] sm:$0xff] %v5427_v44  ;;  %3261 = vmatprep.subr.bf16.mxu0 %v5424_v56  ;;  %6450 = vst [vmem:[#allocation64_spill] sm:$0xff] %v5432_v29  ;;  %v5438_v11 = vpack.c.bf16 %v262_v12, %v258_v23  ;;  %v266_v38 = vld [vmem:[#allocation10 + $0x3d8] sm:$0xff]  ;;  %v5447_v56 = vpack.c.bf16 %v268_v19, %v264_v63  ;;  %v265_v12 = vld [vmem:[#allocation10 + $0x3d0] sm:$0xff] }
  0xa0   :  { %3323 = vmatpush1.bf16.msra.mxu1 %v5420_v39  ;;  %v259_v39 = vld [vmem:[#allocation10 + $0x3a0] sm:$0xff]  ;;  %6454 = vst [vmem:[#allocation68_spill] sm:$0xff] %v5444_v5 }
  0xa1   :  { %3325 = vmatprep.subr.bf16.mxu1 %v5427_v44  ;;  %6452 = vst [vmem:[#allocation66_spill] sm:$0xff] %v5438_v11  ;;  %v5440_v0 = vpack.c.bf16 %v259_v39, %v255_v53  ;;  %v270_v44 = vld [vmem:[#allocation10 + $0x3f8] sm:$0xff]  ;;  %6455 = vst [vmem:[#allocation69_spill] sm:$0xff] %v5447_v56  ;;  %v263_v53 = vld [vmem:[#allocation10 + $0x3c0] sm:$0xff] }
  0xa2   :  { %3263 = vmatpush1.bf16.msra.mxu0 %v5429_v36  ;;  %v5449_v23 = vpack.c.bf16 %v270_v44, %v266_v38  ;;  %v267_v39 = vld [vmem:[#allocation10 + $0x3e0] sm:$0xff]  ;;  %v269_v36 = vld [vmem:[#allocation10 + $0x3f0] sm:$0xff] }
  0xa3   :  { %6453 = vst [vmem:[#allocation67_spill] sm:$0xff] %v5440_v0  ;;  %3265 = vmatprep.subr.bf16.mxu0 %v5435_v57  ;;  %v5456_v40 = vpack.c.bf16 %v269_v36, %v265_v12  ;;  %v275_v44 = vld [vmem:[#allocation5] sm:$0xff]  ;;  %v278_v36 = vld [vmem:[#allocation5 + $0x18] sm:$0xff] }
  0xa4   :  { %3327 = vmatpush1.bf16.msra.mxu1 %v5432_v29  ;;  %6456 = vst [vmem:[#allocation70_spill] sm:$0xff] %v5449_v23  ;;  %v5452_v29 = vpack.c.bf16 %v267_v39, %v263_v53 }
  0xa5   :  { %3329 = vmatprep.subr.bf16.mxu1 %v5438_v11  ;;  %6458 = vst [vmem:[#allocation72_spill] sm:$0xff] %v5456_v40 }
  0xa6   :  { %3267 = vmatpush1.bf16.msra.mxu0 %v5440_v0  ;;  %6457 = vst [vmem:[#allocation71_spill] sm:$0xff] %v5452_v29 }
  0xa7   :  { %3269 = vmatprep.subr.bf16.mxu0 %v5447_v56 }
  0xa8   :  { %3331 = vmatpush1.bf16.msra.mxu1 %v5444_v5  ;;  %v277_v5 = vld [vmem:[#allocation5 + $0x10] sm:$0xff] }
  0xa9   :  { %3333 = vmatprep.subr.bf16.mxu1 %v5449_v23 }
  0xaa   :  { %3271 = vmatpush1.bf16.msra.mxu0 %v5452_v29 }
  0xab   :  { %3337 = vmatprep.subr.bf16.mxu0 %v5169_v4 }
  0xac   :  { %3335 = vmatpush1.bf16.msra.mxu1 %v5456_v40 }
  0xad   :  { %3369 = vmatprep.subr.bf16.mxu1 %v5182_v22 }
 0x140   :  { %v346_v63 = vpop.f32.mrb[0].mxu0 }
 0x141   :  { %v422_v19 = vadd.f32 %v346_v63, %v275_v44  ;;  %v348_v38 = vpop.f32.mrb[1].mxu0 }
 0x142   :  { %v423_v53 = vadd.f32 %v348_v38, %v276_v3  ;;  %v417_v12 = vpop.f32.mrb[0].mxu1 }
 0x143   :  { %v3096_v39 = vmul.f32 -1.442695, %v422_v19  ;;  %v419_v23 = vpop.f32.mrb[1].mxu1  ;;  %v424_v0 = vadd.f32 %v417_v12, %v277_v5  ;;  %v6466_v12 = vld [vmem:[#allocation30_spill] sm:$0xff] }
 0x144   :  { %v3097_v56 = vmul.f32 -1.442695, %v423_v53  ;;  %v425_v29 = vadd.f32 %v419_v23, %v278_v36  ;;  %v6465_v36 = vld [vmem:[#allocation29_spill] sm:$0xff] }
 0x145   :  { %4688 = vpow2.f32 %v3096_v39 }
 0x146   :  { %4690 = vpow2.f32 %v3097_v56  ;;  %v3098_v40 = vmul.f32 -1.442695, %v425_v29 }
 0x148   :  { %4692 = vpow2.f32 %v3098_v40  ;;  %v6464_v40 = vld [vmem:[#allocation28_spill] sm:$0xff] }
 0x149   :  { %4694 = vtanh.f32 %v424_v0  ;;  %v6463_v0 = vld [vmem:[#allocation25_spill] sm:$0xff] }
 0x14f   :  { %v4689_v4 = vpop.eup %4688 }
 0x150   :  { %v4691_v22 = vpop.eup %4690  ;;  %v430_v11 = vadd.f32 1.0, %v4689_v4  ;;  %v6459_v4 = vmov 0.0  }
 0x151   :  { %v436_v57 = vadd.f32 1.0, %v4691_v22  ;;  %v6460_v22 = vld [vmem:[#allocation26_spill] sm:$0xff] }
 0x152   :  { %4696 = vrcp.f32 %v430_v11  ;;  %v4693_v44 = vpop.eup %4692  ;;  %v6462_v11 = vld [vmem:[#allocation27_spill] sm:$0xff] }
 0x153   :  { %4698 = vrcp.f32 %v436_v57  ;;  %v4695_v3 = vpop.eup %4694  ;;  %v443_v19 = vadd.f32 1.0, %v4693_v44  ;;  %v6461_v57 = vld [vmem:[#allocation23_spill] sm:$0xff] }
 0x154   :  { %v6467_v44 = vld [vmem:[#allocation31_spill] sm:$0xff] }
 0x155   :  { %4700 = vrcp.f32 %v443_v19  ;;  %v6470_v19 = vld [vmem:[#allocation34_spill] sm:$0xff] }
 0x15c   :  { %v4697_v63 = vpop.eup %4696 }
 0x15d   :  { %v4699_v38 = vpop.eup %4698  ;;  %v447_v53 = vmul.f32 %v4697_v63, %v4695_v3  ;;  %v6468_v3 = vld [vmem:[#allocation32_spill] sm:$0xff]  ;;  %v6469_v63 = vld [vmem:[#allocation33_spill] sm:$0xff] }
 0x15e   :  { %v446_v56 = vmul.f32 0.0, %v4699_v38  ;;  %v6471_v38 = vld [vmem:[#allocation35_spill] sm:$0xff] }
 0x15f   :  { %v4701_v29 = vpop.eup %4700 }
 0x160   :  { %v5463_v39 = vadd.f32 %v447_v53, %v446_v56  ;;  %v6472_v53 = vld [vmem:[#allocation36_spill] sm:$0xff]  ;;  %v6473_v56 = vld [vmem:[#allocation37_spill] sm:$0xff] }
 0x162   :  { %4702 = vtanh.f32 %v5463_v39 }
 0x16c   :  { %v4703_v5 = vpop.eup %4702 }
 0x16d   :  { %v450_v23 = vmul.f32 %v4703_v5, %v4701_v29  ;;  %v6474_v29 = vld [vmem:[#allocation38_spill] sm:$0xff]  ;;  %v6475_v5 = vld [vmem:[#allocation39_spill] sm:$0xff] }
 0x16f   :  { %520 = vmatmul.mubr.f32.vlgmr.msra.gmra.mrb[2].mxu0 %v450_v23  ;;  %591 = vmatmul.mubr.f32.vlgmr.msra.gmra.mrb[2].mxu1 %v450_v23 }
 0x170   :  { %3339 = vmatpush1.bf16.msra.mxu0 %v5171_v8  ;;  %3371 = vmatpush1.bf16.msra.mxu1 %v5184_v25 }
 0x171   :  { %3341 = vmatprep.subr.bf16.mxu0 %v5173_v9  ;;  %3373 = vmatprep.subr.bf16.mxu1 %v5194_v33 }
 0x172   :  { %694 = vmatprep.mubr.f32.mxu0 %v6459_v4  ;;  %765 = vmatprep.mubr.f32.mxu1 %v6459_v4 }
 0x174   :  { %3343 = vmatpush1.bf16.msra.mxu0 %v5177_v14  ;;  %3375 = vmatpush1.bf16.msra.mxu1 %v5196_v37 }
 0x175   :  { %3345 = vmatprep.subr.bf16.mxu0 %v5180_v17  ;;  %3377 = vmatprep.subr.bf16.mxu1 %v5202_v45 }
 0x178   :  { %3347 = vmatpush1.bf16.msra.mxu0 %v5187_v26  ;;  %3379 = vmatpush1.bf16.msra.mxu1 %v5208_v48 }
 0x179   :  { %3349 = vmatprep.subr.bf16.mxu0 %v5191_v30  ;;  %3381 = vmatprep.subr.bf16.mxu1 %v5211_v52 }
 0x17c   :  { %3351 = vmatpush1.bf16.msra.mxu0 %v5200_v42  ;;  %3383 = vmatpush1.bf16.msra.mxu1 %v5220_v62 }
 0x17d   :  { %3353 = vmatprep.subr.bf16.mxu0 %v5205_v46  ;;  %3385 = vmatprep.subr.bf16.mxu1 %v5223_v1 }
 0x180   :  { %3355 = vmatpush1.bf16.msra.mxu0 %v5214_v55  ;;  %3387 = vmatpush1.bf16.msra.mxu1 %v5232_v15 }
 0x181   :  { %3357 = vmatprep.subr.bf16.mxu0 %v5217_v58  ;;  %3389 = vmatprep.subr.bf16.mxu1 %v5235_v18 }
 0x184   :  { %3359 = vmatpush1.bf16.msra.mxu0 %v5226_v7  ;;  %3391 = vmatpush1.bf16.msra.mxu1 %v5244_v31 }
 0x185   :  { %3361 = vmatprep.subr.bf16.mxu0 %v5229_v10  ;;  %3393 = vmatprep.subr.bf16.mxu1 %v5247_v34 }
 0x188   :  { %3363 = vmatpush1.bf16.msra.mxu0 %v5238_v24  ;;  %3395 = vmatpush1.bf16.msra.mxu1 %v5254_v43 }
 0x189   :  { %3365 = vmatprep.subr.bf16.mxu0 %v5241_v27  ;;  %3397 = vmatprep.subr.bf16.mxu1 %v5259_v51 }
 0x18c   :  { %3367 = vmatpush1.bf16.msra.mxu0 %v5250_v41  ;;  %3399 = vmatpush1.bf16.msra.mxu1 %v5265_v61 }
 0x18d   :  { %3401 = vmatprep.subr.bf16.mxu0 %v5256_v47  ;;  %3465 = vmatprep.subr.bf16.mxu1 %v5271_v6 }
 0x18f   :  { %695 = vmatmul.mubr.f32.vlgmr.msra.gmra.mrb[4].mxu0 %v450_v23  ;;  %766 = vmatmul.mubr.f32.vlgmr.msra.gmra.mrb[4].mxu1 %v450_v23  ;;  %v6476_v23 = vld [vmem:[#allocation40_spill] sm:$0xff] }
 0x190   :  { %3403 = vmatpush1.bf16.msra.mxu0 %v5262_v60  ;;  %3467 = vmatpush1.bf16.msra.mxu1 %v5279_v21 }
 0x191   :  { %3405 = vmatprep.subr.bf16.mxu0 %v5268_v2  ;;  %3469 = vmatprep.subr.bf16.mxu1 %v5285_v35 }
 0x194   :  { %3407 = vmatpush1.bf16.msra.mxu0 %v5275_v20  ;;  %3471 = vmatpush1.bf16.msra.mxu1 %v5292_v50 }
 0x195   :  { %3409 = vmatprep.subr.bf16.mxu0 %v5282_v28  ;;  %3473 = vmatprep.subr.bf16.mxu1 %v5298_v59 }
 0x198   :  { %3411 = vmatpush1.bf16.msra.mxu0 %v5289_v49  ;;  %3475 = vmatpush1.bf16.msra.mxu1 %v5305_v16 }
 0x199   :  { %3413 = vmatprep.subr.bf16.mxu0 %v5295_v54  ;;  %3477 = vmatprep.subr.bf16.mxu1 %v5311_v32  ;;  %v628_v32 = vld [vmem:[#allocation5 + $0x38] sm:$0xff] }
 0x19c   :  { %3415 = vmatpush1.bf16.msra.mxu0 %v5302_v13  ;;  %3479 = vmatpush1.bf16.msra.mxu1 %v6460_v22  ;;  %v626_v13 = vld [vmem:[#allocation5 + $0x28] sm:$0xff] }
 0x19d   :  { %3417 = vmatprep.subr.bf16.mxu0 %v6461_v57  ;;  %3481 = vmatprep.subr.bf16.mxu1 %v6462_v11 }
 0x1a0   :  { %3419 = vmatpush1.bf16.msra.mxu0 %v6463_v0  ;;  %3483 = vmatpush1.bf16.msra.mxu1 %v6464_v40 }
 0x1a1   :  { %3421 = vmatprep.subr.bf16.mxu0 %v6465_v36  ;;  %3485 = vmatprep.subr.bf16.mxu1 %v6466_v12  ;;  %v6477_v12 = vld [vmem:[#allocation41_spill] sm:$0xff] }
 0x1a4   :  { %3423 = vmatpush1.bf16.msra.mxu0 %v6467_v44  ;;  %3487 = vmatpush1.bf16.msra.mxu1 %v6468_v3  ;;  %v6478_v44 = vld [vmem:[#allocation42_spill] sm:$0xff]  ;;  %v6479_v3 = vld [vmem:[#allocation43_spill] sm:$0xff] }
 0x1a5   :  { %3425 = vmatprep.subr.bf16.mxu0 %v6469_v63  ;;  %3489 = vmatprep.subr.bf16.mxu1 %v6470_v19  ;;  %v6480_v63 = vld [vmem:[#allocation44_spill] sm:$0xff]  ;;  %v6481_v19 = vld [vmem:[#allocation45_spill] sm:$0xff] }
 0x1a8   :  { %3427 = vmatpush1.bf16.msra.mxu0 %v6471_v38  ;;  %3491 = vmatpush1.bf16.msra.mxu1 %v6472_v53  ;;  %v6482_v38 = vld [vmem:[#allocation46_spill] sm:$0xff]  ;;  %v6483_v53 = vld [vmem:[#allocation47_spill] sm:$0xff] }
 0x1a9   :  { %3429 = vmatprep.subr.bf16.mxu0 %v6473_v56  ;;  %3493 = vmatprep.subr.bf16.mxu1 %v6474_v29  ;;  %v6484_v56 = vld [vmem:[#allocation48_spill] sm:$0xff]  ;;  %v6485_v29 = vld [vmem:[#allocation49_spill] sm:$0xff] }
 0x1ac   :  { %3431 = vmatpush1.bf16.msra.mxu0 %v6475_v5  ;;  %3495 = vmatpush1.bf16.msra.mxu1 %v6476_v23  ;;  %v6486_v5 = vld [vmem:[#allocation50_spill] sm:$0xff]  ;;  %v6487_v23 = vld [vmem:[#allocation51_spill] sm:$0xff] }
 0x1ad   :  { %3433 = vmatprep.subr.bf16.mxu0 %v6477_v12  ;;  %3497 = vmatprep.subr.bf16.mxu1 %v6478_v44  ;;  %v6488_v12 = vld [vmem:[#allocation52_spill] sm:$0xff]  ;;  %v6489_v44 = vld [vmem:[#allocation53_spill] sm:$0xff] }
 0x1b0   :  { %3435 = vmatpush1.bf16.msra.mxu0 %v6479_v3  ;;  %3499 = vmatpush1.bf16.msra.mxu1 %v6480_v63  ;;  %v6490_v3 = vld [vmem:[#allocation54_spill] sm:$0xff]  ;;  %v6491_v63 = vld [vmem:[#allocation55_spill] sm:$0xff] }
 0x1b1   :  { %3437 = vmatprep.subr.bf16.mxu0 %v6481_v19  ;;  %3501 = vmatprep.subr.bf16.mxu1 %v6482_v38  ;;  %v6492_v19 = vld [vmem:[#allocation56_spill] sm:$0xff]  ;;  %v6493_v38 = vld [vmem:[#allocation57_spill] sm:$0xff] }
 0x1b4   :  { %3439 = vmatpush1.bf16.msra.mxu0 %v6483_v53  ;;  %3503 = vmatpush1.bf16.msra.mxu1 %v6484_v56  ;;  %v6494_v53 = vld [vmem:[#allocation58_spill] sm:$0xff]  ;;  %v6495_v56 = vld [vmem:[#allocation59_spill] sm:$0xff] }
 0x1b5   :  { %3441 = vmatprep.subr.bf16.mxu0 %v6485_v29  ;;  %3505 = vmatprep.subr.bf16.mxu1 %v6486_v5  ;;  %v6496_v29 = vld [vmem:[#allocation60_spill] sm:$0xff]  ;;  %v6497_v5 = vld [vmem:[#allocation61_spill] sm:$0xff] }
 0x1b8   :  { %3443 = vmatpush1.bf16.msra.mxu0 %v6487_v23  ;;  %3507 = vmatpush1.bf16.msra.mxu1 %v6488_v12  ;;  %v6498_v23 = vld [vmem:[#allocation62_spill] sm:$0xff]  ;;  %v6499_v12 = vld [vmem:[#allocation63_spill] sm:$0xff] }
 0x1b9   :  { %3445 = vmatprep.subr.bf16.mxu0 %v6489_v44  ;;  %3509 = vmatprep.subr.bf16.mxu1 %v6490_v3  ;;  %v6500_v44 = vld [vmem:[#allocation64_spill] sm:$0xff]  ;;  %v6501_v3 = vld [vmem:[#allocation65_spill] sm:$0xff] }
 0x1bc   :  { %3447 = vmatpush1.bf16.msra.mxu0 %v6491_v63  ;;  %3511 = vmatpush1.bf16.msra.mxu1 %v6492_v19  ;;  %v6502_v63 = vld [vmem:[#allocation66_spill] sm:$0xff]  ;;  %v6503_v19 = vld [vmem:[#allocation67_spill] sm:$0xff] }
 0x1bd   :  { %3449 = vmatprep.subr.bf16.mxu0 %v6493_v38  ;;  %3513 = vmatprep.subr.bf16.mxu1 %v6494_v53  ;;  %v6504_v38 = vld [vmem:[#allocation68_spill] sm:$0xff]  ;;  %v6505_v53 = vld [vmem:[#allocation69_spill] sm:$0xff] }
 0x1c0   :  { %3451 = vmatpush1.bf16.msra.mxu0 %v6495_v56  ;;  %3515 = vmatpush1.bf16.msra.mxu1 %v6496_v29  ;;  %v6506_v56 = vld [vmem:[#allocation70_spill] sm:$0xff]  ;;  %v6507_v29 = vld [vmem:[#allocation71_spill] sm:$0xff] }
 0x1c1   :  { %3453 = vmatprep.subr.bf16.mxu0 %v6497_v5  ;;  %3517 = vmatprep.subr.bf16.mxu1 %v6498_v23  ;;  %v6508_v5 = vld [vmem:[#allocation72_spill] sm:$0xff]  ;;  %v6509_v23 = vld [vmem:[#allocation18_spill] sm:$0xff] }
 0x1c4   :  { %3455 = vmatpush1.bf16.msra.mxu0 %v6499_v12  ;;  %3519 = vmatpush1.bf16.msra.mxu1 %v6500_v44  ;;  %v6510_v12 = vld [vmem:[#allocation19_spill] sm:$0xff]  ;;  %v5564_v44 = vld [vmem:[#allocation11] sm:$0xff] }
 0x1c5   :  { %3457 = vmatprep.subr.bf16.mxu0 %v6501_v3  ;;  %3521 = vmatprep.subr.bf16.mxu1 %v6502_v63  ;;  %6511 = vst [vmem:[#allocation73_spill] sm:$0xff] %v5564_v44  ;;  %v5566_v3 = vld [vmem:[#allocation11 + $0x8] sm:$0xff] }
 0x1c6   :  { %6512 = vst [vmem:[#allocation74_spill] sm:$0xff] %v5566_v3 }
 0x1c8   :  { %3459 = vmatpush1.bf16.msra.mxu0 %v6503_v19  ;;  %3523 = vmatpush1.bf16.msra.mxu1 %v6504_v38 }
 0x1c9   :  { %3461 = vmatprep.subr.bf16.mxu0 %v6505_v53  ;;  %3525 = vmatprep.subr.bf16.mxu1 %v6506_v56 }
 0x1cc   :  { %3463 = vmatpush1.bf16.msra.mxu0 %v6507_v29  ;;  %3527 = vmatpush1.bf16.msra.mxu1 %v6508_v5  ;;  %v5570_v5 = vld [vmem:[#allocation11 + $0x18] sm:$0xff] }
 0x1cd   :  { %3529 = vmatprep.subr.bf16.mxu0 %v6509_v23  ;;  %3561 = vmatprep.subr.bf16.mxu1 %v6510_v12  ;;  %6513 = vst [vmem:[#allocation75_spill] sm:$0xff] %v5570_v5  ;;  %v5573_v23 = vld [vmem:[#allocation11 + $0x10] sm:$0xff] }
 0x1ce   :  { %6514 = vst [vmem:[#allocation76_spill] sm:$0xff] %v5573_v23 }
 0x242   :  { %v521_v63 = vpop.f32.mrb[2].mxu0  ;;  %v592_v19 = vpop.f32.mrb[2].mxu1 }
 0x243   :  { %v522_v38 = vadd.f32 %v521_v63, %v5564_v44  ;;  %v523_v36 = vpop.f32.mrb[3].mxu0  ;;  %v594_v53 = vpop.f32.mrb[3].mxu1  ;;  %v593_v11 = vadd.f32 %v592_v19, %v5573_v23 }
 0x244   :  { %v524_v56 = vadd.f32 %v523_v36, %v5566_v3  ;;  %v595_v12 = vadd.f32 %v594_v53, %v5570_v5  ;;  %v625_v5 = vld [vmem:[#allocation5 + $0x20] sm:$0xff] }
 0x245   :  { %v3099_v40 = vmul.f32 -1.442695, %v522_v38 }
 0x246   :  { %v3100_v29 = vmul.f32 -1.442695, %v524_v56  ;;  %v3101_v0 = vmul.f32 -1.442695, %v595_v12 }
 0x247   :  { %4704 = vpow2.f32 %v3099_v40 }
 0x248   :  { %4706 = vpow2.f32 %v3100_v29 }
 0x249   :  { %4708 = vpow2.f32 %v3101_v0 }
 0x24a   :  { %4710 = vtanh.f32 %v593_v11 }
 0x251   :  { %v4705_v57 = vpop.eup %4704 }
 0x252   :  { %v4707_v22 = vpop.eup %4706  ;;  %v601_v63 = vadd.f32 1.0, %v4705_v57 }
 0x253   :  { %v607_v44 = vadd.f32 1.0, %v4707_v22  ;;  %v4709_v36 = vpop.eup %4708 }
 0x254   :  { %4712 = vrcp.f32 %v601_v63  ;;  %v4711_v40 = vpop.eup %4710  ;;  %v614_v3 = vadd.f32 1.0, %v4709_v36 }
 0x255   :  { %4714 = vrcp.f32 %v607_v44 }
 0x256   :  { %4716 = vrcp.f32 %v614_v3 }
 0x25e   :  { %v4713_v38 = vpop.eup %4712 }
 0x25f   :  { %v4715_v56 = vpop.eup %4714  ;;  %v618_v29 = vmul.f32 %v4713_v38, %v4711_v40  ;;  %v627_v40 = vld [vmem:[#allocation5 + $0x30] sm:$0xff] }
 0x260   :  { %v617_v53 = vmul.f32 0.0, %v4715_v56  ;;  %v4717_v38 = vpop.eup %4716 }
 0x262   :  { %v5576_v12 = vadd.f32 %v618_v29, %v617_v53  ;;  %v696_v19 = vpop.f32.mrb[4].mxu0  ;;  %v767_v23 = vpop.f32.mrb[4].mxu1 }
 0x263   :  { %v772_v57 = vadd.f32 %v696_v19, %v625_v5  ;;  %v698_v0 = vpop.f32.mrb[5].mxu0  ;;  %v769_v11 = vpop.f32.mrb[5].mxu1  ;;  %v774_v53 = vadd.f32 %v767_v23, %v627_v40  ;;  %v6517_v40 = vld [vmem:[#allocation24_spill] sm:$0xff] }
 0x264   :  { %4718 = vtanh.f32 %v5576_v12  ;;  %v773_v22 = vadd.f32 %v698_v0, %v626_v13  ;;  %v775_v36 = vadd.f32 %v769_v11, %v628_v32 }
 0x265   :  { %v3102_v44 = vmul.f32 -1.442695, %v772_v57 }
 0x266   :  { %v3103_v63 = vmul.f32 -1.442695, %v773_v22  ;;  %v3104_v29 = vmul.f32 -1.442695, %v775_v36  ;;  %v6516_v36 = vld [vmem:[#allocation20_spill] sm:$0xff] }
 0x267   :  { %4720 = vpow2.f32 %v3102_v44 }
 0x268   :  { %4722 = vpow2.f32 %v3103_v63 }
 0x269   :  { %4724 = vpow2.f32 %v3104_v29  ;;  %v6520_v29 = vld [vmem:[#allocation23_spill] sm:$0xff] }
 0x26a   :  { %4726 = vtanh.f32 %v774_v53  ;;  %v6521_v53 = vld [vmem:[#allocation27_spill] sm:$0xff] }
 0x26e   :  { %v4719_v56 = vpop.eup %4718 }
 0x26f   :  { %v621_v54 = vmul.f32 %v4719_v56, %v4717_v38  ;;  %v6518_v38 = vld [vmem:[#allocation21_spill] sm:$0xff]  ;;  %v6519_v56 = vld [vmem:[#allocation26_spill] sm:$0xff] }
 0x271   :  { %v4721_v16 = vpop.eup %4720  ;;  %869 = vmatprep.mubr.f32.mxu0 %v621_v54  ;;  %940 = vmatprep.mubr.f32.mxu1 %v621_v54 }
 0x272   :  { %v4723_v3 = vpop.eup %4722  ;;  %v780_v5 = vadd.f32 1.0, %v4721_v16 }
 0x273   :  { %v786_v13 = vadd.f32 1.0, %v4723_v3  ;;  %v4725_v19 = vpop.eup %4724  ;;  %v6522_v3 = vld [vmem:[#allocation25_spill] sm:$0xff] }
 0x274   :  { %4728 = vrcp.f32 %v780_v5  ;;  %v4727_v57 = vpop.eup %4726  ;;  %v793_v22 = vadd.f32 1.0, %v4725_v19  ;;  %v6523_v5 = vld [vmem:[#allocation28_spill] sm:$0xff]  ;;  %v6525_v19 = vld [vmem:[#allocation30_spill] sm:$0xff] }
 0x275   :  { %4730 = vrcp.f32 %v786_v13  ;;  %v6524_v13 = vld [vmem:[#allocation29_spill] sm:$0xff] }
 0x276   :  { %4732 = vrcp.f32 %v793_v22  ;;  %v6530_v22 = vld [vmem:[#allocation35_spill] sm:$0xff] }
 0x27e   :  { %v4729_v0 = vpop.eup %4728 }
 0x27f   :  { %v4731_v32 = vpop.eup %4730  ;;  %v797_v11 = vmul.f32 %v4729_v0, %v4727_v57  ;;  %v6526_v57 = vld [vmem:[#allocation31_spill] sm:$0xff]  ;;  %v6527_v0 = vld [vmem:[#allocation32_spill] sm:$0xff] }
 0x280   :  { %v796_v44 = vmul.f32 %v4731_v32, %v5463_v39  ;;  %v4733_v54 = vpop.eup %4732  ;;  %v6515_v39 = vld [vmem:[#allocation22_spill] sm:$0xff]  ;;  %v6528_v32 = vld [vmem:[#allocation33_spill] sm:$0xff] }
 0x282   :  { %v5580_v23 = vadd.f32 %v797_v11, %v796_v44  ;;  %v6529_v11 = vld [vmem:[#allocation34_spill] sm:$0xff]  ;;  %v6531_v44 = vld [vmem:[#allocation36_spill] sm:$0xff] }
 0x284   :  { %4734 = vtanh.f32 %v5580_v23 }
 0x28e   :  { %v4735_v16 = vpop.eup %4734 }
 0x28f   :  { %v800_v63 = vmul.f32 %v4735_v16, %v4733_v54  ;;  %v6532_v54 = vld [vmem:[#allocation37_spill] sm:$0xff]  ;;  %v6533_v16 = vld [vmem:[#allocation38_spill] sm:$0xff] }
 0x291   :  { %870 = vmatmul.mubr.f32.vlgmr.msra.gmra.mrb[6].mxu0 %v800_v63  ;;  %941 = vmatmul.mubr.f32.vlgmr.msra.gmra.mrb[6].mxu1 %v800_v63 }
 0x292   :  { %3531 = vmatpush1.bf16.msra.mxu0 %v5171_v8  ;;  %3563 = vmatpush1.bf16.msra.mxu1 %v5184_v25 }
 0x293   :  { %3533 = vmatprep.subr.bf16.mxu0 %v5173_v9  ;;  %3565 = vmatprep.subr.bf16.mxu1 %v5194_v33 }
 0x294   :  { %1044 = vmatprep.mubr.f32.mxu0 %v6459_v4  ;;  %1115 = vmatprep.mubr.f32.mxu1 %v6459_v4 }
 0x296   :  { %3535 = vmatpush1.bf16.msra.mxu0 %v5177_v14  ;;  %3567 = vmatpush1.bf16.msra.mxu1 %v5196_v37 }
 0x297   :  { %3537 = vmatprep.subr.bf16.mxu0 %v5180_v17  ;;  %3569 = vmatprep.subr.bf16.mxu1 %v5202_v45 }
 0x29a   :  { %3539 = vmatpush1.bf16.msra.mxu0 %v5187_v26  ;;  %3571 = vmatpush1.bf16.msra.mxu1 %v5208_v48 }
 0x29b   :  { %3541 = vmatprep.subr.bf16.mxu0 %v5191_v30  ;;  %3573 = vmatprep.subr.bf16.mxu1 %v5211_v52 }
 0x29e   :  { %3543 = vmatpush1.bf16.msra.mxu0 %v5200_v42  ;;  %3575 = vmatpush1.bf16.msra.mxu1 %v5220_v62 }
 0x29f   :  { %3545 = vmatprep.subr.bf16.mxu0 %v5205_v46  ;;  %3577 = vmatprep.subr.bf16.mxu1 %v5223_v1 }
 0x2a2   :  { %3547 = vmatpush1.bf16.msra.mxu0 %v5214_v55  ;;  %3579 = vmatpush1.bf16.msra.mxu1 %v5232_v15 }
 0x2a3   :  { %3549 = vmatprep.subr.bf16.mxu0 %v5217_v58  ;;  %3581 = vmatprep.subr.bf16.mxu1 %v5235_v18 }
 0x2a6   :  { %3551 = vmatpush1.bf16.msra.mxu0 %v5226_v7  ;;  %3583 = vmatpush1.bf16.msra.mxu1 %v5244_v31 }
 0x2a7   :  { %3553 = vmatprep.subr.bf16.mxu0 %v5229_v10  ;;  %3585 = vmatprep.subr.bf16.mxu1 %v5247_v34 }
 0x2aa   :  { %3555 = vmatpush1.bf16.msra.mxu0 %v5238_v24  ;;  %3587 = vmatpush1.bf16.msra.mxu1 %v5254_v43 }
 0x2ab   :  { %3557 = vmatprep.subr.bf16.mxu0 %v5241_v27  ;;  %3589 = vmatprep.subr.bf16.mxu1 %v5259_v51 }
 0x2ae   :  { %3559 = vmatpush1.bf16.msra.mxu0 %v5250_v41  ;;  %3591 = vmatpush1.bf16.msra.mxu1 %v5265_v61 }
 0x2af   :  { %3593 = vmatprep.subr.bf16.mxu0 %v5256_v47  ;;  %3657 = vmatprep.subr.bf16.mxu1 %v5271_v6 }
 0x2b1   :  { %1045 = vmatmul.mubr.f32.vlgmr.msra.gmra.mrb[8].mxu0 %v800_v63  ;;  %1116 = vmatmul.mubr.f32.vlgmr.msra.gmra.mrb[8].mxu1 %v800_v63  ;;  %v6534_v63 = vld [vmem:[#allocation39_spill] sm:$0xff] }
 0x2b2   :  { %3595 = vmatpush1.bf16.msra.mxu0 %v5262_v60  ;;  %3659 = vmatpush1.bf16.msra.mxu1 %v5279_v21 }
 0x2b3   :  { %3597 = vmatprep.subr.bf16.mxu0 %v5268_v2  ;;  %3661 = vmatprep.subr.bf16.mxu1 %v5285_v35 }
 0x2b6   :  { %3599 = vmatpush1.bf16.msra.mxu0 %v5275_v20  ;;  %3663 = vmatpush1.bf16.msra.mxu1 %v5292_v50 }
 0x2b7   :  { %3601 = vmatprep.subr.bf16.mxu0 %v5282_v28  ;;  %3665 = vmatprep.subr.bf16.mxu1 %v5298_v59 }
 0x2ba   :  { %3603 = vmatpush1.bf16.msra.mxu0 %v5289_v49  ;;  %3667 = vmatpush1.bf16.msra.mxu1 %v6515_v39 }
 0x2bb   :  { %3605 = vmatprep.subr.bf16.mxu0 %v6516_v36  ;;  %3669 = vmatprep.subr.bf16.mxu1 %v6517_v40 }
 0x2be   :  { %3607 = vmatpush1.bf16.msra.mxu0 %v6518_v38  ;;  %3671 = vmatpush1.bf16.msra.mxu1 %v6519_v56 }
 0x2bf   :  { %3609 = vmatprep.subr.bf16.mxu0 %v6520_v29  ;;  %3673 = vmatprep.subr.bf16.mxu1 %v6521_v53  ;;  %v6571_v53 = vld [vmem:[#allocation74_spill] sm:$0xff] }
 0x2c2   :  { %3611 = vmatpush1.bf16.msra.mxu0 %v6522_v3  ;;  %3675 = vmatpush1.bf16.msra.mxu1 %v6523_v5  ;;  %v6570_v5 = vld [vmem:[#allocation73_spill] sm:$0xff] }
 0x2c3   :  { %3613 = vmatprep.subr.bf16.mxu0 %v6524_v13  ;;  %3677 = vmatprep.subr.bf16.mxu1 %v6525_v19  ;;  %v6535_v13 = vld [vmem:[#allocation40_spill] sm:$0xff]  ;;  %v6536_v19 = vld [vmem:[#allocation41_spill] sm:$0xff] }
 0x2c6   :  { %3615 = vmatpush1.bf16.msra.mxu0 %v6526_v57  ;;  %3679 = vmatpush1.bf16.msra.mxu1 %v6527_v0  ;;  %v6537_v57 = vld [vmem:[#allocation42_spill] sm:$0xff]  ;;  %v6538_v0 = vld [vmem:[#allocation43_spill] sm:$0xff] }
 0x2c7   :  { %3617 = vmatprep.subr.bf16.mxu0 %v6528_v32  ;;  %3681 = vmatprep.subr.bf16.mxu1 %v6529_v11  ;;  %v6539_v32 = vld [vmem:[#allocation44_spill] sm:$0xff]  ;;  %v6540_v11 = vld [vmem:[#allocation45_spill] sm:$0xff] }
 0x2ca   :  { %3619 = vmatpush1.bf16.msra.mxu0 %v6530_v22  ;;  %3683 = vmatpush1.bf16.msra.mxu1 %v6531_v44  ;;  %v6541_v22 = vld [vmem:[#allocation46_spill] sm:$0xff]  ;;  %v6542_v44 = vld [vmem:[#allocation47_spill] sm:$0xff] }
 0x2cb   :  { %3621 = vmatprep.subr.bf16.mxu0 %v6532_v54  ;;  %3685 = vmatprep.subr.bf16.mxu1 %v6533_v16  ;;  %v6543_v54 = vld [vmem:[#allocation48_spill] sm:$0xff]  ;;  %v6544_v16 = vld [vmem:[#allocation49_spill] sm:$0xff] }
 0x2ce   :  { %3623 = vmatpush1.bf16.msra.mxu0 %v6534_v63  ;;  %3687 = vmatpush1.bf16.msra.mxu1 %v6535_v13  ;;  %v6545_v63 = vld [vmem:[#allocation50_spill] sm:$0xff]  ;;  %v6546_v13 = vld [vmem:[#allocation51_spill] sm:$0xff] }
 0x2cf   :  { %3625 = vmatprep.subr.bf16.mxu0 %v6536_v19  ;;  %3689 = vmatprep.subr.bf16.mxu1 %v6537_v57  ;;  %v6547_v19 = vld [vmem:[#allocation52_spill] sm:$0xff]  ;;  %v6548_v57 = vld [vmem:[#allocation53_spill] sm:$0xff] }
 0x2d2   :  { %3627 = vmatpush1.bf16.msra.mxu0 %v6538_v0  ;;  %3691 = vmatpush1.bf16.msra.mxu1 %v6539_v32  ;;  %v6549_v0 = vld [vmem:[#allocation54_spill] sm:$0xff]  ;;  %v6550_v32 = vld [vmem:[#allocation55_spill] sm:$0xff] }
 0x2d3   :  { %3629 = vmatprep.subr.bf16.mxu0 %v6540_v11  ;;  %3693 = vmatprep.subr.bf16.mxu1 %v6541_v22  ;;  %v6551_v11 = vld [vmem:[#allocation56_spill] sm:$0xff]  ;;  %v6552_v22 = vld [vmem:[#allocation57_spill] sm:$0xff] }
 0x2d6   :  { %3631 = vmatpush1.bf16.msra.mxu0 %v6542_v44  ;;  %3695 = vmatpush1.bf16.msra.mxu1 %v6543_v54  ;;  %v6553_v44 = vld [vmem:[#allocation58_spill] sm:$0xff]  ;;  %v6554_v54 = vld [vmem:[#allocation59_spill] sm:$0xff] }
 0x2d7   :  { %3633 = vmatprep.subr.bf16.mxu0 %v6544_v16  ;;  %3697 = vmatprep.subr.bf16.mxu1 %v6545_v63  ;;  %v6555_v16 = vld [vmem:[#allocation60_spill] sm:$0xff]  ;;  %v6556_v63 = vld [vmem:[#allocation61_spill] sm:$0xff] }
 0x2da   :  { %3635 = vmatpush1.bf16.msra.mxu0 %v6546_v13  ;;  %3699 = vmatpush1.bf16.msra.mxu1 %v6547_v19  ;;  %v6557_v13 = vld [vmem:[#allocation62_spill] sm:$0xff]  ;;  %v6558_v19 = vld [vmem:[#allocation63_spill] sm:$0xff] }
 0x2db   :  { %3637 = vmatprep.subr.bf16.mxu0 %v6548_v57  ;;  %3701 = vmatprep.subr.bf16.mxu1 %v6549_v0  ;;  %v6559_v57 = vld [vmem:[#allocation64_spill] sm:$0xff]  ;;  %v6560_v0 = vld [vmem:[#allocation65_spill] sm:$0xff] }
 0x2de   :  { %3639 = vmatpush1.bf16.msra.mxu0 %v6550_v32  ;;  %3703 = vmatpush1.bf16.msra.mxu1 %v6551_v11  ;;  %v6561_v32 = vld [vmem:[#allocation66_spill] sm:$0xff]  ;;  %v6562_v11 = vld [vmem:[#allocation67_spill] sm:$0xff] }
 0x2df   :  { %3641 = vmatprep.subr.bf16.mxu0 %v6552_v22  ;;  %3705 = vmatprep.subr.bf16.mxu1 %v6553_v44  ;;  %v6563_v22 = vld [vmem:[#allocation68_spill] sm:$0xff]  ;;  %v6564_v44 = vld [vmem:[#allocation69_spill] sm:$0xff] }
 0x2e2   :  { %3643 = vmatpush1.bf16.msra.mxu0 %v6554_v54  ;;  %3707 = vmatpush1.bf16.msra.mxu1 %v6555_v16  ;;  %v6565_v54 = vld [vmem:[#allocation70_spill] sm:$0xff]  ;;  %v6566_v16 = vld [vmem:[#allocation71_spill] sm:$0xff] }
 0x2e3   :  { %3645 = vmatprep.subr.bf16.mxu0 %v6556_v63  ;;  %3709 = vmatprep.subr.bf16.mxu1 %v6557_v13  ;;  %v6567_v63 = vld [vmem:[#allocation72_spill] sm:$0xff]  ;;  %v6568_v13 = vld [vmem:[#allocation18_spill] sm:$0xff] }
 0x2e6   :  { %3647 = vmatpush1.bf16.msra.mxu0 %v6558_v19  ;;  %3711 = vmatpush1.bf16.msra.mxu1 %v6559_v57  ;;  %v6569_v19 = vld [vmem:[#allocation19_spill] sm:$0xff] }
 0x2e7   :  { %3649 = vmatprep.subr.bf16.mxu0 %v6560_v0  ;;  %3713 = vmatprep.subr.bf16.mxu1 %v6561_v32 }
 0x2ea   :  { %3651 = vmatpush1.bf16.msra.mxu0 %v6562_v11  ;;  %3715 = vmatpush1.bf16.msra.mxu1 %v6563_v22 }
 0x2eb   :  { %3653 = vmatprep.subr.bf16.mxu0 %v6564_v44  ;;  %3717 = vmatprep.subr.bf16.mxu1 %v6565_v54  ;;  %v6572_v54 = vld [vmem:[#allocation75_spill] sm:$0xff] }
 0x2ee   :  { %3655 = vmatpush1.bf16.msra.mxu0 %v6566_v16  ;;  %3719 = vmatpush1.bf16.msra.mxu1 %v6567_v63  ;;  %v6573_v63 = vld [vmem:[#allocation76_spill] sm:$0xff] }
 0x2ef   :  { %3721 = vmatprep.subr.bf16.mxu0 %v6568_v13  ;;  %3753 = vmatprep.subr.bf16.mxu1 %v6569_v19 }
 0x364   :  { %v871_v57 = vpop.f32.mrb[6].mxu0  ;;  %v942_v0 = vpop.f32.mrb[6].mxu1 }
 0x365   :  { %v872_v32 = vadd.f32 %v871_v57, %v6570_v5  ;;  %v873_v3 = vpop.f32.mrb[7].mxu0  ;;  %v944_v11 = vpop.f32.mrb[7].mxu1  ;;  %v943_v38 = vadd.f32 %v942_v0, %v6573_v63 }
 0x366   :  { %v874_v22 = vadd.f32 %v873_v3, %v6571_v53  ;;  %v945_v16 = vadd.f32 %v944_v11, %v6572_v54  ;;  %v975_v11 = vld [vmem:[#allocation5 + $0x40] sm:$0xff] }
 0x367   :  { %v3105_v29 = vmul.f32 -1.442695, %v872_v32 }
 0x368   :  { %v3106_v44 = vmul.f32 -1.442695, %v874_v22  ;;  %v3107_v56 = vmul.f32 -1.442695, %v945_v16  ;;  %v976_v16 = vld [vmem:[#allocation5 + $0x48] sm:$0xff] }
 0x369   :  { %4736 = vpow2.f32 %v3105_v29 }
 0x36a   :  { %4738 = vpow2.f32 %v3106_v44 }
 0x36b   :  { %4740 = vpow2.f32 %v3107_v56 }
 0x36c   :  { %4742 = vtanh.f32 %v943_v38 }
 0x373   :  { %v4737_v13 = vpop.eup %4736 }
 0x374   :  { %v4739_v40 = vpop.eup %4738  ;;  %v951_v19 = vadd.f32 1.0, %v4737_v13 }
 0x375   :  { %v957_v36 = vadd.f32 1.0, %v4739_v40  ;;  %v4741_v57 = vpop.eup %4740 }
 0x376   :  { %4744 = vrcp.f32 %v951_v19  ;;  %v4743_v5 = vpop.eup %4742  ;;  %v964_v29 = vadd.f32 1.0, %v4741_v57 }
 0x377   :  { %4746 = vrcp.f32 %v957_v36 }
 0x378   :  { %4748 = vrcp.f32 %v964_v29 }
 0x380   :  { %v4745_v3 = vpop.eup %4744 }
 0x381   :  { %v4747_v32 = vpop.eup %4746  ;;  %v968_v22 = vmul.f32 %v4745_v3, %v4743_v5  ;;  %v978_v5 = vld [vmem:[#allocation5 + $0x58] sm:$0xff] }
 0x382   :  { %v967_v44 = vmul.f32 %v4747_v32, %v5576_v12  ;;  %v977_v12 = vld [vmem:[#allocation5 + $0x50] sm:$0xff]  ;;  %v4749_v3 = vpop.eup %4748 }
 0x384   :  { %v1046_v54 = vpop.f32.mrb[8].mxu0  ;;  %v1117_v0 = vpop.f32.mrb[8].mxu1  ;;  %v5686_v63 = vadd.f32 %v968_v22, %v967_v44 }
 0x385   :  { %v1122_v56 = vadd.f32 %v1046_v54, %v975_v11  ;;  %v1048_v38 = vpop.f32.mrb[9].mxu0  ;;  %v1119_v40 = vpop.f32.mrb[9].mxu1  ;;  %v1124_v39 = vadd.f32 %v1117_v0, %v977_v12  ;;  %v6576_v12 = vld [vmem:[#allocation24_spill] sm:$0xff] }
 0x386   :  { %v1123_v13 = vadd.f32 %v1048_v38, %v976_v16  ;;  %4750 = vtanh.f32 %v5686_v63  ;;  %v1125_v57 = vadd.f32 %v1119_v40, %v978_v5 }
 0x387   :  { %v3108_v36 = vmul.f32 -1.442695, %v1122_v56 }
 0x388   :  { %v3109_v19 = vmul.f32 -1.442695, %v1123_v13  ;;  %v3110_v53 = vmul.f32 -1.442695, %v1125_v57 }
 0x389   :  { %4752 = vpow2.f32 %v3108_v36 }
 0x38a   :  { %4754 = vpow2.f32 %v3109_v19 }
 0x38b   :  { %4756 = vpow2.f32 %v3110_v53 }
 0x38c   :  { %4758 = vtanh.f32 %v1124_v39  ;;  %v6575_v39 = vld [vmem:[#allocation20_spill] sm:$0xff] }
 0x390   :  { %v4751_v32 = vpop.eup %4750 }
 0x391   :  { %v971_v22 = vmul.f32 %v4751_v32, %v4749_v3  ;;  %v6577_v3 = vld [vmem:[#allocation21_spill] sm:$0xff]  ;;  %v6578_v32 = vld [vmem:[#allocation26_spill] sm:$0xff] }
 0x393   :  { %v4753_v44 = vpop.eup %4752  ;;  %1219 = vmatprep.mubr.f32.mxu0 %v971_v22  ;;  %1290 = vmatprep.mubr.f32.mxu1 %v971_v22  ;;  %v6579_v22 = vld [vmem:[#allocation23_spill] sm:$0xff] }
 0x394   :  { %v4755_v54 = vpop.eup %4754  ;;  %v1130_v29 = vadd.f32 1.0, %v4753_v44  ;;  %v6580_v44 = vld [vmem:[#allocation27_spill] sm:$0xff] }
 0x395   :  { %v1136_v11 = vadd.f32 1.0, %v4755_v54  ;;  %v4757_v16 = vpop.eup %4756  ;;  %v6581_v54 = vld [vmem:[#allocation25_spill] sm:$0xff] }
 0x396   :  { %4760 = vrcp.f32 %v1130_v29  ;;  %v4759_v56 = vpop.eup %4758  ;;  %v1143_v36 = vadd.f32 1.0, %v4757_v16  ;;  %v6582_v29 = vld [vmem:[#allocation28_spill] sm:$0xff]  ;;  %v6584_v16 = vld [vmem:[#allocation30_spill] sm:$0xff] }
 0x397   :  { %4762 = vrcp.f32 %v1136_v11  ;;  %v6583_v11 = vld [vmem:[#allocation29_spill] sm:$0xff] }
 0x398   :  { %4764 = vrcp.f32 %v1143_v36  ;;  %v6589_v36 = vld [vmem:[#allocation35_spill] sm:$0xff] }
 0x3a0   :  { %v4761_v38 = vpop.eup %4760 }
 0x3a1   :  { %v4763_v40 = vpop.eup %4762  ;;  %v1147_v13 = vmul.f32 %v4761_v38, %v4759_v56  ;;  %v6585_v56 = vld [vmem:[#allocation31_spill] sm:$0xff]  ;;  %v6586_v38 = vld [vmem:[#allocation32_spill] sm:$0xff] }
 0x3a2   :  { %v1146_v19 = vmul.f32 %v4763_v40, %v5580_v23  ;;  %v4765_v5 = vpop.eup %4764  ;;  %v6574_v23 = vld [vmem:[#allocation22_spill] sm:$0xff]  ;;  %v6587_v40 = vld [vmem:[#allocation33_spill] sm:$0xff] }
 0x3a4   :  { %v5690_v0 = vadd.f32 %v1147_v13, %v1146_v19  ;;  %v6588_v13 = vld [vmem:[#allocation34_spill] sm:$0xff]  ;;  %v6590_v19 = vld [vmem:[#allocation36_spill] sm:$0xff] }
 0x3a6   :  { %4766 = vtanh.f32 %v5690_v0 }
 0x3b0   :  { %v4767_v57 = vpop.eup %4766 }
 0x3b1   :  { %v1150_v53 = vmul.f32 %v4767_v57, %v4765_v5  ;;  %v6591_v5 = vld [vmem:[#allocation37_spill] sm:$0xff]  ;;  %v6592_v57 = vld [vmem:[#allocation38_spill] sm:$0xff] }
 0x3b3   :  { %1220 = vmatmul.mubr.f32.vlgmr.msra.gmra.mrb[10].mxu0 %v1150_v53  ;;  %1291 = vmatmul.mubr.f32.vlgmr.msra.gmra.mrb[10].mxu1 %v1150_v53 }
 0x3b4   :  { %3723 = vmatpush1.bf16.msra.mxu0 %v5171_v8  ;;  %3755 = vmatpush1.bf16.msra.mxu1 %v5184_v25 }
 0x3b5   :  { %3725 = vmatprep.subr.bf16.mxu0 %v5173_v9  ;;  %3757 = vmatprep.subr.bf16.mxu1 %v5194_v33 }
 0x3b6   :  { %1394 = vmatprep.mubr.f32.mxu0 %v6459_v4  ;;  %1465 = vmatprep.mubr.f32.mxu1 %v6459_v4 }
 0x3b8   :  { %3727 = vmatpush1.bf16.msra.mxu0 %v5177_v14  ;;  %3759 = vmatpush1.bf16.msra.mxu1 %v5196_v37 }
 0x3b9   :  { %3729 = vmatprep.subr.bf16.mxu0 %v5180_v17  ;;  %3761 = vmatprep.subr.bf16.mxu1 %v5202_v45 }
 0x3bc   :  { %3731 = vmatpush1.bf16.msra.mxu0 %v5187_v26  ;;  %3763 = vmatpush1.bf16.msra.mxu1 %v5208_v48 }
 0x3bd   :  { %3733 = vmatprep.subr.bf16.mxu0 %v5191_v30  ;;  %3765 = vmatprep.subr.bf16.mxu1 %v5211_v52 }
 0x3c0   :  { %3735 = vmatpush1.bf16.msra.mxu0 %v5200_v42  ;;  %3767 = vmatpush1.bf16.msra.mxu1 %v5220_v62 }
 0x3c1   :  { %3737 = vmatprep.subr.bf16.mxu0 %v5205_v46  ;;  %3769 = vmatprep.subr.bf16.mxu1 %v5223_v1 }
 0x3c4   :  { %3739 = vmatpush1.bf16.msra.mxu0 %v5214_v55  ;;  %3771 = vmatpush1.bf16.msra.mxu1 %v5232_v15 }
 0x3c5   :  { %3741 = vmatprep.subr.bf16.mxu0 %v5217_v58  ;;  %3773 = vmatprep.subr.bf16.mxu1 %v5235_v18 }
 0x3c8   :  { %3743 = vmatpush1.bf16.msra.mxu0 %v5226_v7  ;;  %3775 = vmatpush1.bf16.msra.mxu1 %v5244_v31 }
 0x3c9   :  { %3745 = vmatprep.subr.bf16.mxu0 %v5229_v10  ;;  %3777 = vmatprep.subr.bf16.mxu1 %v5247_v34 }
 0x3cc   :  { %3747 = vmatpush1.bf16.msra.mxu0 %v5238_v24  ;;  %3779 = vmatpush1.bf16.msra.mxu1 %v5254_v43 }
 0x3cd   :  { %3749 = vmatprep.subr.bf16.mxu0 %v5241_v27  ;;  %3781 = vmatprep.subr.bf16.mxu1 %v5259_v51 }
 0x3d0   :  { %3751 = vmatpush1.bf16.msra.mxu0 %v5250_v41  ;;  %3783 = vmatpush1.bf16.msra.mxu1 %v5265_v61 }
 0x3d1   :  { %3785 = vmatprep.subr.bf16.mxu0 %v5256_v47  ;;  %3849 = vmatprep.subr.bf16.mxu1 %v5271_v6 }
 0x3d3   :  { %1395 = vmatmul.mubr.f32.vlgmr.msra.gmra.mrb[12].mxu0 %v1150_v53  ;;  %1466 = vmatmul.mubr.f32.vlgmr.msra.gmra.mrb[12].mxu1 %v1150_v53  ;;  %v6593_v53 = vld [vmem:[#allocation39_spill] sm:$0xff] }
 0x3d4   :  { %3787 = vmatpush1.bf16.msra.mxu0 %v5262_v60  ;;  %3851 = vmatpush1.bf16.msra.mxu1 %v5279_v21 }
 0x3d5   :  { %3789 = vmatprep.subr.bf16.mxu0 %v5268_v2  ;;  %3853 = vmatprep.subr.bf16.mxu1 %v5285_v35 }
 0x3d8   :  { %3791 = vmatpush1.bf16.msra.mxu0 %v5275_v20  ;;  %3855 = vmatpush1.bf16.msra.mxu1 %v5292_v50 }
 0x3d9   :  { %3793 = vmatprep.subr.bf16.mxu0 %v5282_v28  ;;  %3857 = vmatprep.subr.bf16.mxu1 %v5298_v59 }
 0x3dc   :  { %3795 = vmatpush1.bf16.msra.mxu0 %v5289_v49  ;;  %3859 = vmatpush1.bf16.msra.mxu1 %v6574_v23 }
 0x3dd   :  { %3797 = vmatprep.subr.bf16.mxu0 %v6575_v39  ;;  %3861 = vmatprep.subr.bf16.mxu1 %v6576_v12 }
 0x3e0   :  { %3799 = vmatpush1.bf16.msra.mxu0 %v6577_v3  ;;  %3863 = vmatpush1.bf16.msra.mxu1 %v6578_v32 }
 0x3e1   :  { %3801 = vmatprep.subr.bf16.mxu0 %v6579_v22  ;;  %3865 = vmatprep.subr.bf16.mxu1 %v6580_v44  ;;  %v6630_v44 = vld [vmem:[#allocation74_spill] sm:$0xff] }
 0x3e4   :  { %3803 = vmatpush1.bf16.msra.mxu0 %v6581_v54  ;;  %3867 = vmatpush1.bf16.msra.mxu1 %v6582_v29  ;;  %v6629_v29 = vld [vmem:[#allocation73_spill] sm:$0xff] }
 0x3e5   :  { %3805 = vmatprep.subr.bf16.mxu0 %v6583_v11  ;;  %3869 = vmatprep.subr.bf16.mxu1 %v6584_v16  ;;  %v6594_v11 = vld [vmem:[#allocation40_spill] sm:$0xff]  ;;  %v6595_v16 = vld [vmem:[#allocation41_spill] sm:$0xff] }
 0x3e8   :  { %3807 = vmatpush1.bf16.msra.mxu0 %v6585_v56  ;;  %3871 = vmatpush1.bf16.msra.mxu1 %v6586_v38  ;;  %v6596_v56 = vld [vmem:[#allocation42_spill] sm:$0xff]  ;;  %v6597_v38 = vld [vmem:[#allocation43_spill] sm:$0xff] }
 0x3e9   :  { %3809 = vmatprep.subr.bf16.mxu0 %v6587_v40  ;;  %3873 = vmatprep.subr.bf16.mxu1 %v6588_v13  ;;  %v6598_v40 = vld [vmem:[#allocation44_spill] sm:$0xff]  ;;  %v6599_v13 = vld [vmem:[#allocation45_spill] sm:$0xff] }
 0x3ec   :  { %3811 = vmatpush1.bf16.msra.mxu0 %v6589_v36  ;;  %3875 = vmatpush1.bf16.msra.mxu1 %v6590_v19  ;;  %v6600_v36 = vld [vmem:[#allocation46_spill] sm:$0xff]  ;;  %v6601_v19 = vld [vmem:[#allocation47_spill] sm:$0xff] }
 0x3ed   :  { %3813 = vmatprep.subr.bf16.mxu0 %v6591_v5  ;;  %3877 = vmatprep.subr.bf16.mxu1 %v6592_v57  ;;  %v6602_v5 = vld [vmem:[#allocation48_spill] sm:$0xff]  ;;  %v6603_v57 = vld [vmem:[#allocation49_spill] sm:$0xff] }
 0x3f0   :  { %3815 = vmatpush1.bf16.msra.mxu0 %v6593_v53  ;;  %3879 = vmatpush1.bf16.msra.mxu1 %v6594_v11  ;;  %v6604_v53 = vld [vmem:[#allocation50_spill] sm:$0xff]  ;;  %v6605_v11 = vld [vmem:[#allocation51_spill] sm:$0xff] }
 0x3f1   :  { %3817 = vmatprep.subr.bf16.mxu0 %v6595_v16  ;;  %3881 = vmatprep.subr.bf16.mxu1 %v6596_v56  ;;  %v6606_v16 = vld [vmem:[#allocation52_spill] sm:$0xff]  ;;  %v6607_v56 = vld [vmem:[#allocation53_spill] sm:$0xff] }
 0x3f4   :  { %3819 = vmatpush1.bf16.msra.mxu0 %v6597_v38  ;;  %3883 = vmatpush1.bf16.msra.mxu1 %v6598_v40  ;;  %v6608_v38 = vld [vmem:[#allocation54_spill] sm:$0xff]  ;;  %v6609_v40 = vld [vmem:[#allocation55_spill] sm:$0xff] }
 0x3f5   :  { %3821 = vmatprep.subr.bf16.mxu0 %v6599_v13  ;;  %3885 = vmatprep.subr.bf16.mxu1 %v6600_v36  ;;  %v6610_v13 = vld [vmem:[#allocation56_spill] sm:$0xff]  ;;  %v6611_v36 = vld [vmem:[#allocation57_spill] sm:$0xff] }
 0x3f8   :  { %3823 = vmatpush1.bf16.msra.mxu0 %v6601_v19  ;;  %3887 = vmatpush1.bf16.msra.mxu1 %v6602_v5  ;;  %v6612_v19 = vld [vmem:[#allocation58_spill] sm:$0xff]  ;;  %v6613_v5 = vld [vmem:[#allocation59_spill] sm:$0xff] }
 0x3f9   :  { %3825 = vmatprep.subr.bf16.mxu0 %v6603_v57  ;;  %3889 = vmatprep.subr.bf16.mxu1 %v6604_v53  ;;  %v6614_v57 = vld [vmem:[#allocation60_spill] sm:$0xff]  ;;  %v6615_v53 = vld [vmem:[#allocation61_spill] sm:$0xff] }
 0x3fc   :  { %3827 = vmatpush1.bf16.msra.mxu0 %v6605_v11  ;;  %3891 = vmatpush1.bf16.msra.mxu1 %v6606_v16  ;;  %v6616_v11 = vld [vmem:[#allocation62_spill] sm:$0xff]  ;;  %v6617_v16 = vld [vmem:[#allocation63_spill] sm:$0xff] }
 0x3fd   :  { %3829 = vmatprep.subr.bf16.mxu0 %v6607_v56  ;;  %3893 = vmatprep.subr.bf16.mxu1 %v6608_v38  ;;  %v6618_v56 = vld [vmem:[#allocation64_spill] sm:$0xff]  ;;  %v6619_v38 = vld [vmem:[#allocation65_spill] sm:$0xff] }
 0x400   :  { %3831 = vmatpush1.bf16.msra.mxu0 %v6609_v40  ;;  %3895 = vmatpush1.bf16.msra.mxu1 %v6610_v13  ;;  %v6620_v40 = vld [vmem:[#allocation66_spill] sm:$0xff]  ;;  %v6621_v13 = vld [vmem:[#allocation67_spill] sm:$0xff] }
 0x401   :  { %3833 = vmatprep.subr.bf16.mxu0 %v6611_v36  ;;  %3897 = vmatprep.subr.bf16.mxu1 %v6612_v19  ;;  %v6622_v36 = vld [vmem:[#allocation68_spill] sm:$0xff]  ;;  %v6623_v19 = vld [vmem:[#allocation69_spill] sm:$0xff] }
 0x404   :  { %3835 = vmatpush1.bf16.msra.mxu0 %v6613_v5  ;;  %3899 = vmatpush1.bf16.msra.mxu1 %v6614_v57  ;;  %v6624_v5 = vld [vmem:[#allocation70_spill] sm:$0xff]  ;;  %v6625_v57 = vld [vmem:[#allocation71_spill] sm:$0xff] }
 0x405   :  { %3837 = vmatprep.subr.bf16.mxu0 %v6615_v53  ;;  %3901 = vmatprep.subr.bf16.mxu1 %v6616_v11  ;;  %v6626_v53 = vld [vmem:[#allocation72_spill] sm:$0xff]  ;;  %v6627_v11 = vld [vmem:[#allocation18_spill] sm:$0xff] }
 0x408   :  { %3839 = vmatpush1.bf16.msra.mxu0 %v6617_v16  ;;  %3903 = vmatpush1.bf16.msra.mxu1 %v6618_v56  ;;  %v6628_v16 = vld [vmem:[#allocation19_spill] sm:$0xff] }
 0x409   :  { %3841 = vmatprep.subr.bf16.mxu0 %v6619_v38  ;;  %3905 = vmatprep.subr.bf16.mxu1 %v6620_v40 }
 0x40c   :  { %3843 = vmatpush1.bf16.msra.mxu0 %v6621_v13  ;;  %3907 = vmatpush1.bf16.msra.mxu1 %v6622_v36 }
 0x40d   :  { %3845 = vmatprep.subr.bf16.mxu0 %v6623_v19  ;;  %3909 = vmatprep.subr.bf16.mxu1 %v6624_v5  ;;  %v6631_v5 = vld [vmem:[#allocation75_spill] sm:$0xff] }
 0x410   :  { %3847 = vmatpush1.bf16.msra.mxu0 %v6625_v57  ;;  %3911 = vmatpush1.bf16.msra.mxu1 %v6626_v53  ;;  %v6632_v53 = vld [vmem:[#allocation76_spill] sm:$0xff] }
 0x411   :  { %3913 = vmatprep.subr.bf16.mxu0 %v6627_v11  ;;  %3945 = vmatprep.subr.bf16.mxu1 %v6628_v16 }
 0x486   :  { %v1221_v56 = vpop.f32.mrb[10].mxu0  ;;  %v1292_v38 = vpop.f32.mrb[10].mxu1 }
 0x487   :  { %v1222_v40 = vadd.f32 %v1221_v56, %v6629_v29  ;;  %v1223_v54 = vpop.f32.mrb[11].mxu0  ;;  %v1294_v13 = vpop.f32.mrb[11].mxu1  ;;  %v1293_v3 = vadd.f32 %v1292_v38, %v6632_v53  ;;  %v1328_v53 = vld [vmem:[#allocation5 + $0x78] sm:$0xff] }
 0x488   :  { %v1224_v36 = vadd.f32 %v1223_v54, %v6630_v44  ;;  %v1295_v57 = vadd.f32 %v1294_v13, %v6631_v5  ;;  %v1325_v13 = vld [vmem:[#allocation5 + $0x60] sm:$0xff] }
 0x489   :  { %v3111_v22 = vmul.f32 -1.442695, %v1222_v40 }
 0x48a   :  { %v3112_v19 = vmul.f32 -1.442695, %v1224_v36  ;;  %v3113_v32 = vmul.f32 -1.442695, %v1295_v57 }
 0x48b   :  { %4768 = vpow2.f32 %v3111_v22 }
 0x48c   :  { %4770 = vpow2.f32 %v3112_v19  ;;  %v1326_v19 = vld [vmem:[#allocation5 + $0x68] sm:$0xff] }
 0x48d   :  { %4772 = vpow2.f32 %v3113_v32 }
 0x48e   :  { %4774 = vtanh.f32 %v1293_v3 }
 0x495   :  { %v4769_v11 = vpop.eup %4768 }
 0x496   :  { %v4771_v12 = vpop.eup %4770  ;;  %v1301_v16 = vadd.f32 1.0, %v4769_v11 }
 0x497   :  { %v1307_v39 = vadd.f32 1.0, %v4771_v12  ;;  %v4773_v29 = vpop.eup %4772 }
 0x498   :  { %4776 = vrcp.f32 %v1301_v16  ;;  %v4775_v56 = vpop.eup %4774  ;;  %v1314_v22 = vadd.f32 1.0, %v4773_v29 }
 0x499   :  { %4778 = vrcp.f32 %v1307_v39 }
 0x49a   :  { %4780 = vrcp.f32 %v1314_v22 }
 0x4a2   :  { %v4777_v44 = vpop.eup %4776 }
 0x4a3   :  { %v4779_v54 = vpop.eup %4778  ;;  %v1318_v40 = vmul.f32 %v4777_v44, %v4775_v56 }
 0x4a4   :  { %v1317_v36 = vmul.f32 %v4779_v54, %v5686_v63  ;;  %v1327_v63 = vld [vmem:[#allocation5 + $0x70] sm:$0xff]  ;;  %v4781_v56 = vpop.eup %4780 }
 0x4a6   :  { %v1396_v5 = vpop.f32.mrb[12].mxu0  ;;  %v1467_v38 = vpop.f32.mrb[12].mxu1  ;;  %v5796_v57 = vadd.f32 %v1318_v40, %v1317_v36 }
 0x4a7   :  { %v1472_v32 = vadd.f32 %v1396_v5, %v1325_v13  ;;  %v1398_v3 = vpop.f32.mrb[13].mxu0  ;;  %v1469_v12 = vpop.f32.mrb[13].mxu1  ;;  %v1474_v23 = vadd.f32 %v1467_v38, %v1327_v63 }
 0x4a8   :  { %v1473_v11 = vadd.f32 %v1398_v3, %v1326_v19  ;;  %4782 = vtanh.f32 %v5796_v57  ;;  %v1475_v29 = vadd.f32 %v1469_v12, %v1328_v53 }
 0x4a9   :  { %v3114_v39 = vmul.f32 -1.442695, %v1472_v32 }
 0x4aa   :  { %v3115_v16 = vmul.f32 -1.442695, %v1473_v11  ;;  %v3116_v54 = vmul.f32 -1.442695, %v1475_v29 }
 0x4ab   :  { %4784 = vpow2.f32 %v3114_v39 }
 0x4ac   :  { %4786 = vpow2.f32 %v3115_v16 }
 0x4ad   :  { %4788 = vpow2.f32 %v3116_v54  ;;  %v6637_v54 = vld [vmem:[#allocation26_spill] sm:$0xff] }
 0x4ae   :  { %4790 = vtanh.f32 %v1474_v23  ;;  %v6634_v23 = vld [vmem:[#allocation20_spill] sm:$0xff] }
 0x4b2   :  { %v4783_v44 = vpop.eup %4782 }
 0x4b3   :  { %v1321_v40 = vmul.f32 %v4783_v44, %v4781_v56  ;;  %v6635_v56 = vld [vmem:[#allocation24_spill] sm:$0xff]  ;;  %v6636_v44 = vld [vmem:[#allocation21_spill] sm:$0xff] }
 0x4b5   :  { %v4785_v36 = vpop.eup %4784  ;;  %1569 = vmatprep.mubr.f32.mxu0 %v1321_v40  ;;  %1640 = vmatprep.mubr.f32.mxu1 %v1321_v40  ;;  %v6638_v40 = vld [vmem:[#allocation23_spill] sm:$0xff] }
 0x4b6   :  { %v4787_v22 = vpop.eup %4786  ;;  %v1480_v13 = vadd.f32 1.0, %v4785_v36  ;;  %v6639_v36 = vld [vmem:[#allocation27_spill] sm:$0xff] }
 0x4b7   :  { %v1486_v19 = vadd.f32 1.0, %v4787_v22  ;;  %v4789_v5 = vpop.eup %4788  ;;  %v6640_v22 = vld [vmem:[#allocation25_spill] sm:$0xff] }
 0x4b8   :  { %4792 = vrcp.f32 %v1480_v13  ;;  %v4791_v32 = vpop.eup %4790  ;;  %v1493_v39 = vadd.f32 1.0, %v4789_v5  ;;  %v6641_v13 = vld [vmem:[#allocation28_spill] sm:$0xff]  ;;  %v6643_v5 = vld [vmem:[#allocation30_spill] sm:$0xff] }
 0x4b9   :  { %4794 = vrcp.f32 %v1486_v19  ;;  %v6642_v19 = vld [vmem:[#allocation29_spill] sm:$0xff] }
 0x4ba   :  { %4796 = vrcp.f32 %v1493_v39  ;;  %v6648_v39 = vld [vmem:[#allocation35_spill] sm:$0xff] }
 0x4c2   :  { %v4793_v3 = vpop.eup %4792 }
 0x4c3   :  { %v4795_v12 = vpop.eup %4794  ;;  %v1497_v11 = vmul.f32 %v4793_v3, %v4791_v32  ;;  %v6644_v32 = vld [vmem:[#allocation31_spill] sm:$0xff]  ;;  %v6645_v3 = vld [vmem:[#allocation32_spill] sm:$0xff] }
 0x4c4   :  { %v1496_v16 = vmul.f32 %v4795_v12, %v5690_v0  ;;  %v4797_v53 = vpop.eup %4796  ;;  %v6633_v0 = vld [vmem:[#allocation22_spill] sm:$0xff]  ;;  %v6646_v12 = vld [vmem:[#allocation33_spill] sm:$0xff] }
 0x4c6   :  { %v5800_v38 = vadd.f32 %v1497_v11, %v1496_v16  ;;  %v6647_v11 = vld [vmem:[#allocation34_spill] sm:$0xff]  ;;  %v6649_v16 = vld [vmem:[#allocation36_spill] sm:$0xff] }
 0x4c8   :  { %4798 = vtanh.f32 %v5800_v38 }
 0x4d2   :  { %v4799_v29 = vpop.eup %4798 }
 0x4d3   :  { %v1500_v63 = vmul.f32 %v4799_v29, %v4797_v53  ;;  %v6650_v53 = vld [vmem:[#allocation37_spill] sm:$0xff]  ;;  %v6651_v29 = vld [vmem:[#allocation38_spill] sm:$0xff] }
 0x4d5   :  { %1570 = vmatmul.mubr.f32.vlgmr.msra.gmra.mrb[14].mxu0 %v1500_v63  ;;  %1641 = vmatmul.mubr.f32.vlgmr.msra.gmra.mrb[14].mxu1 %v1500_v63 }
 0x4d6   :  { %3915 = vmatpush1.bf16.msra.mxu0 %v5171_v8  ;;  %3947 = vmatpush1.bf16.msra.mxu1 %v5184_v25 }
 0x4d7   :  { %3917 = vmatprep.subr.bf16.mxu0 %v5173_v9  ;;  %3949 = vmatprep.subr.bf16.mxu1 %v5194_v33 }
 0x4d8   :  { %1744 = vmatprep.mubr.f32.mxu0 %v6459_v4  ;;  %1815 = vmatprep.mubr.f32.mxu1 %v6459_v4 }
 0x4da   :  { %3919 = vmatpush1.bf16.msra.mxu0 %v5177_v14  ;;  %3951 = vmatpush1.bf16.msra.mxu1 %v5196_v37 }
 0x4db   :  { %3921 = vmatprep.subr.bf16.mxu0 %v5180_v17  ;;  %3953 = vmatprep.subr.bf16.mxu1 %v5202_v45 }
 0x4de   :  { %3923 = vmatpush1.bf16.msra.mxu0 %v5187_v26  ;;  %3955 = vmatpush1.bf16.msra.mxu1 %v5208_v48 }
 0x4df   :  { %3925 = vmatprep.subr.bf16.mxu0 %v5191_v30  ;;  %3957 = vmatprep.subr.bf16.mxu1 %v5211_v52 }
 0x4e2   :  { %3927 = vmatpush1.bf16.msra.mxu0 %v5200_v42  ;;  %3959 = vmatpush1.bf16.msra.mxu1 %v5220_v62 }
 0x4e3   :  { %3929 = vmatprep.subr.bf16.mxu0 %v5205_v46  ;;  %3961 = vmatprep.subr.bf16.mxu1 %v5223_v1 }
 0x4e6   :  { %3931 = vmatpush1.bf16.msra.mxu0 %v5214_v55  ;;  %3963 = vmatpush1.bf16.msra.mxu1 %v5232_v15 }
 0x4e7   :  { %3933 = vmatprep.subr.bf16.mxu0 %v5217_v58  ;;  %3965 = vmatprep.subr.bf16.mxu1 %v5235_v18 }
 0x4ea   :  { %3935 = vmatpush1.bf16.msra.mxu0 %v5226_v7  ;;  %3967 = vmatpush1.bf16.msra.mxu1 %v5244_v31 }
 0x4eb   :  { %3937 = vmatprep.subr.bf16.mxu0 %v5229_v10  ;;  %3969 = vmatprep.subr.bf16.mxu1 %v5247_v34 }
 0x4ee   :  { %3939 = vmatpush1.bf16.msra.mxu0 %v5238_v24  ;;  %3971 = vmatpush1.bf16.msra.mxu1 %v5254_v43 }
 0x4ef   :  { %3941 = vmatprep.subr.bf16.mxu0 %v5241_v27  ;;  %3973 = vmatprep.subr.bf16.mxu1 %v5259_v51 }
 0x4f2   :  { %3943 = vmatpush1.bf16.msra.mxu0 %v5250_v41  ;;  %3975 = vmatpush1.bf16.msra.mxu1 %v5265_v61 }
 0x4f3   :  { %3977 = vmatprep.subr.bf16.mxu0 %v5256_v47  ;;  %4041 = vmatprep.subr.bf16.mxu1 %v5271_v6 }
 0x4f5   :  { %1745 = vmatmul.mubr.f32.vlgmr.msra.gmra.mrb[16].mxu0 %v1500_v63  ;;  %1816 = vmatmul.mubr.f32.vlgmr.msra.gmra.mrb[16].mxu1 %v1500_v63  ;;  %v6652_v63 = vld [vmem:[#allocation39_spill] sm:$0xff] }
 0x4f6   :  { %3979 = vmatpush1.bf16.msra.mxu0 %v5262_v60  ;;  %4043 = vmatpush1.bf16.msra.mxu1 %v5279_v21 }
 0x4f7   :  { %3981 = vmatprep.subr.bf16.mxu0 %v5268_v2  ;;  %4045 = vmatprep.subr.bf16.mxu1 %v5285_v35 }
 0x4fa   :  { %3983 = vmatpush1.bf16.msra.mxu0 %v5275_v20  ;;  %4047 = vmatpush1.bf16.msra.mxu1 %v5292_v50 }
 0x4fb   :  { %3985 = vmatprep.subr.bf16.mxu0 %v5282_v28  ;;  %4049 = vmatprep.subr.bf16.mxu1 %v5298_v59 }
 0x4fe   :  { %3987 = vmatpush1.bf16.msra.mxu0 %v5289_v49  ;;  %4051 = vmatpush1.bf16.msra.mxu1 %v6633_v0 }
 0x4ff   :  { %3989 = vmatprep.subr.bf16.mxu0 %v6634_v23  ;;  %4053 = vmatprep.subr.bf16.mxu1 %v6635_v56 }
 0x502   :  { %3991 = vmatpush1.bf16.msra.mxu0 %v6636_v44  ;;  %4055 = vmatpush1.bf16.msra.mxu1 %v6637_v54 }
 0x503   :  { %3993 = vmatprep.subr.bf16.mxu0 %v6638_v40  ;;  %4057 = vmatprep.subr.bf16.mxu1 %v6639_v36  ;;  %v5910_v36 = vld [vmem:[#allocation11 + $0x10] sm:$0xff] }
 0x504   :  { %6691 = vst [vmem:[#allocation76_spill] sm:$0xff] %v5910_v36 }
 0x506   :  { %3995 = vmatpush1.bf16.msra.mxu0 %v6640_v22  ;;  %4059 = vmatpush1.bf16.msra.mxu1 %v6641_v13  ;;  %v5901_v13 = vld [vmem:[#allocation11] sm:$0xff]  ;;  %v5904_v22 = vld [vmem:[#allocation11 + $0x8] sm:$0xff] }
 0x507   :  { %3997 = vmatprep.subr.bf16.mxu0 %v6642_v19  ;;  %4061 = vmatprep.subr.bf16.mxu1 %v6643_v5  ;;  %v6653_v19 = vld [vmem:[#allocation40_spill] sm:$0xff]  ;;  %v6654_v5 = vld [vmem:[#allocation41_spill] sm:$0xff]  ;;  %6688 = vst [vmem:[#allocation73_spill] sm:$0xff] %v5901_v13  ;;  %6689 = vst [vmem:[#allocation74_spill] sm:$0xff] %v5904_v22 }
 0x50a   :  { %3999 = vmatpush1.bf16.msra.mxu0 %v6644_v32  ;;  %4063 = vmatpush1.bf16.msra.mxu1 %v6645_v3  ;;  %v6655_v32 = vld [vmem:[#allocation42_spill] sm:$0xff]  ;;  %v6656_v3 = vld [vmem:[#allocation43_spill] sm:$0xff] }
 0x50b   :  { %4001 = vmatprep.subr.bf16.mxu0 %v6646_v12  ;;  %4065 = vmatprep.subr.bf16.mxu1 %v6647_v11  ;;  %v6657_v12 = vld [vmem:[#allocation44_spill] sm:$0xff]  ;;  %v6658_v11 = vld [vmem:[#allocation45_spill] sm:$0xff] }
 0x50e   :  { %4003 = vmatpush1.bf16.msra.mxu0 %v6648_v39  ;;  %4067 = vmatpush1.bf16.msra.mxu1 %v6649_v16  ;;  %v6659_v39 = vld [vmem:[#allocation46_spill] sm:$0xff]  ;;  %v6660_v16 = vld [vmem:[#allocation47_spill] sm:$0xff] }
 0x50f   :  { %4005 = vmatprep.subr.bf16.mxu0 %v6650_v53  ;;  %4069 = vmatprep.subr.bf16.mxu1 %v6651_v29  ;;  %v6661_v53 = vld [vmem:[#allocation48_spill] sm:$0xff]  ;;  %v6662_v29 = vld [vmem:[#allocation49_spill] sm:$0xff] }
 0x512   :  { %4007 = vmatpush1.bf16.msra.mxu0 %v6652_v63  ;;  %4071 = vmatpush1.bf16.msra.mxu1 %v6653_v19  ;;  %v6663_v63 = vld [vmem:[#allocation50_spill] sm:$0xff]  ;;  %v6664_v19 = vld [vmem:[#allocation51_spill] sm:$0xff] }
 0x513   :  { %4009 = vmatprep.subr.bf16.mxu0 %v6654_v5  ;;  %4073 = vmatprep.subr.bf16.mxu1 %v6655_v32  ;;  %v6665_v5 = vld [vmem:[#allocation52_spill] sm:$0xff]  ;;  %v6666_v32 = vld [vmem:[#allocation53_spill] sm:$0xff] }
 0x516   :  { %4011 = vmatpush1.bf16.msra.mxu0 %v6656_v3  ;;  %4075 = vmatpush1.bf16.msra.mxu1 %v6657_v12  ;;  %v6667_v3 = vld [vmem:[#allocation54_spill] sm:$0xff]  ;;  %v6668_v12 = vld [vmem:[#allocation55_spill] sm:$0xff] }
 0x517   :  { %4013 = vmatprep.subr.bf16.mxu0 %v6658_v11  ;;  %4077 = vmatprep.subr.bf16.mxu1 %v6659_v39  ;;  %v6669_v11 = vld [vmem:[#allocation56_spill] sm:$0xff]  ;;  %v6670_v39 = vld [vmem:[#allocation57_spill] sm:$0xff] }
 0x51a   :  { %4015 = vmatpush1.bf16.msra.mxu0 %v6660_v16  ;;  %4079 = vmatpush1.bf16.msra.mxu1 %v6661_v53  ;;  %v6671_v16 = vld [vmem:[#allocation58_spill] sm:$0xff]  ;;  %v6672_v53 = vld [vmem:[#allocation59_spill] sm:$0xff] }
 0x51b   :  { %4017 = vmatprep.subr.bf16.mxu0 %v6662_v29  ;;  %4081 = vmatprep.subr.bf16.mxu1 %v6663_v63  ;;  %v6673_v29 = vld [vmem:[#allocation60_spill] sm:$0xff]  ;;  %v6674_v63 = vld [vmem:[#allocation61_spill] sm:$0xff] }
 0x51e   :  { %4019 = vmatpush1.bf16.msra.mxu0 %v6664_v19  ;;  %4083 = vmatpush1.bf16.msra.mxu1 %v6665_v5  ;;  %v6675_v19 = vld [vmem:[#allocation62_spill] sm:$0xff]  ;;  %v6676_v5 = vld [vmem:[#allocation63_spill] sm:$0xff] }
 0x51f   :  { %4021 = vmatprep.subr.bf16.mxu0 %v6666_v32  ;;  %4085 = vmatprep.subr.bf16.mxu1 %v6667_v3  ;;  %v6677_v32 = vld [vmem:[#allocation64_spill] sm:$0xff]  ;;  %v6678_v3 = vld [vmem:[#allocation65_spill] sm:$0xff] }
 0x522   :  { %4023 = vmatpush1.bf16.msra.mxu0 %v6668_v12  ;;  %4087 = vmatpush1.bf16.msra.mxu1 %v6669_v11  ;;  %v6679_v12 = vld [vmem:[#allocation66_spill] sm:$0xff]  ;;  %v6680_v11 = vld [vmem:[#allocation67_spill] sm:$0xff] }
 0x523   :  { %4025 = vmatprep.subr.bf16.mxu0 %v6670_v39  ;;  %4089 = vmatprep.subr.bf16.mxu1 %v6671_v16  ;;  %v6681_v39 = vld [vmem:[#allocation68_spill] sm:$0xff]  ;;  %v6682_v16 = vld [vmem:[#allocation69_spill] sm:$0xff] }
 0x526   :  { %4027 = vmatpush1.bf16.msra.mxu0 %v6672_v53  ;;  %4091 = vmatpush1.bf16.msra.mxu1 %v6673_v29  ;;  %v6683_v53 = vld [vmem:[#allocation70_spill] sm:$0xff]  ;;  %v6684_v29 = vld [vmem:[#allocation71_spill] sm:$0xff] }
 0x527   :  { %4029 = vmatprep.subr.bf16.mxu0 %v6674_v63  ;;  %4093 = vmatprep.subr.bf16.mxu1 %v6675_v19  ;;  %v6685_v63 = vld [vmem:[#allocation72_spill] sm:$0xff]  ;;  %v6686_v19 = vld [vmem:[#allocation18_spill] sm:$0xff] }
 0x52a   :  { %4031 = vmatpush1.bf16.msra.mxu0 %v6676_v5  ;;  %4095 = vmatpush1.bf16.msra.mxu1 %v6677_v32  ;;  %v6687_v5 = vld [vmem:[#allocation19_spill] sm:$0xff] }
 0x52b   :  { %4033 = vmatprep.subr.bf16.mxu0 %v6678_v3  ;;  %4097 = vmatprep.subr.bf16.mxu1 %v6679_v12 }
 0x52e   :  { %4035 = vmatpush1.bf16.msra.mxu0 %v6680_v11  ;;  %4099 = vmatpush1.bf16.msra.mxu1 %v6681_v39 }
 0x52f   :  { %4037 = vmatprep.subr.bf16.mxu0 %v6682_v16  ;;  %4101 = vmatprep.subr.bf16.mxu1 %v6683_v53 }
 0x532   :  { %4039 = vmatpush1.bf16.msra.mxu0 %v6684_v29  ;;  %4103 = vmatpush1.bf16.msra.mxu1 %v6685_v63  ;;  %v5907_v63 = vld [vmem:[#allocation11 + $0x18] sm:$0xff] }
 0x533   :  { %4105 = vmatprep.subr.bf16.mxu0 %v6686_v19  ;;  %4137 = vmatprep.subr.bf16.mxu1 %v6687_v5  ;;  %6690 = vst [vmem:[#allocation75_spill] sm:$0xff] %v5907_v63 }
 0x5a8   :  { %v1571_v32 = vpop.f32.mrb[14].mxu0  ;;  %v1642_v3 = vpop.f32.mrb[14].mxu1 }
 0x5a9   :  { %v1572_v11 = vadd.f32 %v5901_v13, %v1571_v32  ;;  %v1573_v12 = vpop.f32.mrb[15].mxu0  ;;  %v1644_v39 = vpop.f32.mrb[15].mxu1  ;;  %v1643_v40 = vadd.f32 %v5910_v36, %v1642_v3 }
 0x5aa   :  { %v1574_v53 = vadd.f32 %v5904_v22, %v1573_v12  ;;  %v1645_v5 = vadd.f32 %v5907_v63, %v1644_v39  ;;  %v1675_v39 = vld [vmem:[#allocation5 + $0x80] sm:$0xff]  ;;  %v1676_v63 = vld [vmem:[#allocation5 + $0x88] sm:$0xff] }
 0x5ab   :  { %v3117_v16 = vmul.f32 -1.442695, %v1572_v11 }
 0x5ac   :  { %v3118_v29 = vmul.f32 -1.442695, %v1574_v53  ;;  %v3119_v19 = vmul.f32 -1.442695, %v1645_v5 }
 0x5ad   :  { %4800 = vpow2.f32 %v3117_v16 }
 0x5ae   :  { %4802 = vpow2.f32 %v3118_v29 }
 0x5af   :  { %4804 = vpow2.f32 %v3119_v19 }
 0x5b0   :  { %4806 = vtanh.f32 %v1643_v40 }
 0x5b7   :  { %v4801_v32 = vpop.eup %4800 }
 0x5b8   :  { %v4803_v13 = vpop.eup %4802  ;;  %v1651_v54 = vadd.f32 1.0, %v4801_v32 }
 0x5b9   :  { %v1657_v44 = vadd.f32 1.0, %v4803_v13  ;;  %v4805_v12 = vpop.eup %4804 }
 0x5ba   :  { %4808 = vrcp.f32 %v1651_v54  ;;  %v4807_v11 = vpop.eup %4806  ;;  %v1664_v22 = vadd.f32 1.0, %v4805_v12 }
 0x5bb   :  { %4810 = vrcp.f32 %v1657_v44 }
 0x5bc   :  { %4812 = vrcp.f32 %v1664_v22 }
 0x5c4   :  { %v4809_v16 = vpop.eup %4808 }
 0x5c5   :  { %v4811_v53 = vpop.eup %4810  ;;  %v1668_v29 = vmul.f32 %v4809_v16, %v4807_v11  ;;  %v1678_v11 = vld [vmem:[#allocation5 + $0x98] sm:$0xff] }
 0x5c6   :  { %v1667_v5 = vmul.f32 %v4811_v53, %v5796_v57  ;;  %v1677_v57 = vld [vmem:[#allocation5 + $0x90] sm:$0xff]  ;;  %v4813_v16 = vpop.eup %4812 }
 0x5c8   :  { %v1746_v56 = vpop.f32.mrb[16].mxu0  ;;  %v1817_v3 = vpop.f32.mrb[16].mxu1  ;;  %v5914_v36 = vadd.f32 %v1668_v29, %v1667_v5 }
 0x5c9   :  { %v1822_v19 = vadd.f32 %v1746_v56, %v1675_v39  ;;  %v1748_v40 = vpop.f32.mrb[17].mxu0  ;;  %v1819_v13 = vpop.f32.mrb[17].mxu1  ;;  %v1824_v0 = vadd.f32 %v1817_v3, %v1677_v57  ;;  %v6694_v57 = vld [vmem:[#allocation24_spill] sm:$0xff] }
 0x5ca   :  { %v1823_v54 = vadd.f32 %v1748_v40, %v1676_v63  ;;  %4814 = vtanh.f32 %v5914_v36  ;;  %v1825_v12 = vadd.f32 %v1819_v13, %v1678_v11 }
 0x5cb   :  { %v3120_v44 = vmul.f32 -1.442695, %v1822_v19 }
 0x5cc   :  { %v3121_v32 = vmul.f32 -1.442695, %v1823_v54  ;;  %v3122_v23 = vmul.f32 -1.442695, %v1825_v12 }
 0x5cd   :  { %4816 = vpow2.f32 %v3120_v44 }
 0x5ce   :  { %4818 = vpow2.f32 %v3121_v32 }
 0x5cf   :  { %4820 = vpow2.f32 %v3122_v23 }
 0x5d0   :  { %4822 = vtanh.f32 %v1824_v0  ;;  %v6693_v0 = vld [vmem:[#allocation20_spill] sm:$0xff] }
 0x5d4   :  { %v4815_v53 = vpop.eup %4814 }
 0x5d5   :  { %v1671_v29 = vmul.f32 %v4815_v53, %v4813_v16  ;;  %v6695_v16 = vld [vmem:[#allocation21_spill] sm:$0xff]  ;;  %v6696_v53 = vld [vmem:[#allocation26_spill] sm:$0xff] }
 0x5d7   :  { %v4817_v5 = vpop.eup %4816  ;;  %1919 = vmatprep.mubr.f32.mxu0 %v1671_v29  ;;  %1990 = vmatprep.mubr.f32.mxu1 %v1671_v29  ;;  %v6697_v29 = vld [vmem:[#allocation23_spill] sm:$0xff] }
 0x5d8   :  { %v4819_v56 = vpop.eup %4818  ;;  %v1830_v22 = vadd.f32 1.0, %v4817_v5  ;;  %v6698_v5 = vld [vmem:[#allocation27_spill] sm:$0xff] }
 0x5d9   :  { %v1836_v63 = vadd.f32 1.0, %v4819_v56  ;;  %v4821_v39 = vpop.eup %4820  ;;  %v6699_v56 = vld [vmem:[#allocation25_spill] sm:$0xff] }
 0x5da   :  { %4824 = vrcp.f32 %v1830_v22  ;;  %v4823_v19 = vpop.eup %4822  ;;  %v1843_v44 = vadd.f32 1.0, %v4821_v39  ;;  %v6700_v22 = vld [vmem:[#allocation28_spill] sm:$0xff]  ;;  %v6702_v39 = vld [vmem:[#allocation30_spill] sm:$0xff] }
 0x5db   :  { %4826 = vrcp.f32 %v1836_v63  ;;  %v6701_v63 = vld [vmem:[#allocation29_spill] sm:$0xff] }
 0x5dc   :  { %4828 = vrcp.f32 %v1843_v44  ;;  %v6707_v44 = vld [vmem:[#allocation35_spill] sm:$0xff] }
 0x5e4   :  { %v4825_v40 = vpop.eup %4824 }
 0x5e5   :  { %v4827_v13 = vpop.eup %4826  ;;  %v1847_v54 = vmul.f32 %v4825_v40, %v4823_v19  ;;  %v6703_v19 = vld [vmem:[#allocation31_spill] sm:$0xff]  ;;  %v6704_v40 = vld [vmem:[#allocation32_spill] sm:$0xff] }
 0x5e6   :  { %v1846_v32 = vmul.f32 %v4827_v13, %v5800_v38  ;;  %v4829_v11 = vpop.eup %4828  ;;  %v6692_v38 = vld [vmem:[#allocation22_spill] sm:$0xff]  ;;  %v6705_v13 = vld [vmem:[#allocation33_spill] sm:$0xff] }
 0x5e8   :  { %v5918_v3 = vadd.f32 %v1847_v54, %v1846_v32  ;;  %v6706_v54 = vld [vmem:[#allocation34_spill] sm:$0xff]  ;;  %v6708_v32 = vld [vmem:[#allocation36_spill] sm:$0xff] }
 0x5ea   :  { %4830 = vtanh.f32 %v5918_v3 }
 0x5f4   :  { %v4831_v12 = vpop.eup %4830 }
 0x5f5   :  { %v1850_v23 = vmul.f32 %v4831_v12, %v4829_v11  ;;  %v6709_v11 = vld [vmem:[#allocation37_spill] sm:$0xff]  ;;  %v6710_v12 = vld [vmem:[#allocation38_spill] sm:$0xff] }
 0x5f7   :  { %1920 = vmatmul.mubr.f32.vlgmr.msra.gmra.mrb[18].mxu0 %v1850_v23  ;;  %1991 = vmatmul.mubr.f32.vlgmr.msra.gmra.mrb[18].mxu1 %v1850_v23 }
 0x5f8   :  { %4107 = vmatpush1.bf16.msra.mxu0 %v5171_v8  ;;  %4139 = vmatpush1.bf16.msra.mxu1 %v5184_v25 }
 0x5f9   :  { %4109 = vmatprep.subr.bf16.mxu0 %v5173_v9  ;;  %4141 = vmatprep.subr.bf16.mxu1 %v5194_v33 }
 0x5fa   :  { %2094 = vmatprep.mubr.f32.mxu0 %v6459_v4  ;;  %2165 = vmatprep.mubr.f32.mxu1 %v6459_v4 }
 0x5fc   :  { %4111 = vmatpush1.bf16.msra.mxu0 %v5177_v14  ;;  %4143 = vmatpush1.bf16.msra.mxu1 %v5196_v37 }
 0x5fd   :  { %4113 = vmatprep.subr.bf16.mxu0 %v5180_v17  ;;  %4145 = vmatprep.subr.bf16.mxu1 %v5202_v45 }
 0x600   :  { %4115 = vmatpush1.bf16.msra.mxu0 %v5187_v26  ;;  %4147 = vmatpush1.bf16.msra.mxu1 %v5208_v48 }
 0x601   :  { %4117 = vmatprep.subr.bf16.mxu0 %v5191_v30  ;;  %4149 = vmatprep.subr.bf16.mxu1 %v5211_v52 }
 0x604   :  { %4119 = vmatpush1.bf16.msra.mxu0 %v5200_v42  ;;  %4151 = vmatpush1.bf16.msra.mxu1 %v5220_v62 }
 0x605   :  { %4121 = vmatprep.subr.bf16.mxu0 %v5205_v46  ;;  %4153 = vmatprep.subr.bf16.mxu1 %v5223_v1 }
 0x608   :  { %4123 = vmatpush1.bf16.msra.mxu0 %v5214_v55  ;;  %4155 = vmatpush1.bf16.msra.mxu1 %v5232_v15 }
 0x609   :  { %4125 = vmatprep.subr.bf16.mxu0 %v5217_v58  ;;  %4157 = vmatprep.subr.bf16.mxu1 %v5235_v18 }
 0x60c   :  { %4127 = vmatpush1.bf16.msra.mxu0 %v5226_v7  ;;  %4159 = vmatpush1.bf16.msra.mxu1 %v5244_v31 }
 0x60d   :  { %4129 = vmatprep.subr.bf16.mxu0 %v5229_v10  ;;  %4161 = vmatprep.subr.bf16.mxu1 %v5247_v34 }
 0x610   :  { %4131 = vmatpush1.bf16.msra.mxu0 %v5238_v24  ;;  %4163 = vmatpush1.bf16.msra.mxu1 %v5254_v43 }
 0x611   :  { %4133 = vmatprep.subr.bf16.mxu0 %v5241_v27  ;;  %4165 = vmatprep.subr.bf16.mxu1 %v5259_v51 }
 0x614   :  { %4135 = vmatpush1.bf16.msra.mxu0 %v5250_v41  ;;  %4167 = vmatpush1.bf16.msra.mxu1 %v5265_v61 }
 0x615   :  { %4169 = vmatprep.subr.bf16.mxu0 %v5256_v47  ;;  %4233 = vmatprep.subr.bf16.mxu1 %v5271_v6 }
 0x617   :  { %2095 = vmatmul.mubr.f32.vlgmr.msra.gmra.mrb[20].mxu0 %v1850_v23  ;;  %2166 = vmatmul.mubr.f32.vlgmr.msra.gmra.mrb[20].mxu1 %v1850_v23  ;;  %v6711_v23 = vld [vmem:[#allocation39_spill] sm:$0xff] }
 0x618   :  { %4171 = vmatpush1.bf16.msra.mxu0 %v5262_v60  ;;  %4235 = vmatpush1.bf16.msra.mxu1 %v5279_v21 }
 0x619   :  { %4173 = vmatprep.subr.bf16.mxu0 %v5268_v2  ;;  %4237 = vmatprep.subr.bf16.mxu1 %v5285_v35 }
 0x61c   :  { %4175 = vmatpush1.bf16.msra.mxu0 %v5275_v20  ;;  %4239 = vmatpush1.bf16.msra.mxu1 %v5292_v50 }
 0x61d   :  { %4177 = vmatprep.subr.bf16.mxu0 %v5282_v28  ;;  %4241 = vmatprep.subr.bf16.mxu1 %v5298_v59 }
 0x620   :  { %4179 = vmatpush1.bf16.msra.mxu0 %v5289_v49  ;;  %4243 = vmatpush1.bf16.msra.mxu1 %v6692_v38 }
 0x621   :  { %4181 = vmatprep.subr.bf16.mxu0 %v6693_v0  ;;  %4245 = vmatprep.subr.bf16.mxu1 %v6694_v57 }
 0x624   :  { %4183 = vmatpush1.bf16.msra.mxu0 %v6695_v16  ;;  %4247 = vmatpush1.bf16.msra.mxu1 %v6696_v53 }
 0x625   :  { %4185 = vmatprep.subr.bf16.mxu0 %v6697_v29  ;;  %4249 = vmatprep.subr.bf16.mxu1 %v6698_v5  ;;  %v6748_v5 = vld [vmem:[#allocation74_spill] sm:$0xff] }
 0x628   :  { %4187 = vmatpush1.bf16.msra.mxu0 %v6699_v56  ;;  %4251 = vmatpush1.bf16.msra.mxu1 %v6700_v22  ;;  %v6747_v22 = vld [vmem:[#allocation73_spill] sm:$0xff] }
 0x629   :  { %4189 = vmatprep.subr.bf16.mxu0 %v6701_v63  ;;  %4253 = vmatprep.subr.bf16.mxu1 %v6702_v39  ;;  %v6712_v63 = vld [vmem:[#allocation40_spill] sm:$0xff]  ;;  %v6713_v39 = vld [vmem:[#allocation41_spill] sm:$0xff] }
 0x62c   :  { %4191 = vmatpush1.bf16.msra.mxu0 %v6703_v19  ;;  %4255 = vmatpush1.bf16.msra.mxu1 %v6704_v40  ;;  %v6714_v19 = vld [vmem:[#allocation42_spill] sm:$0xff]  ;;  %v6715_v40 = vld [vmem:[#allocation43_spill] sm:$0xff] }
 0x62d   :  { %4193 = vmatprep.subr.bf16.mxu0 %v6705_v13  ;;  %4257 = vmatprep.subr.bf16.mxu1 %v6706_v54  ;;  %v6716_v13 = vld [vmem:[#allocation44_spill] sm:$0xff]  ;;  %v6717_v54 = vld [vmem:[#allocation45_spill] sm:$0xff] }
 0x630   :  { %4195 = vmatpush1.bf16.msra.mxu0 %v6707_v44  ;;  %4259 = vmatpush1.bf16.msra.mxu1 %v6708_v32  ;;  %v6718_v44 = vld [vmem:[#allocation46_spill] sm:$0xff]  ;;  %v6719_v32 = vld [vmem:[#allocation47_spill] sm:$0xff] }
 0x631   :  { %4197 = vmatprep.subr.bf16.mxu0 %v6709_v11  ;;  %4261 = vmatprep.subr.bf16.mxu1 %v6710_v12  ;;  %v6720_v11 = vld [vmem:[#allocation48_spill] sm:$0xff]  ;;  %v6721_v12 = vld [vmem:[#allocation49_spill] sm:$0xff] }
 0x634   :  { %4199 = vmatpush1.bf16.msra.mxu0 %v6711_v23  ;;  %4263 = vmatpush1.bf16.msra.mxu1 %v6712_v63  ;;  %v6722_v23 = vld [vmem:[#allocation50_spill] sm:$0xff]  ;;  %v6723_v63 = vld [vmem:[#allocation51_spill] sm:$0xff] }
 0x635   :  { %4201 = vmatprep.subr.bf16.mxu0 %v6713_v39  ;;  %4265 = vmatprep.subr.bf16.mxu1 %v6714_v19  ;;  %v6724_v39 = vld [vmem:[#allocation52_spill] sm:$0xff]  ;;  %v6725_v19 = vld [vmem:[#allocation53_spill] sm:$0xff] }
 0x638   :  { %4203 = vmatpush1.bf16.msra.mxu0 %v6715_v40  ;;  %4267 = vmatpush1.bf16.msra.mxu1 %v6716_v13  ;;  %v6726_v40 = vld [vmem:[#allocation54_spill] sm:$0xff]  ;;  %v6727_v13 = vld [vmem:[#allocation55_spill] sm:$0xff] }
 0x639   :  { %4205 = vmatprep.subr.bf16.mxu0 %v6717_v54  ;;  %4269 = vmatprep.subr.bf16.mxu1 %v6718_v44  ;;  %v6728_v54 = vld [vmem:[#allocation56_spill] sm:$0xff]  ;;  %v6729_v44 = vld [vmem:[#allocation57_spill] sm:$0xff] }
 0x63c   :  { %4207 = vmatpush1.bf16.msra.mxu0 %v6719_v32  ;;  %4271 = vmatpush1.bf16.msra.mxu1 %v6720_v11  ;;  %v6730_v32 = vld [vmem:[#allocation58_spill] sm:$0xff]  ;;  %v6731_v11 = vld [vmem:[#allocation59_spill] sm:$0xff] }
 0x63d   :  { %4209 = vmatprep.subr.bf16.mxu0 %v6721_v12  ;;  %4273 = vmatprep.subr.bf16.mxu1 %v6722_v23  ;;  %v6732_v12 = vld [vmem:[#allocation60_spill] sm:$0xff]  ;;  %v6733_v23 = vld [vmem:[#allocation61_spill] sm:$0xff] }
 0x640   :  { %4211 = vmatpush1.bf16.msra.mxu0 %v6723_v63  ;;  %4275 = vmatpush1.bf16.msra.mxu1 %v6724_v39  ;;  %v6734_v63 = vld [vmem:[#allocation62_spill] sm:$0xff]  ;;  %v6735_v39 = vld [vmem:[#allocation63_spill] sm:$0xff] }
 0x641   :  { %4213 = vmatprep.subr.bf16.mxu0 %v6725_v19  ;;  %4277 = vmatprep.subr.bf16.mxu1 %v6726_v40  ;;  %v6736_v19 = vld [vmem:[#allocation64_spill] sm:$0xff]  ;;  %v6737_v40 = vld [vmem:[#allocation65_spill] sm:$0xff] }
 0x644   :  { %4215 = vmatpush1.bf16.msra.mxu0 %v6727_v13  ;;  %4279 = vmatpush1.bf16.msra.mxu1 %v6728_v54  ;;  %v6738_v13 = vld [vmem:[#allocation66_spill] sm:$0xff]  ;;  %v6739_v54 = vld [vmem:[#allocation67_spill] sm:$0xff] }
 0x645   :  { %4217 = vmatprep.subr.bf16.mxu0 %v6729_v44  ;;  %4281 = vmatprep.subr.bf16.mxu1 %v6730_v32  ;;  %v6740_v44 = vld [vmem:[#allocation68_spill] sm:$0xff]  ;;  %v6741_v32 = vld [vmem:[#allocation69_spill] sm:$0xff] }
 0x648   :  { %4219 = vmatpush1.bf16.msra.mxu0 %v6731_v11  ;;  %4283 = vmatpush1.bf16.msra.mxu1 %v6732_v12  ;;  %v6742_v11 = vld [vmem:[#allocation70_spill] sm:$0xff]  ;;  %v6743_v12 = vld [vmem:[#allocation71_spill] sm:$0xff] }
 0x649   :  { %4221 = vmatprep.subr.bf16.mxu0 %v6733_v23  ;;  %4285 = vmatprep.subr.bf16.mxu1 %v6734_v63  ;;  %v6744_v23 = vld [vmem:[#allocation72_spill] sm:$0xff]  ;;  %v6745_v63 = vld [vmem:[#allocation18_spill] sm:$0xff] }
 0x64c   :  { %4223 = vmatpush1.bf16.msra.mxu0 %v6735_v39  ;;  %4287 = vmatpush1.bf16.msra.mxu1 %v6736_v19  ;;  %v6746_v39 = vld [vmem:[#allocation19_spill] sm:$0xff] }
 0x64d   :  { %4225 = vmatprep.subr.bf16.mxu0 %v6737_v40  ;;  %4289 = vmatprep.subr.bf16.mxu1 %v6738_v13 }
 0x650   :  { %4227 = vmatpush1.bf16.msra.mxu0 %v6739_v54  ;;  %4291 = vmatpush1.bf16.msra.mxu1 %v6740_v44 }
 0x651   :  { %4229 = vmatprep.subr.bf16.mxu0 %v6741_v32  ;;  %4293 = vmatprep.subr.bf16.mxu1 %v6742_v11  ;;  %v6749_v11 = vld [vmem:[#allocation75_spill] sm:$0xff] }
 0x654   :  { %4231 = vmatpush1.bf16.msra.mxu0 %v6743_v12  ;;  %4295 = vmatpush1.bf16.msra.mxu1 %v6744_v23  ;;  %v6750_v23 = vld [vmem:[#allocation76_spill] sm:$0xff] }
 0x655   :  { %4297 = vmatprep.subr.bf16.mxu0 %v6745_v63  ;;  %4329 = vmatprep.subr.bf16.mxu1 %v6746_v39 }
 0x6ca   :  { %v1921_v19 = vpop.f32.mrb[18].mxu0  ;;  %v1992_v40 = vpop.f32.mrb[18].mxu1 }
 0x6cb   :  { %v1922_v13 = vadd.f32 %v6747_v22, %v1921_v19  ;;  %v1923_v56 = vpop.f32.mrb[19].mxu0  ;;  %v1994_v54 = vpop.f32.mrb[19].mxu1  ;;  %v1993_v16 = vadd.f32 %v6750_v23, %v1992_v40 }
 0x6cc   :  { %v1924_v44 = vadd.f32 %v6748_v5, %v1923_v56  ;;  %v1995_v12 = vadd.f32 %v6749_v11, %v1994_v54  ;;  %v2025_v54 = vld [vmem:[#allocation5 + $0xa0] sm:$0xff] }
 0x6cd   :  { %v3123_v29 = vmul.f32 -1.442695, %v1922_v13 }
 0x6ce   :  { %v3124_v32 = vmul.f32 -1.442695, %v1924_v44  ;;  %v3125_v53 = vmul.f32 -1.442695, %v1995_v12  ;;  %v2026_v12 = vld [vmem:[#allocation5 + $0xa8] sm:$0xff] }
 0x6cf   :  { %4832 = vpow2.f32 %v3123_v29 }
 0x6d0   :  { %4834 = vpow2.f32 %v3124_v32 }
 0x6d1   :  { %4836 = vpow2.f32 %v3125_v53 }
 0x6d2   :  { %4838 = vtanh.f32 %v1993_v16 }
 0x6d9   :  { %v4833_v63 = vpop.eup %4832 }
 0x6da   :  { %v4835_v57 = vpop.eup %4834  ;;  %v2001_v39 = vadd.f32 1.0, %v4833_v63 }
 0x6db   :  { %v2007_v0 = vadd.f32 1.0, %v4835_v57  ;;  %v4837_v19 = vpop.eup %4836 }
 0x6dc   :  { %4840 = vrcp.f32 %v2001_v39  ;;  %v4839_v22 = vpop.eup %4838  ;;  %v2014_v29 = vadd.f32 1.0, %v4837_v19 }
 0x6dd   :  { %4842 = vrcp.f32 %v2007_v0 }
 0x6de   :  { %4844 = vrcp.f32 %v2014_v29 }
 0x6e6   :  { %v4841_v56 = vpop.eup %4840 }
 0x6e7   :  { %v4843_v13 = vpop.eup %4842  ;;  %v2018_v44 = vmul.f32 %v4841_v56, %v4839_v22  ;;  %v2028_v22 = vld [vmem:[#allocation5 + $0xb8] sm:$0xff] }
 0x6e8   :  { %v2017_v32 = vmul.f32 %v4843_v13, %v5914_v36  ;;  %v2027_v36 = vld [vmem:[#allocation5 + $0xb0] sm:$0xff]  ;;  %v4845_v56 = vpop.eup %4844 }
 0x6ea   :  { %v2096_v11 = vpop.f32.mrb[20].mxu0  ;;  %v2167_v40 = vpop.f32.mrb[20].mxu1  ;;  %v6024_v23 = vadd.f32 %v2018_v44, %v2017_v32 }
 0x6eb   :  { %v2172_v53 = vadd.f32 %v2096_v11, %v2025_v54  ;;  %v2098_v16 = vpop.f32.mrb[21].mxu0  ;;  %v2169_v57 = vpop.f32.mrb[21].mxu1  ;;  %v2174_v38 = vadd.f32 %v2167_v40, %v2027_v36  ;;  %v6753_v36 = vld [vmem:[#allocation24_spill] sm:$0xff] }
 0x6ec   :  { %v2173_v63 = vadd.f32 %v2098_v16, %v2026_v12  ;;  %4846 = vtanh.f32 %v6024_v23  ;;  %v2175_v19 = vadd.f32 %v2169_v57, %v2028_v22 }
 0x6ed   :  { %v3126_v0 = vmul.f32 -1.442695, %v2172_v53 }
 0x6ee   :  { %v3127_v39 = vmul.f32 -1.442695, %v2173_v63  ;;  %v3128_v5 = vmul.f32 -1.442695, %v2175_v19 }
 0x6ef   :  { %4848 = vpow2.f32 %v3126_v0 }
 0x6f0   :  { %4850 = vpow2.f32 %v3127_v39 }
 0x6f1   :  { %4852 = vpow2.f32 %v3128_v5 }
 0x6f2   :  { %4854 = vtanh.f32 %v2174_v38  ;;  %v6752_v38 = vld [vmem:[#allocation20_spill] sm:$0xff] }
 0x6f6   :  { %v4847_v13 = vpop.eup %4846 }
 0x6f7   :  { %v2021_v44 = vmul.f32 %v4847_v13, %v4845_v56  ;;  %v6754_v56 = vld [vmem:[#allocation21_spill] sm:$0xff]  ;;  %v6755_v13 = vld [vmem:[#allocation26_spill] sm:$0xff] }
 0x6f9   :  { %v4849_v32 = vpop.eup %4848  ;;  %2269 = vmatprep.mubr.f32.mxu0 %v2021_v44  ;;  %2340 = vmatprep.mubr.f32.mxu1 %v2021_v44  ;;  %v6756_v44 = vld [vmem:[#allocation23_spill] sm:$0xff] }
 0x6fa   :  { %v4851_v11 = vpop.eup %4850  ;;  %v2180_v29 = vadd.f32 1.0, %v4849_v32  ;;  %v6757_v32 = vld [vmem:[#allocation27_spill] sm:$0xff] }
 0x6fb   :  { %v2186_v54 = vadd.f32 1.0, %v4851_v11  ;;  %v4853_v12 = vpop.eup %4852  ;;  %v6758_v11 = vld [vmem:[#allocation25_spill] sm:$0xff] }
 0x6fc   :  { %4856 = vrcp.f32 %v2180_v29  ;;  %v4855_v53 = vpop.eup %4854  ;;  %v2193_v0 = vadd.f32 1.0, %v4853_v12  ;;  %v6759_v29 = vld [vmem:[#allocation28_spill] sm:$0xff]  ;;  %v6761_v12 = vld [vmem:[#allocation30_spill] sm:$0xff] }
 0x6fd   :  { %4858 = vrcp.f32 %v2186_v54  ;;  %v6760_v54 = vld [vmem:[#allocation29_spill] sm:$0xff] }
 0x6fe   :  { %4860 = vrcp.f32 %v2193_v0  ;;  %v6766_v0 = vld [vmem:[#allocation35_spill] sm:$0xff] }
 0x706   :  { %v4857_v16 = vpop.eup %4856 }
 0x707   :  { %v4859_v57 = vpop.eup %4858  ;;  %v2197_v63 = vmul.f32 %v4857_v16, %v4855_v53  ;;  %v6762_v53 = vld [vmem:[#allocation31_spill] sm:$0xff]  ;;  %v6763_v16 = vld [vmem:[#allocation32_spill] sm:$0xff] }
 0x708   :  { %v2196_v39 = vmul.f32 %v4859_v57, %v5918_v3  ;;  %v4861_v22 = vpop.eup %4860  ;;  %v6751_v3 = vld [vmem:[#allocation22_spill] sm:$0xff]  ;;  %v6764_v57 = vld [vmem:[#allocation33_spill] sm:$0xff] }
 0x70a   :  { %v6028_v40 = vadd.f32 %v2197_v63, %v2196_v39  ;;  %v6765_v63 = vld [vmem:[#allocation34_spill] sm:$0xff]  ;;  %v6767_v39 = vld [vmem:[#allocation36_spill] sm:$0xff] }
 0x70c   :  { %4862 = vtanh.f32 %v6028_v40 }
 0x716   :  { %v4863_v19 = vpop.eup %4862 }
 0x717   :  { %v2200_v5 = vmul.f32 %v4863_v19, %v4861_v22  ;;  %v6768_v22 = vld [vmem:[#allocation37_spill] sm:$0xff]  ;;  %v6769_v19 = vld [vmem:[#allocation38_spill] sm:$0xff] }
 0x719   :  { %2270 = vmatmul.mubr.f32.vlgmr.msra.gmra.mrb[22].mxu0 %v2200_v5  ;;  %2341 = vmatmul.mubr.f32.vlgmr.msra.gmra.mrb[22].mxu1 %v2200_v5 }
 0x71a   :  { %4299 = vmatpush1.bf16.msra.mxu0 %v5171_v8  ;;  %4331 = vmatpush1.bf16.msra.mxu1 %v5184_v25 }
 0x71b   :  { %4301 = vmatprep.subr.bf16.mxu0 %v5173_v9  ;;  %4333 = vmatprep.subr.bf16.mxu1 %v5194_v33 }
 0x71c   :  { %2444 = vmatprep.mubr.f32.mxu0 %v6459_v4  ;;  %2515 = vmatprep.mubr.f32.mxu1 %v6459_v4 }
 0x71e   :  { %4303 = vmatpush1.bf16.msra.mxu0 %v5177_v14  ;;  %4335 = vmatpush1.bf16.msra.mxu1 %v5196_v37 }
 0x71f   :  { %4305 = vmatprep.subr.bf16.mxu0 %v5180_v17  ;;  %4337 = vmatprep.subr.bf16.mxu1 %v5202_v45 }
 0x722   :  { %4307 = vmatpush1.bf16.msra.mxu0 %v5187_v26  ;;  %4339 = vmatpush1.bf16.msra.mxu1 %v5208_v48 }
 0x723   :  { %4309 = vmatprep.subr.bf16.mxu0 %v5191_v30  ;;  %4341 = vmatprep.subr.bf16.mxu1 %v5211_v52 }
 0x726   :  { %4311 = vmatpush1.bf16.msra.mxu0 %v5200_v42  ;;  %4343 = vmatpush1.bf16.msra.mxu1 %v5220_v62 }
 0x727   :  { %4313 = vmatprep.subr.bf16.mxu0 %v5205_v46  ;;  %4345 = vmatprep.subr.bf16.mxu1 %v5223_v1 }
 0x72a   :  { %4315 = vmatpush1.bf16.msra.mxu0 %v5214_v55  ;;  %4347 = vmatpush1.bf16.msra.mxu1 %v5232_v15 }
 0x72b   :  { %4317 = vmatprep.subr.bf16.mxu0 %v5217_v58  ;;  %4349 = vmatprep.subr.bf16.mxu1 %v5235_v18 }
 0x72e   :  { %4319 = vmatpush1.bf16.msra.mxu0 %v5226_v7  ;;  %4351 = vmatpush1.bf16.msra.mxu1 %v5244_v31 }
 0x72f   :  { %4321 = vmatprep.subr.bf16.mxu0 %v5229_v10  ;;  %4353 = vmatprep.subr.bf16.mxu1 %v5247_v34 }
 0x732   :  { %4323 = vmatpush1.bf16.msra.mxu0 %v5238_v24  ;;  %4355 = vmatpush1.bf16.msra.mxu1 %v5254_v43 }
 0x733   :  { %4325 = vmatprep.subr.bf16.mxu0 %v5241_v27  ;;  %4357 = vmatprep.subr.bf16.mxu1 %v5259_v51 }
 0x736   :  { %4327 = vmatpush1.bf16.msra.mxu0 %v5250_v41  ;;  %4359 = vmatpush1.bf16.msra.mxu1 %v5265_v61 }
 0x737   :  { %4361 = vmatprep.subr.bf16.mxu0 %v5256_v47  ;;  %4425 = vmatprep.subr.bf16.mxu1 %v5271_v6 }
 0x739   :  { %2445 = vmatmul.mubr.f32.vlgmr.msra.gmra.mrb[24].mxu0 %v2200_v5  ;;  %2516 = vmatmul.mubr.f32.vlgmr.msra.gmra.mrb[24].mxu1 %v2200_v5  ;;  %v6770_v5 = vld [vmem:[#allocation39_spill] sm:$0xff] }
 0x73a   :  { %4363 = vmatpush1.bf16.msra.mxu0 %v5262_v60  ;;  %4427 = vmatpush1.bf16.msra.mxu1 %v5279_v21 }
 0x73b   :  { %4365 = vmatprep.subr.bf16.mxu0 %v5268_v2  ;;  %4429 = vmatprep.subr.bf16.mxu1 %v5285_v35 }
 0x73e   :  { %4367 = vmatpush1.bf16.msra.mxu0 %v5275_v20  ;;  %4431 = vmatpush1.bf16.msra.mxu1 %v5292_v50 }
 0x73f   :  { %4369 = vmatprep.subr.bf16.mxu0 %v5282_v28  ;;  %4433 = vmatprep.subr.bf16.mxu1 %v5298_v59 }
 0x742   :  { %4371 = vmatpush1.bf16.msra.mxu0 %v5289_v49  ;;  %4435 = vmatpush1.bf16.msra.mxu1 %v6751_v3 }
 0x743   :  { %4373 = vmatprep.subr.bf16.mxu0 %v6752_v38  ;;  %4437 = vmatprep.subr.bf16.mxu1 %v6753_v36 }
 0x746   :  { %4375 = vmatpush1.bf16.msra.mxu0 %v6754_v56  ;;  %4439 = vmatpush1.bf16.msra.mxu1 %v6755_v13 }
 0x747   :  { %4377 = vmatprep.subr.bf16.mxu0 %v6756_v44  ;;  %4441 = vmatprep.subr.bf16.mxu1 %v6757_v32  ;;  %v6807_v32 = vld [vmem:[#allocation74_spill] sm:$0xff] }
 0x74a   :  { %4379 = vmatpush1.bf16.msra.mxu0 %v6758_v11  ;;  %4443 = vmatpush1.bf16.msra.mxu1 %v6759_v29  ;;  %v6806_v29 = vld [vmem:[#allocation73_spill] sm:$0xff] }
 0x74b   :  { %4381 = vmatprep.subr.bf16.mxu0 %v6760_v54  ;;  %4445 = vmatprep.subr.bf16.mxu1 %v6761_v12  ;;  %v6771_v54 = vld [vmem:[#allocation40_spill] sm:$0xff]  ;;  %v6772_v12 = vld [vmem:[#allocation41_spill] sm:$0xff] }
 0x74e   :  { %4383 = vmatpush1.bf16.msra.mxu0 %v6762_v53  ;;  %4447 = vmatpush1.bf16.msra.mxu1 %v6763_v16  ;;  %v6773_v53 = vld [vmem:[#allocation42_spill] sm:$0xff]  ;;  %v6774_v16 = vld [vmem:[#allocation43_spill] sm:$0xff] }
 0x74f   :  { %4385 = vmatprep.subr.bf16.mxu0 %v6764_v57  ;;  %4449 = vmatprep.subr.bf16.mxu1 %v6765_v63  ;;  %v6775_v57 = vld [vmem:[#allocation44_spill] sm:$0xff]  ;;  %v6776_v63 = vld [vmem:[#allocation45_spill] sm:$0xff] }
 0x752   :  { %4387 = vmatpush1.bf16.msra.mxu0 %v6766_v0  ;;  %4451 = vmatpush1.bf16.msra.mxu1 %v6767_v39  ;;  %v6777_v0 = vld [vmem:[#allocation46_spill] sm:$0xff]  ;;  %v6778_v39 = vld [vmem:[#allocation47_spill] sm:$0xff] }
 0x753   :  { %4389 = vmatprep.subr.bf16.mxu0 %v6768_v22  ;;  %4453 = vmatprep.subr.bf16.mxu1 %v6769_v19  ;;  %v6779_v22 = vld [vmem:[#allocation48_spill] sm:$0xff]  ;;  %v6780_v19 = vld [vmem:[#allocation49_spill] sm:$0xff] }
 0x756   :  { %4391 = vmatpush1.bf16.msra.mxu0 %v6770_v5  ;;  %4455 = vmatpush1.bf16.msra.mxu1 %v6771_v54  ;;  %v6781_v5 = vld [vmem:[#allocation50_spill] sm:$0xff]  ;;  %v6782_v54 = vld [vmem:[#allocation51_spill] sm:$0xff] }
 0x757   :  { %4393 = vmatprep.subr.bf16.mxu0 %v6772_v12  ;;  %4457 = vmatprep.subr.bf16.mxu1 %v6773_v53  ;;  %v6783_v12 = vld [vmem:[#allocation52_spill] sm:$0xff]  ;;  %v6784_v53 = vld [vmem:[#allocation53_spill] sm:$0xff] }
 0x75a   :  { %4395 = vmatpush1.bf16.msra.mxu0 %v6774_v16  ;;  %4459 = vmatpush1.bf16.msra.mxu1 %v6775_v57  ;;  %v6785_v16 = vld [vmem:[#allocation54_spill] sm:$0xff]  ;;  %v6786_v57 = vld [vmem:[#allocation55_spill] sm:$0xff] }
 0x75b   :  { %4397 = vmatprep.subr.bf16.mxu0 %v6776_v63  ;;  %4461 = vmatprep.subr.bf16.mxu1 %v6777_v0  ;;  %v6787_v63 = vld [vmem:[#allocation56_spill] sm:$0xff]  ;;  %v6788_v0 = vld [vmem:[#allocation57_spill] sm:$0xff] }
 0x75e   :  { %4399 = vmatpush1.bf16.msra.mxu0 %v6778_v39  ;;  %4463 = vmatpush1.bf16.msra.mxu1 %v6779_v22  ;;  %v6789_v39 = vld [vmem:[#allocation58_spill] sm:$0xff]  ;;  %v6790_v22 = vld [vmem:[#allocation59_spill] sm:$0xff] }
 0x75f   :  { %4401 = vmatprep.subr.bf16.mxu0 %v6780_v19  ;;  %4465 = vmatprep.subr.bf16.mxu1 %v6781_v5  ;;  %v6791_v19 = vld [vmem:[#allocation60_spill] sm:$0xff]  ;;  %v6792_v5 = vld [vmem:[#allocation61_spill] sm:$0xff] }
 0x762   :  { %4403 = vmatpush1.bf16.msra.mxu0 %v6782_v54  ;;  %4467 = vmatpush1.bf16.msra.mxu1 %v6783_v12  ;;  %v6793_v54 = vld [vmem:[#allocation62_spill] sm:$0xff]  ;;  %v6794_v12 = vld [vmem:[#allocation63_spill] sm:$0xff] }
 0x763   :  { %4405 = vmatprep.subr.bf16.mxu0 %v6784_v53  ;;  %4469 = vmatprep.subr.bf16.mxu1 %v6785_v16  ;;  %v6795_v53 = vld [vmem:[#allocation64_spill] sm:$0xff]  ;;  %v6796_v16 = vld [vmem:[#allocation65_spill] sm:$0xff] }
 0x766   :  { %4407 = vmatpush1.bf16.msra.mxu0 %v6786_v57  ;;  %4471 = vmatpush1.bf16.msra.mxu1 %v6787_v63  ;;  %v6797_v57 = vld [vmem:[#allocation66_spill] sm:$0xff]  ;;  %v6798_v63 = vld [vmem:[#allocation67_spill] sm:$0xff] }
 0x767   :  { %4409 = vmatprep.subr.bf16.mxu0 %v6788_v0  ;;  %4473 = vmatprep.subr.bf16.mxu1 %v6789_v39  ;;  %v6799_v0 = vld [vmem:[#allocation68_spill] sm:$0xff]  ;;  %v6800_v39 = vld [vmem:[#allocation69_spill] sm:$0xff] }
 0x76a   :  { %4411 = vmatpush1.bf16.msra.mxu0 %v6790_v22  ;;  %4475 = vmatpush1.bf16.msra.mxu1 %v6791_v19  ;;  %v6801_v22 = vld [vmem:[#allocation70_spill] sm:$0xff]  ;;  %v6802_v19 = vld [vmem:[#allocation71_spill] sm:$0xff] }
 0x76b   :  { %4413 = vmatprep.subr.bf16.mxu0 %v6792_v5  ;;  %4477 = vmatprep.subr.bf16.mxu1 %v6793_v54  ;;  %v6803_v5 = vld [vmem:[#allocation72_spill] sm:$0xff]  ;;  %v6804_v54 = vld [vmem:[#allocation18_spill] sm:$0xff] }
 0x76e   :  { %4415 = vmatpush1.bf16.msra.mxu0 %v6794_v12  ;;  %4479 = vmatpush1.bf16.msra.mxu1 %v6795_v53  ;;  %v6805_v12 = vld [vmem:[#allocation19_spill] sm:$0xff] }
 0x76f   :  { %4417 = vmatprep.subr.bf16.mxu0 %v6796_v16  ;;  %4481 = vmatprep.subr.bf16.mxu1 %v6797_v57 }
 0x772   :  { %4419 = vmatpush1.bf16.msra.mxu0 %v6798_v63  ;;  %4483 = vmatpush1.bf16.msra.mxu1 %v6799_v0 }
 0x773   :  { %4421 = vmatprep.subr.bf16.mxu0 %v6800_v39  ;;  %4485 = vmatprep.subr.bf16.mxu1 %v6801_v22  ;;  %v6808_v22 = vld [vmem:[#allocation75_spill] sm:$0xff] }
 0x776   :  { %4423 = vmatpush1.bf16.msra.mxu0 %v6802_v19  ;;  %4487 = vmatpush1.bf16.msra.mxu1 %v6803_v5  ;;  %v6809_v5 = vld [vmem:[#allocation76_spill] sm:$0xff] }
 0x777   :  { %4489 = vmatprep.subr.bf16.mxu0 %v6804_v54  ;;  %4521 = vmatprep.subr.bf16.mxu1 %v6805_v12 }
 0x7ec   :  { %v2271_v53 = vpop.f32.mrb[22].mxu0  ;;  %v2342_v16 = vpop.f32.mrb[22].mxu1 }
 0x7ed   :  { %v2272_v57 = vadd.f32 %v6806_v29, %v2271_v53  ;;  %v2273_v11 = vpop.f32.mrb[23].mxu0  ;;  %v2344_v63 = vpop.f32.mrb[23].mxu1  ;;  %v2343_v56 = vadd.f32 %v6809_v5, %v2342_v16 }
 0x7ee   :  { %v2274_v0 = vadd.f32 %v6807_v32, %v2273_v11  ;;  %v2345_v19 = vadd.f32 %v6808_v22, %v2344_v63  ;;  %v2375_v63 = vld [vmem:[#allocation5 + $0xc0] sm:$0xff] }
 0x7ef   :  { %v3129_v44 = vmul.f32 -1.442695, %v2272_v57 }
 0x7f0   :  { %v3130_v39 = vmul.f32 -1.442695, %v2274_v0  ;;  %v3131_v13 = vmul.f32 -1.442695, %v2345_v19 }
 0x7f1   :  { %4864 = vpow2.f32 %v3129_v44 }
 0x7f2   :  { %4866 = vpow2.f32 %v3130_v39  ;;  %v2376_v39 = vld [vmem:[#allocation5 + $0xc8] sm:$0xff] }
 0x7f3   :  { %4868 = vpow2.f32 %v3131_v13 }
 0x7f4   :  { %4870 = vtanh.f32 %v2343_v56 }
 0x7fb   :  { %v4865_v54 = vpop.eup %4864 }
 0x7fc   :  { %v4867_v36 = vpop.eup %4866  ;;  %v2351_v12 = vadd.f32 1.0, %v4865_v54 }
 0x7fd   :  { %v2357_v38 = vadd.f32 1.0, %v4867_v36  ;;  %v4869_v29 = vpop.eup %4868 }
 0x7fe   :  { %4872 = vrcp.f32 %v2351_v12  ;;  %v4871_v53 = vpop.eup %4870  ;;  %v2364_v44 = vadd.f32 1.0, %v4869_v29  ;;  %v2378_v12 = vld [vmem:[#allocation5 + $0xd8] sm:$0xff] }
 0x7ff   :  { %4874 = vrcp.f32 %v2357_v38 }
 0x800   :  { %4876 = vrcp.f32 %v2364_v44 }
 0x808   :  { %v4873_v32 = vpop.eup %4872 }
 0x809   :  { %v4875_v11 = vpop.eup %4874  ;;  %v2368_v57 = vmul.f32 %v4873_v32, %v4871_v53 }
 0x80a   :  { %v2367_v0 = vmul.f32 %v4875_v11, %v6024_v23  ;;  %v2377_v23 = vld [vmem:[#allocation5 + $0xd0] sm:$0xff]  ;;  %v4877_v53 = vpop.eup %4876 }
 0x80c   :  { %v2446_v22 = vpop.f32.mrb[24].mxu0  ;;  %v2517_v16 = vpop.f32.mrb[24].mxu1  ;;  %v6134_v19 = vadd.f32 %v2368_v57, %v2367_v0 }
 0x80d   :  { %v2522_v13 = vadd.f32 %v2446_v22, %v2375_v63  ;;  %v2448_v56 = vpop.f32.mrb[25].mxu0  ;;  %v2519_v36 = vpop.f32.mrb[25].mxu1  ;;  %v2524_v3 = vadd.f32 %v2517_v16, %v2377_v23 }
 0x80e   :  { %v2523_v5 = vadd.f32 %v2448_v56, %v2376_v39  ;;  %4878 = vtanh.f32 %v6134_v19  ;;  %v2525_v29 = vadd.f32 %v2519_v36, %v2378_v12 }
 0x80f   :  { %v3132_v38 = vmul.f32 -1.442695, %v2522_v13 }
 0x810   :  { %v3133_v54 = vmul.f32 -1.442695, %v2523_v5  ;;  %v3134_v11 = vmul.f32 -1.442695, %v2525_v29 }
 0x811   :  { %4880 = vpow2.f32 %v3132_v38 }
 0x812   :  { %4882 = vpow2.f32 %v3133_v54 }
 0x813   :  { %4884 = vpow2.f32 %v3134_v11  ;;  %v6856_v11 = vld [vmem:[#allocation66_spill] sm:$0xff] }
 0x814   :  { %4886 = vtanh.f32 %v2524_v3  ;;  %v6853_v3 = vld [vmem:[#allocation63_spill] sm:$0xff] }
 0x818   :  { %v4879_v32 = vpop.eup %4878 }
 0x819   :  { %v2371_v57 = vmul.f32 %v4879_v32, %v4877_v53  ;;  %v6854_v53 = vld [vmem:[#allocation64_spill] sm:$0xff]  ;;  %v6855_v32 = vld [vmem:[#allocation65_spill] sm:$0xff] }
 0x81b   :  { %v4881_v0 = vpop.eup %4880  ;;  %2619 = vmatprep.mubr.f32.mxu0 %v2371_v57  ;;  %2690 = vmatprep.mubr.f32.mxu1 %v2371_v57  ;;  %v6857_v57 = vld [vmem:[#allocation67_spill] sm:$0xff] }
 0x81c   :  { %v4883_v44 = vpop.eup %4882  ;;  %v2530_v63 = vadd.f32 1.0, %v4881_v0  ;;  %v6858_v0 = vld [vmem:[#allocation68_spill] sm:$0xff] }
 0x81d   :  { %v2536_v39 = vadd.f32 1.0, %v4883_v44  ;;  %v4885_v22 = vpop.eup %4884  ;;  %v6859_v44 = vld [vmem:[#allocation69_spill] sm:$0xff] }
 0x81e   :  { %4888 = vrcp.f32 %v2530_v63  ;;  %v4887_v13 = vpop.eup %4886  ;;  %v2543_v38 = vadd.f32 1.0, %v4885_v22  ;;  %v6860_v63 = vld [vmem:[#allocation70_spill] sm:$0xff]  ;;  %v6862_v22 = vld [vmem:[#allocation72_spill] sm:$0xff] }
 0x81f   :  { %4890 = vrcp.f32 %v2536_v39  ;;  %v6861_v39 = vld [vmem:[#allocation71_spill] sm:$0xff] }
 0x820   :  { %4892 = vrcp.f32 %v2543_v38 }
 0x828   :  { %v4889_v56 = vpop.eup %4888 }
 0x829   :  { %v4891_v36 = vpop.eup %4890  ;;  %v2547_v5 = vmul.f32 %v4889_v56, %v4887_v13 }
 0x82a   :  { %v2546_v54 = vmul.f32 %v4891_v36, %v6028_v40  ;;  %v4893_v12 = vpop.eup %4892  ;;  %v6852_v40 = vld [vmem:[#allocation62_spill] sm:$0xff]  ;;  %v6237_v36 = vld [vmem:[#allocation11] sm:$0xff] }
 0x82c   :  { %v6138_v16 = vadd.f32 %v2547_v5, %v2546_v54 }
 0x82e   :  { %4894 = vtanh.f32 %v6138_v16 }
 0x838   :  { %v4895_v29 = vpop.eup %4894 }
 0x839   :  { %v2550_v23 = vmul.f32 %v4895_v29, %v4893_v12  ;;  %v6240_v12 = vld [vmem:[#allocation11 + $0x8] sm:$0xff] }
 0x83b   :  { %2620 = vmatmul.mubr.f32.vlgmr.msra.gmra.mrb[26].mxu0 %v2550_v23  ;;  %2691 = vmatmul.mubr.f32.vlgmr.msra.gmra.mrb[26].mxu1 %v2550_v23 }
 0x83c   :  { %4491 = vmatpush1.bf16.msra.mxu0 %v5171_v8  ;;  %4523 = vmatpush1.bf16.msra.mxu1 %v5184_v25  ;;  %v6810_v8 = vld [vmem:[#allocation22_spill] sm:$0xff] }
 0x83d   :  { %4493 = vmatprep.subr.bf16.mxu0 %v5173_v9  ;;  %4525 = vmatprep.subr.bf16.mxu1 %v5194_v33  ;;  %v6811_v9 = vld [vmem:[#allocation20_spill] sm:$0xff]  ;;  %v6814_v25 = vld [vmem:[#allocation26_spill] sm:$0xff]  ;;  %v6817_v33 = vld [vmem:[#allocation25_spill] sm:$0xff] }
 0x83e   :  { %2794 = vmatprep.mubr.f32.mxu0 %v6459_v4  ;;  %2865 = vmatprep.mubr.f32.mxu1 %v6459_v4  ;;  %v6851_v4 = vld [vmem:[#allocation61_spill] sm:$0xff] }
 0x840   :  { %4495 = vmatpush1.bf16.msra.mxu0 %v5177_v14  ;;  %4527 = vmatpush1.bf16.msra.mxu1 %v5196_v37  ;;  %v6812_v14 = vld [vmem:[#allocation24_spill] sm:$0xff] }
 0x841   :  { %4497 = vmatprep.subr.bf16.mxu0 %v5180_v17  ;;  %4529 = vmatprep.subr.bf16.mxu1 %v5202_v45  ;;  %v6813_v17 = vld [vmem:[#allocation21_spill] sm:$0xff]  ;;  %v6818_v37 = vld [vmem:[#allocation28_spill] sm:$0xff]  ;;  %v6820_v45 = vld [vmem:[#allocation30_spill] sm:$0xff] }
 0x844   :  { %4499 = vmatpush1.bf16.msra.mxu0 %v5187_v26  ;;  %4531 = vmatpush1.bf16.msra.mxu1 %v5208_v48  ;;  %v6815_v26 = vld [vmem:[#allocation23_spill] sm:$0xff]  ;;  %v6822_v48 = vld [vmem:[#allocation32_spill] sm:$0xff] }
 0x845   :  { %4501 = vmatprep.subr.bf16.mxu0 %v5191_v30  ;;  %4533 = vmatprep.subr.bf16.mxu1 %v5211_v52  ;;  %v6816_v30 = vld [vmem:[#allocation27_spill] sm:$0xff]  ;;  %v6823_v52 = vld [vmem:[#allocation33_spill] sm:$0xff] }
 0x848   :  { %4503 = vmatpush1.bf16.msra.mxu0 %v5200_v42  ;;  %4535 = vmatpush1.bf16.msra.mxu1 %v5220_v62  ;;  %v6819_v42 = vld [vmem:[#allocation29_spill] sm:$0xff]  ;;  %v6826_v62 = vld [vmem:[#allocation36_spill] sm:$0xff] }
 0x849   :  { %4505 = vmatprep.subr.bf16.mxu0 %v5205_v46  ;;  %4537 = vmatprep.subr.bf16.mxu1 %v5223_v1  ;;  %v6821_v46 = vld [vmem:[#allocation31_spill] sm:$0xff]  ;;  %v6827_v1 = vld [vmem:[#allocation37_spill] sm:$0xff] }
 0x84c   :  { %4507 = vmatpush1.bf16.msra.mxu0 %v5214_v55  ;;  %4539 = vmatpush1.bf16.msra.mxu1 %v5232_v15  ;;  %v6824_v55 = vld [vmem:[#allocation34_spill] sm:$0xff]  ;;  %v6830_v15 = vld [vmem:[#allocation40_spill] sm:$0xff] }
 0x84d   :  { %4509 = vmatprep.subr.bf16.mxu0 %v5217_v58  ;;  %4541 = vmatprep.subr.bf16.mxu1 %v5235_v18  ;;  %v6825_v58 = vld [vmem:[#allocation35_spill] sm:$0xff]  ;;  %v6831_v18 = vld [vmem:[#allocation41_spill] sm:$0xff] }
 0x850   :  { %4511 = vmatpush1.bf16.msra.mxu0 %v5226_v7  ;;  %4543 = vmatpush1.bf16.msra.mxu1 %v5244_v31  ;;  %v6828_v7 = vld [vmem:[#allocation38_spill] sm:$0xff]  ;;  %v6834_v31 = vld [vmem:[#allocation44_spill] sm:$0xff] }
 0x851   :  { %4513 = vmatprep.subr.bf16.mxu0 %v5229_v10  ;;  %4545 = vmatprep.subr.bf16.mxu1 %v5247_v34  ;;  %v6829_v10 = vld [vmem:[#allocation39_spill] sm:$0xff]  ;;  %v6835_v34 = vld [vmem:[#allocation45_spill] sm:$0xff] }
 0x854   :  { %4515 = vmatpush1.bf16.msra.mxu0 %v5238_v24  ;;  %4547 = vmatpush1.bf16.msra.mxu1 %v5254_v43  ;;  %v6832_v24 = vld [vmem:[#allocation42_spill] sm:$0xff]  ;;  %v6837_v43 = vld [vmem:[#allocation47_spill] sm:$0xff] }
 0x855   :  { %4517 = vmatprep.subr.bf16.mxu0 %v5241_v27  ;;  %4549 = vmatprep.subr.bf16.mxu1 %v5259_v51  ;;  %v6833_v27 = vld [vmem:[#allocation43_spill] sm:$0xff]  ;;  %v6839_v51 = vld [vmem:[#allocation49_spill] sm:$0xff] }
 0x858   :  { %4519 = vmatpush1.bf16.msra.mxu0 %v5250_v41  ;;  %4551 = vmatpush1.bf16.msra.mxu1 %v5265_v61  ;;  %v6836_v41 = vld [vmem:[#allocation46_spill] sm:$0xff]  ;;  %v6841_v61 = vld [vmem:[#allocation51_spill] sm:$0xff] }
 0x859   :  { %4553 = vmatprep.subr.bf16.mxu0 %v5256_v47  ;;  %4617 = vmatprep.subr.bf16.mxu1 %v5271_v6  ;;  %v6838_v47 = vld [vmem:[#allocation48_spill] sm:$0xff]  ;;  %v6843_v6 = vld [vmem:[#allocation53_spill] sm:$0xff] }
 0x85b   :  { %2795 = vmatmul.mubr.f32.vlgmr.msra.gmra.mrb[28].mxu0 %v2550_v23  ;;  %2866 = vmatmul.mubr.f32.vlgmr.msra.gmra.mrb[28].mxu1 %v2550_v23 }
 0x85c   :  { %4555 = vmatpush1.bf16.msra.mxu0 %v5262_v60  ;;  %4619 = vmatpush1.bf16.msra.mxu1 %v5279_v21  ;;  %v6840_v60 = vld [vmem:[#allocation50_spill] sm:$0xff]  ;;  %v6845_v21 = vld [vmem:[#allocation55_spill] sm:$0xff] }
 0x85d   :  { %4557 = vmatprep.subr.bf16.mxu0 %v5268_v2  ;;  %4621 = vmatprep.subr.bf16.mxu1 %v5285_v35  ;;  %v6842_v2 = vld [vmem:[#allocation52_spill] sm:$0xff]  ;;  %v6847_v35 = vld [vmem:[#allocation57_spill] sm:$0xff] }
 0x860   :  { %4559 = vmatpush1.bf16.msra.mxu0 %v5275_v20  ;;  %4623 = vmatpush1.bf16.msra.mxu1 %v5292_v50  ;;  %v6844_v20 = vld [vmem:[#allocation54_spill] sm:$0xff]  ;;  %v6849_v50 = vld [vmem:[#allocation59_spill] sm:$0xff] }
 0x861   :  { %4561 = vmatprep.subr.bf16.mxu0 %v5282_v28  ;;  %4625 = vmatprep.subr.bf16.mxu1 %v5298_v59  ;;  %v6846_v28 = vld [vmem:[#allocation56_spill] sm:$0xff] }
 0x862   :  { %v6850_v59 = vld [vmem:[#allocation60_spill] sm:$0xff] }
 0x864   :  { %4563 = vmatpush1.bf16.msra.mxu0 %v5289_v49  ;;  %4627 = vmatpush1.bf16.msra.mxu1 %v6810_v8  ;;  %v6848_v49 = vld [vmem:[#allocation58_spill] sm:$0xff] }
 0x865   :  { %4565 = vmatprep.subr.bf16.mxu0 %v6811_v9  ;;  %4629 = vmatprep.subr.bf16.mxu1 %v6812_v14  ;;  %v6243_v9 = vld [vmem:[#allocation11 + $0x18] sm:$0xff] }
 0x868   :  { %4567 = vmatpush1.bf16.msra.mxu0 %v6813_v17  ;;  %4631 = vmatpush1.bf16.msra.mxu1 %v6814_v25  ;;  %v6246_v25 = vld [vmem:[#allocation11 + $0x10] sm:$0xff] }
 0x869   :  { %4569 = vmatprep.subr.bf16.mxu0 %v6815_v26  ;;  %4633 = vmatprep.subr.bf16.mxu1 %v6816_v30 }
 0x86c   :  { %4571 = vmatpush1.bf16.msra.mxu0 %v6817_v33  ;;  %4635 = vmatpush1.bf16.msra.mxu1 %v6818_v37 }
 0x86d   :  { %4573 = vmatprep.subr.bf16.mxu0 %v6819_v42  ;;  %4637 = vmatprep.subr.bf16.mxu1 %v6820_v45 }
 0x870   :  { %4575 = vmatpush1.bf16.msra.mxu0 %v6821_v46  ;;  %4639 = vmatpush1.bf16.msra.mxu1 %v6822_v48 }
 0x871   :  { %4577 = vmatprep.subr.bf16.mxu0 %v6823_v52  ;;  %4641 = vmatprep.subr.bf16.mxu1 %v6824_v55 }
 0x874   :  { %4579 = vmatpush1.bf16.msra.mxu0 %v6825_v58  ;;  %4643 = vmatpush1.bf16.msra.mxu1 %v6826_v62 }
 0x875   :  { %4581 = vmatprep.subr.bf16.mxu0 %v6827_v1  ;;  %4645 = vmatprep.subr.bf16.mxu1 %v6828_v7  ;;  %v2725_v1 = vld [vmem:[#allocation5 + $0xe0] sm:$0xff]  ;;  %v2726_v7 = vld [vmem:[#allocation5 + $0xe8] sm:$0xff] }
 0x878   :  { %4583 = vmatpush1.bf16.msra.mxu0 %v6829_v10  ;;  %4647 = vmatpush1.bf16.msra.mxu1 %v6830_v15 }
 0x879   :  { %4585 = vmatprep.subr.bf16.mxu0 %v6831_v18  ;;  %4649 = vmatprep.subr.bf16.mxu1 %v6832_v24 }
 0x87c   :  { %4587 = vmatpush1.bf16.msra.mxu0 %v6833_v27  ;;  %4651 = vmatpush1.bf16.msra.mxu1 %v6834_v31 }
 0x87d   :  { %4589 = vmatprep.subr.bf16.mxu0 %v6835_v34  ;;  %4653 = vmatprep.subr.bf16.mxu1 %v6836_v41 }
 0x880   :  { %4591 = vmatpush1.bf16.msra.mxu0 %v6837_v43  ;;  %4655 = vmatpush1.bf16.msra.mxu1 %v6838_v47  ;;  %v2728_v47 = vld [vmem:[#allocation5 + $0xf8] sm:$0xff] }
 0x881   :  { %4593 = vmatprep.subr.bf16.mxu0 %v6839_v51  ;;  %4657 = vmatprep.subr.bf16.mxu1 %v6840_v60 }
 0x884   :  { %4595 = vmatpush1.bf16.msra.mxu0 %v6841_v61  ;;  %4659 = vmatpush1.bf16.msra.mxu1 %v6842_v2 }
 0x885   :  { %4597 = vmatprep.subr.bf16.mxu0 %v6843_v6  ;;  %4661 = vmatprep.subr.bf16.mxu1 %v6844_v20 }
 0x888   :  { %4599 = vmatpush1.bf16.msra.mxu0 %v6845_v21  ;;  %4663 = vmatpush1.bf16.msra.mxu1 %v6846_v28 }
 0x889   :  { %4601 = vmatprep.subr.bf16.mxu0 %v6847_v35  ;;  %4665 = vmatprep.subr.bf16.mxu1 %v6848_v49 }
 0x88c   :  { %4603 = vmatpush1.bf16.msra.mxu0 %v6849_v50  ;;  %4667 = vmatpush1.bf16.msra.mxu1 %v6850_v59 }
 0x88d   :  { %4605 = vmatprep.subr.bf16.mxu0 %v6851_v4  ;;  %4669 = vmatprep.subr.bf16.mxu1 %v6852_v40 }
 0x890   :  { %4607 = vmatpush1.bf16.msra.mxu0 %v6853_v3  ;;  %4671 = vmatpush1.bf16.msra.mxu1 %v6854_v53 }
 0x891   :  { %4609 = vmatprep.subr.bf16.mxu0 %v6855_v32  ;;  %4673 = vmatprep.subr.bf16.mxu1 %v6856_v11 }
 0x894   :  { %4611 = vmatpush1.bf16.msra.mxu0 %v6857_v57  ;;  %4675 = vmatpush1.bf16.msra.mxu1 %v6858_v0 }
 0x895   :  { %4613 = vmatprep.subr.bf16.mxu0 %v6859_v44  ;;  %4677 = vmatprep.subr.bf16.mxu1 %v6860_v63 }
 0x898   :  { %4615 = vmatpush1.bf16.msra.mxu0 %v6861_v39  ;;  %4679 = vmatpush1.bf16.msra.mxu1 %v6862_v22 }
 0x90e   :  { %v2621_v13 = vpop.f32.mrb[26].mxu0  ;;  %v2692_v56 = vpop.f32.mrb[26].mxu1 }
 0x90f   :  { %v2622_v5 = vadd.f32 %v6237_v36, %v2621_v13  ;;  %v2623_v38 = vpop.f32.mrb[27].mxu0  ;;  %v2694_v54 = vpop.f32.mrb[27].mxu1  ;;  %v2693_v26 = vadd.f32 %v6246_v25, %v2692_v56 }
 0x910   :  { %v2624_v29 = vadd.f32 %v6240_v12, %v2623_v38  ;;  %v2695_v14 = vadd.f32 %v6243_v9, %v2694_v54 }
 0x911   :  { %v3135_v23 = vmul.f32 -1.442695, %v2622_v5 }
 0x912   :  { %v3136_v8 = vmul.f32 -1.442695, %v2624_v29  ;;  %v3137_v17 = vmul.f32 -1.442695, %v2695_v14 }
 0x913   :  { %4896 = vpow2.f32 %v3135_v23 }
 0x914   :  { %4898 = vpow2.f32 %v3136_v8 }
 0x915   :  { %4900 = vpow2.f32 %v3137_v17 }
 0x916   :  { %4902 = vtanh.f32 %v2693_v26 }
 0x91d   :  { %v4897_v30 = vpop.eup %4896 }
 0x91e   :  { %v4899_v33 = vpop.eup %4898  ;;  %v2701_v37 = vadd.f32 1.0, %v4897_v30 }
 0x91f   :  { %v2707_v42 = vadd.f32 1.0, %v4899_v33  ;;  %v4901_v45 = vpop.eup %4900 }
 0x920   :  { %4904 = vrcp.f32 %v2701_v37  ;;  %v4903_v46 = vpop.eup %4902  ;;  %v2714_v58 = vadd.f32 1.0, %v4901_v45 }
 0x921   :  { %4906 = vrcp.f32 %v2707_v42 }
 0x922   :  { %4908 = vrcp.f32 %v2714_v58 }
 0x92a   :  { %v4905_v48 = vpop.eup %4904 }
 0x92b   :  { %v4907_v52 = vpop.eup %4906  ;;  %v2718_v55 = vmul.f32 %v4905_v48, %v4903_v46 }
 0x92c   :  { %v2717_v62 = vmul.f32 %v4907_v52, %v6134_v19  ;;  %v2727_v19 = vld [vmem:[#allocation5 + $0xf0] sm:$0xff]  ;;  %v4909_v60 = vpop.eup %4908 }
 0x92e   :  { %v2796_v10 = vpop.f32.mrb[28].mxu0  ;;  %v2867_v15 = vpop.f32.mrb[28].mxu1  ;;  %v6250_v18 = vadd.f32 %v2718_v55, %v2717_v62 }
 0x92f   :  { %v2872_v24 = vadd.f32 %v2796_v10, %v2725_v1  ;;  %v2798_v27 = vpop.f32.mrb[29].mxu0  ;;  %v2869_v31 = vpop.f32.mrb[29].mxu1  ;;  %v2874_v6 = vadd.f32 %v2867_v15, %v2727_v19 }
 0x930   :  { %v2873_v34 = vadd.f32 %v2798_v27, %v2726_v7  ;;  %4910 = vtanh.f32 %v6250_v18  ;;  %v2875_v51 = vadd.f32 %v2869_v31, %v2728_v47 }
 0x931   :  { %v3138_v41 = vmul.f32 -1.442695, %v2872_v24 }
 0x932   :  { %v3139_v43 = vmul.f32 -1.442695, %v2873_v34  ;;  %v3140_v2 = vmul.f32 -1.442695, %v2875_v51 }
 0x933   :  { %4912 = vpow2.f32 %v3138_v41 }
 0x934   :  { %4914 = vpow2.f32 %v3139_v43 }
 0x935   :  { %4916 = vpow2.f32 %v3140_v2 }
 0x936   :  { %4918 = vtanh.f32 %v2874_v6 }
 0x93a   :  { %v4911_v61 = vpop.eup %4910 }
 0x93b   :  { %v2721_v20 = vmul.f32 %v4911_v61, %v4909_v60 }
 0x93d   :  { %v4913_v21 = vpop.eup %4912  ;;  %2969 = vmatprep.mubr.f32.mxu0 %v2721_v20  ;;  %3040 = vmatprep.mubr.f32.mxu1 %v2721_v20 }
 0x93e   :  { %v4915_v28 = vpop.eup %4914  ;;  %v2880_v35 = vadd.f32 1.0, %v4913_v21 }
 0x93f   :  { %v2886_v49 = vadd.f32 1.0, %v4915_v28  ;;  %v4917_v50 = vpop.eup %4916 }
 0x940   :  { %4920 = vrcp.f32 %v2880_v35  ;;  %v4919_v59 = vpop.eup %4918  ;;  %v2893_v53 = vadd.f32 1.0, %v4917_v50 }
 0x941   :  { %4922 = vrcp.f32 %v2886_v49 }
 0x942   :  { %4924 = vrcp.f32 %v2893_v53 }
 0x94a   :  { %v4921_v4 = vpop.eup %4920 }
 0x94b   :  { %v4923_v40 = vpop.eup %4922  ;;  %v2897_v3 = vmul.f32 %v4921_v4, %v4919_v59 }
 0x94c   :  { %v2896_v32 = vmul.f32 %v4923_v40, %v6138_v16  ;;  %v4925_v57 = vpop.eup %4924 }
 0x94e   :  { %v2898_v11 = vadd.f32 %v2897_v3, %v2896_v32 }
 0x950   :  { %4926 = vtanh.f32 %v2898_v11 }
 0x95a   :  { %v4927_v0 = vpop.eup %4926 }
 0x95b   :  { %v2900_v44 = vmul.f32 %v4927_v0, %v4925_v57 }
 0x95d   :  { %2970 = vmatmul.mubr.f32.vlgmr.msra.gmra.mrb[30].mxu0 %v2900_v44  ;;  %3041 = vmatmul.mubr.f32.vlgmr.msra.gmra.mrb[30].mxu1 %v2900_v44 }
 0xa30   :  { %v2971_v63 = vpop.f32.mrb[30].mxu0  ;;  %v3042_v39 = vpop.f32.mrb[30].mxu1 }
 0xa31   :  { %v2972_v22 = vadd.f32 %v6237_v36, %v2971_v63  ;;  %v2973_v13 = vpop.f32.mrb[31].mxu0  ;;  %v3044_v56 = vpop.f32.mrb[31].mxu1  ;;  %v3043_v23 = vadd.f32 %v6246_v25, %v3042_v39 }
 0xa32   :  { %v2974_v5 = vadd.f32 %v6240_v12, %v2973_v13  ;;  %v3045_v16 = vadd.f32 %v6243_v9, %v3044_v56 }
 0xa33   :  { %v3141_v38 = vmul.f32 -1.442695, %v2972_v22 }
 0xa34   :  { %v3142_v54 = vmul.f32 -1.442695, %v2974_v5  ;;  %v3143_v29 = vmul.f32 -1.442695, %v3045_v16 }
 0xa35   :  { %4928 = vpow2.f32 %v3141_v38 }
 0xa36   :  { %4930 = vpow2.f32 %v3142_v54 }
 0xa37   :  { %4932 = vpow2.f32 %v3143_v29 }
 0xa38   :  { %4934 = vtanh.f32 %v3043_v23 }
 0xa3f   :  { %v4929_v8 = vpop.eup %4928 }
 0xa40   :  { %v4931_v14 = vpop.eup %4930  ;;  %v3051_v17 = vadd.f32 1.0, %v4929_v8 }
 0xa41   :  { %v3057_v26 = vadd.f32 1.0, %v4931_v14  ;;  %v4933_v36 = vpop.eup %4932 }
 0xa42   :  { %4936 = vrcp.f32 %v3051_v17  ;;  %v4935_v30 = vpop.eup %4934  ;;  %v3064_v42 = vadd.f32 1.0, %v4933_v36 }
 0xa43   :  { %4938 = vrcp.f32 %v3057_v26 }
 0xa44   :  { %4940 = vrcp.f32 %v3064_v42 }
 0xa4c   :  { %v4937_v12 = vpop.eup %4936 }
 0xa4d   :  { %v4939_v33 = vpop.eup %4938  ;;  %v3068_v37 = vmul.f32 %v4937_v12, %v4935_v30 }
 0xa4e   :  { %v3067_v45 = vmul.f32 %v4939_v33, %v6250_v18  ;;  %v4941_v25 = vpop.eup %4940 }
 0xa50   :  { %v3069_v9 = vadd.f32 %v3068_v37, %v3067_v45 }
 0xa52   :  { %4942 = vtanh.f32 %v3069_v9 }
 0xa5c   :  { %v4943_v46 = vpop.eup %4942 }
 0xa5d   :  { %v3071_v48 = vmul.f32 %v4943_v46, %v4941_v25 }
 0xa5f   :  { %3078 = vst [vmem:[#allocation13] sm:$0xff] %v3071_v48 }
 0xa60   :  { %5051 = shalt.err (!%p5048_p8)
}
 0xa61   :  { %s5052_s13 = scalar_lea.hbm %s6275_s4, 128 }
 0xa62   :  { %p5053_p9 = scmp.ne.s32.totalorder %s6275_s4, %s5052_s13  ;;  %p5056_p10 = scmp.lt.u32.totalorder %s5052_s13, %s6275_s4 }
 0xa64   :  { %p5058_p11 = pnand %p5056_p10, %p5053_p9 }
 0xa66   :  { %5061 = shalt.err (!%p5058_p11)
}
 0xa67   :  { %3088 = dma.vmem_to_hbm [thread:$0]  %s3086_s28, 128, %s6275_s4, [#allocation7]  }
 0xa68   :  { %5068 = dma.done.wait [#allocation7], 128  }
 0xa69   :  { %5069 = vsyncadd [#allocation7], 4294967168 }
 0xa6a   :  { %3092 = vsyncpa [#allocation6], 1 }
 0xa6b   :  { %3093 = vsyncpa [#allocation9], 1 }
 0xa6c   :  { %3094 = vsyncpa [#allocation12], 1 }
 0xa6d   :  { %3095 = vsyncpa [#allocation7], 1 }

</bundles_post_ra>
